<compile_context>
chip_gen: v5e
topology: v5e:2x2
jax: 0.10.0
libtpu: 0.0.40
codegen_flags: <defaults>
</compile_context>

<pallas_src>
import functools

import jax
import jax.numpy as jnp
from jax.experimental import pallas as pl
from jax.experimental.pallas import tpu as pltpu


# ----------------------------------------------------------------------------
# Fused EncoderBlock (+ optional MaxPool2d epilogue) kernel.
# One grid step processes a (bt, L, Dp) batch tile; all weights live in VMEM.
# ----------------------------------------------------------------------------
def _encoder_layer_kernel(x_ref,
                          wqkv_ref, bqkv_ref, wo_ref, bo_ref,
                          ln1g_ref, ln1b_ref,
                          w1_ref, b1_ref, w2_ref, b2_ref,
                          ln2g_ref, ln2b_ref,
                          o_ref, *scratch,
                          num_heads, bt, seq_len, head_dim, d_real, d_pad,
                          pool_k, pool_hw):
    f32 = jnp.float32
    bf16 = jnp.bfloat16
    L, hd, nh, Dp = seq_len, head_dim, num_heads, d_pad
    N = bt * L
    inv_d = 1.0 / float(d_real)

    # fold batch into the row dim for all dense matmuls (tile-preserving).
    x = x_ref[...].astype(f32).reshape(N, Dp)             # (N, Dp), pad lanes == 0
    xb = x.astype(bf16)

    # --- merged QKV projection: one (N, Dp) @ (Dp, 3*Dp) MXU pass ---
    # (1/sqrt(hd) is already folded into Wq / bq at prep time.)
    qkv = jnp.dot(xb, wqkv_ref[...], preferred_element_type=f32) + bqkv_ref[...]
    q = qkv[:, 0:Dp].reshape(bt, L, Dp)                    # 128-lane aligned slices
    k = qkv[:, Dp:2 * Dp].reshape(bt, L, Dp).astype(bf16)
    v = qkv[:, 2 * Dp:3 * Dp].reshape(bt, L, Dp).astype(bf16)

    # constant lane index for the per-head lane masks (folded per unrolled head)
    lane = jax.lax.broadcasted_iota(jnp.int32, (1, 1, Dp), 2)

    # --- multi-head self-attention (plain, unmasked) ---
    # Head h occupies lanes [h*hd, (h+1)*hd); masking q to those lanes makes the
    # full-K (=Dp) contraction with unmasked k exactly the per-head score, and
    # the head outputs land in disjoint lanes so Wo is a single matmul.
    attn_cat = jnp.zeros((bt, L, Dp), f32)
    for h in range(nh):   # static unroll (nh small); see TODO for larger nh
        m = (lane >= h * hd) & (lane < (h + 1) * hd)
        qh = jnp.where(m, q, 0.0).astype(bf16)
        s = jnp.einsum('bqd,bkd->bqk', qh, k,
                       preferred_element_type=f32)         # (bt, L, L) f32
        s = s - jnp.max(s, axis=-1, keepdims=True)
        p = jnp.exp(s)
        p = p * pl.reciprocal(jnp.sum(p, axis=-1, keepdims=True), approx=True)
        oh = jnp.einsum('bqk,bkd->bqd', p.astype(bf16), v,
                        preferred_element_type=f32)        # (bt, L, Dp)
        attn_cat = jnp.where(m, oh, attn_cat)              # disjoint head lanes
    attn = jnp.dot(attn_cat.reshape(N, Dp).astype(bf16), wo_ref[...],
                   preferred_element_type=f32) + bo_ref[...]

    # --- residual + LayerNorm1 (f32; padded lanes stay zero: gamma/beta pad=0,
    #     sums are exact because padded lanes of y are zero) ---
    y = x + attn
    mu = jnp.sum(y, axis=-1, keepdims=True) * inv_d
    msq = jnp.sum(y * y, axis=-1, keepdims=True) * inv_d
    var = msq - mu * mu
    y = (y - mu) * jax.lax.rsqrt(var + 1e-5) * ln1g_ref[...] + ln1b_ref[...]

    # --- feed-forward: Linear -> ReLU -> Linear (bf16 matmuls, f32 acc) ---
    h1 = jnp.dot(y.astype(bf16), w1_ref[...], preferred_element_type=f32) + b1_ref[...]
    h1 = jnp.maximum(h1, 0.0)
    h2 = jnp.dot(h1.astype(bf16), w2_ref[...], preferred_element_type=f32) + b2_ref[...]

    # --- residual + LayerNorm2 (f32) ---
    z = y + h2
    mu2 = jnp.sum(z, axis=-1, keepdims=True) * inv_d
    msq2 = jnp.sum(z * z, axis=-1, keepdims=True) * inv_d
    var2 = msq2 - mu2 * mu2
    z = (z - mu2) * jax.lax.rsqrt(var2 + 1e-5) * ln2g_ref[...] + ln2b_ref[...]

    if pool_k <= 1:
        o_ref[...] = z.reshape(bt, L, Dp).astype(o_ref.dtype)
        return

    # --- fused ResolutionReduction: kk x kk MaxPool2d over the (H, W) grid ---
    H, W = pool_hw
    kk = pool_k
    Hk, Wk = H // kk, W // kk
    R = bt * Hk
    pool_scratch = scratch[0]                              # (R*W, Dp) VMEM f32
    # H-pool: group rows by output row-block (last dim unchanged -> cheap
    # reshape) and take an elementwise max over the leading window axis.
    z4 = z.reshape(R, kk, W, Dp)
    hp = z4[:, 0]
    for a in range(1, kk):
        hp = jnp.maximum(hp, z4[:, a])                     # (R, W, Dp)
    # W-pool: stash H-pooled rows in VMEM and reduce with kk sublane-strided
    # loads (stride = kk picks column a of every window) + elementwise max.
    pool_scratch[...] = hp.reshape(R * W, Dp)
    wp = pool_scratch[pl.ds(0, R * Wk, stride=kk), :]
    for a in range(1, kk):
        wp = jnp.maximum(wp, pool_scratch[pl.ds(a, R * Wk, stride=kk), :])
    o_ref[...] = wp.reshape(bt, Hk * Wk, Dp).astype(o_ref.dtype)


# ----------------------------------------------------------------------------
# Hoisted weight prep: pad to lane-dense widths, merge QKV, fold scale, bf16.
# ----------------------------------------------------------------------------
def _round_up(n, m):
    return ((n + m - 1) // m) * m


def _pad2(a, rows, cols):
    return jnp.pad(a, ((0, rows - a.shape[0]), (0, cols - a.shape[1])))


def _prep_encoder_params(p, num_heads, d_pad):
    f32, bf16 = jnp.float32, jnp.bfloat16
    D = p["wq"].shape[0]
    FF = p["w1"].shape[1]
    ff_pad = max(128, _round_up(FF, 128))
    hd = D // num_heads
    scale = 1.0 / float(hd) ** 0.5     # folded into Wq / bq (free at prep time)

    wq = _pad2(p["wq"].astype(f32) * scale, d_pad, d_pad)
    wk = _pad2(p["wk"].astype(f32), d_pad, d_pad)
    wv = _pad2(p["wv"].astype(f32), d_pad, d_pad)
    bq = _pad2(p["bq"].reshape(1, D).astype(f32) * scale, 1, d_pad)
    bk = _pad2(p["bk"].reshape(1, D).astype(f32), 1, d_pad)
    bv = _pad2(p["bv"].reshape(1, D).astype(f32), 1, d_pad)

    return dict(
        wqkv=jnp.concatenate([wq, wk, wv], axis=1).astype(bf16),   # (Dp, 3*Dp)
        bqkv=jnp.concatenate([bq, bk, bv], axis=1),                # (1, 3*Dp) f32
        wo=_pad2(p["wo"].astype(f32), d_pad, d_pad).astype(bf16),
        bo=_pad2(p["bo"].reshape(1, D).astype(f32), 1, d_pad),
        # gamma/beta padded with ZEROS so padded lanes stay exactly zero.
        ln1g=_pad2(p["ln1g"].reshape(1, D).astype(f32), 1, d_pad),
        ln1b=_pad2(p["ln1b"].reshape(1, D).astype(f32), 1, d_pad),
        w1=_pad2(p["w1"].astype(f32), d_pad, ff_pad).astype(bf16),
        b1=_pad2(p["b1"].reshape(1, FF).astype(f32), 1, ff_pad),
        w2=_pad2(p["w2"].astype(f32), ff_pad, d_pad).astype(bf16),
        b2=_pad2(p["b2"].reshape(1, D).astype(f32), 1, d_pad),
        ln2g=_pad2(p["ln2g"].reshape(1, D).astype(f32), 1, d_pad),
        ln2b=_pad2(p["ln2b"].reshape(1, D).astype(f32), 1, d_pad),
    )


def prepare_transformer(layers):
    """One-time prep (hoisted out of the forward path)."""
    D = layers[0]["encoder"]["wq"].shape[0]
    d_pad = max(128, _round_up(D, 128))
    prepped = []
    for layer in layers:
        prepped.append(dict(
            params=_prep_encoder_params(layer["encoder"], layer["num_heads"], d_pad),
            num_heads=layer["num_heads"],
            pool_k=layer["pool_k"] if layer["reduce_enabled"] else 1,
        ))
    return prepped, D, d_pad


# ----------------------------------------------------------------------------
# Wrapper: pallas_call plumbing for one (EncoderBlock [+ MaxPool2d]) layer.
# ----------------------------------------------------------------------------
def encoder_layer(x, params, num_heads, *, structure_size, pool_k, d_real,
                  max_rows_per_step=1024):
    B, L, Dp = x.shape
    hd = d_real // num_heads

    # Fold as many batch elements per grid step as possible (fills the MXU M
    # dim and amortizes per-step overhead) but keep >= 2 grid steps so both
    # v7x TensorCores get work under dimension_semantics=("parallel",).
    bt = 1
    for cand in range(1, B + 1):
        if B % cand == 0 and cand * L <= max(max_rows_per_step, L):
            bt = cand
    if B >= 2:
        bt = min(bt, B // 2)
        while B % bt:
            bt -= 1
    grid = (B // bt,)

    if pool_k > 1:
        assert len(structure_size) == 2
        H, W = structure_size
        assert L == H * W and H % pool_k == 0 and W % pool_k == 0
        Hk, Wk = H // pool_k, W // pool_k
        L_out = Hk * Wk
        new_structure = (Hk, Wk)
        scratch_shapes = [pltpu.VMEM((bt * Hk * W, Dp), jnp.float32)]
    else:
        L_out = L
        new_structure = tuple(structure_size)
        scratch_shapes = []

    out_shape = jax.ShapeDtypeStruct((B, L_out, Dp), x.dtype)
    out_spec = pl.BlockSpec((bt, L_out, Dp), lambda b: (b, 0, 0))

    def full(shape):
        return pl.BlockSpec(shape, lambda b, n=len(shape): (0,) * n)

    in_specs = [
        pl.BlockSpec((bt, L, Dp), lambda b: (b, 0, 0)),     # x (lane-dense)
        full(params["wqkv"].shape), full(params["bqkv"].shape),
        full(params["wo"].shape), full(params["bo"].shape),
        full(params["ln1g"].shape), full(params["ln1b"].shape),
        full(params["w1"].shape), full(params["b1"].shape),
        full(params["w2"].shape), full(params["b2"].shape),
        full(params["ln2g"].shape), full(params["ln2b"].shape),
    ]

    kernel = functools.partial(
        _encoder_layer_kernel, num_heads=num_heads, bt=bt, seq_len=L,
        head_dim=hd, d_real=d_real, d_pad=Dp, pool_k=pool_k,
        pool_hw=tuple(structure_size))

    out = pl.pallas_call(
        kernel,
        out_shape=out_shape,
        grid=grid,
        in_specs=in_specs,
        out_specs=out_spec,
        scratch_shapes=scratch_shapes,
        compiler_params=pltpu.CompilerParams(
            dimension_semantics=("parallel",),
            vmem_limit_bytes=64 * 1024 * 1024),
    )(x,
      params["wqkv"], params["bqkv"], params["wo"], params["bo"],
      params["ln1g"], params["ln1b"],
      params["w1"], params["b1"], params["w2"], params["b2"],
      params["ln2g"], params["ln2b"])

    return out, new_structure


# ----------------------------------------------------------------------------
# Transformer: stack of (EncoderBlock + fused ResolutionReduction) layers.
# Activations stay lane-padded (B, L, Dp) between layers; sliced back at the end.
# ----------------------------------------------------------------------------
def transformer_forward(x, prepped_layers, structure_size, *, d_real, d_pad):
    B, L, D = x.shape
    assert D == d_real
    ss = tuple(int(s) for s in structure_size)
    xp = jnp.pad(x, ((0, 0), (0, 0), (0, d_pad - D)))      # lane-dense activations
    for layer in prepped_layers:
        xp, ss = encoder_layer(xp, layer["params"], layer["num_heads"],
                               structure_size=ss, pool_k=layer["pool_k"],
                               d_real=d_real)
    return xp[..., :d_real]


def make_encoder_params(key, D, FF):
    keys = jax.random.split(key, 6)
    s = 0.02
    return {
        "wq": s * jax.random.normal(keys[0], (D, D), jnp.float32),
        "bq": jnp.zeros((1, D), jnp.float32),
        "wk": s * jax.random.normal(keys[1], (D, D), jnp.float32),
        "bk": jnp.zeros((1, D), jnp.float32),
        "wv": s * jax.random.normal(keys[2], (D, D), jnp.float32),
        "bv": jnp.zeros((1, D), jnp.float32),
        "wo": s * jax.random.normal(keys[3], (D, D), jnp.float32),
        "bo": jnp.zeros((1, D), jnp.float32),
        "ln1g": jnp.ones((1, D), jnp.float32),
        "ln1b": jnp.zeros((1, D), jnp.float32),
        "w1": s * jax.random.normal(keys[4], (D, FF), jnp.float32),
        "b1": jnp.zeros((1, FF), jnp.float32),
        "w2": s * jax.random.normal(keys[5], (FF, D), jnp.float32),
        "b2": jnp.zeros((1, D), jnp.float32),
        "ln2g": jnp.ones((1, D), jnp.float32),
        "ln2b": jnp.zeros((1, D), jnp.float32),
    }


if __name__ == "__main__":
    B, D, FF, NUM_HEADS = 2, 32, 64, 4
    H, W = 8, 8                      # structure_size -> seq_len = 64
    key = jax.random.PRNGKey(0)
    kx, k0, k1 = jax.random.split(key, 3)

    x = jax.random.normal(kx, (B, H * W, D), jnp.float32)

    layers = [
        {  # layer 0: encoder + fused 2x2 max-pool resolution reduction
            "encoder": make_encoder_params(k0, D, FF),
            "num_heads": NUM_HEADS,
            "reduce_enabled": True,
            "pool_k": 2,
        },
        {  # layer 1: encoder only (reduction disabled)
            "encoder": make_encoder_params(k1, D, FF),
            "num_heads": NUM_HEADS,
            "reduce_enabled": False,
            "pool_k": 1,
        },
    ]

    # one-time (hoisted) weight prep, then the forward pass
    prepped, d_real, d_pad = prepare_transformer(layers)
    out = transformer_forward(x, prepped, (H, W), d_real=d_real, d_pad=d_pad)
    out = jax.block_until_ready(out)
    assert out.shape == (B, (H // 2) * (W // 2), D)
    assert bool(jnp.all(jnp.isfinite(out)))
    print("KERNEL_OK")
</pallas_src>

<mosaic_0001>
module attributes {stable_mosaic.version = 11 : i64} {
  func.func @_encoder_layer_kernel(%arg0: i32, %arg1: memref<1x64x128xf32, #tpu.memory_space<vmem>>, %arg2: memref<128x384xbf16, #tpu.memory_space<vmem>>, %arg3: memref<1x384xf32, #tpu.memory_space<vmem>>, %arg4: memref<128x128xbf16, #tpu.memory_space<vmem>>, %arg5: memref<1x128xf32, #tpu.memory_space<vmem>>, %arg6: memref<1x128xf32, #tpu.memory_space<vmem>>, %arg7: memref<1x128xf32, #tpu.memory_space<vmem>>, %arg8: memref<128x128xbf16, #tpu.memory_space<vmem>>, %arg9: memref<1x128xf32, #tpu.memory_space<vmem>>, %arg10: memref<128x128xbf16, #tpu.memory_space<vmem>>, %arg11: memref<1x128xf32, #tpu.memory_space<vmem>>, %arg12: memref<1x128xf32, #tpu.memory_space<vmem>>, %arg13: memref<1x128xf32, #tpu.memory_space<vmem>>, %arg14: memref<1x16x128xf32, #tpu.memory_space<vmem>>, %arg15: memref<32x128xf32, #tpu.memory_space<vmem>>) attributes {dimension_semantics = [#tpu.dimension_semantics<parallel>], iteration_bounds = array<i64: 2>, scalar_prefetch = 0 : i64, scratch_operands = 1 : i64, tpu.core_type = #tpu.core_type<tc>, window_params = [{transform_indices = @transform_0, window_bounds = array<i64: 1, 64, 128>}, {pipeline_mode = #tpu.pipeline_mode<synchronous>, transform_indices = @transform_1, window_bounds = array<i64: 128, 384>}, {pipeline_mode = #tpu.pipeline_mode<synchronous>, transform_indices = @transform_2, window_bounds = array<i64: 1, 384>}, {pipeline_mode = #tpu.pipeline_mode<synchronous>, transform_indices = @transform_3, window_bounds = array<i64: 128, 128>}, {pipeline_mode = #tpu.pipeline_mode<synchronous>, transform_indices = @transform_4, window_bounds = array<i64: 1, 128>}, {pipeline_mode = #tpu.pipeline_mode<synchronous>, transform_indices = @transform_5, window_bounds = array<i64: 1, 128>}, {pipeline_mode = #tpu.pipeline_mode<synchronous>, transform_indices = @transform_6, window_bounds = array<i64: 1, 128>}, {pipeline_mode = #tpu.pipeline_mode<synchronous>, transform_indices = @transform_7, window_bounds = array<i64: 128, 128>}, {pipeline_mode = #tpu.pipeline_mode<synchronous>, transform_indices = @transform_8, window_bounds = array<i64: 1, 128>}, {pipeline_mode = #tpu.pipeline_mode<synchronous>, transform_indices = @transform_9, window_bounds = array<i64: 128, 128>}, {pipeline_mode = #tpu.pipeline_mode<synchronous>, transform_indices = @transform_10, window_bounds = array<i64: 1, 128>}, {pipeline_mode = #tpu.pipeline_mode<synchronous>, transform_indices = @transform_11, window_bounds = array<i64: 1, 128>}, {pipeline_mode = #tpu.pipeline_mode<synchronous>, transform_indices = @transform_12, window_bounds = array<i64: 1, 128>}, {transform_indices = @transform_13, window_bounds = array<i64: 1, 16, 128>}]} {
    %c0 = arith.constant 0 : index
    %c0_0 = arith.constant 0 : index
    %c0_1 = arith.constant 0 : index
    %0 = vector.load %arg1[%c0, %c0_0, %c0_1] : memref<1x64x128xf32, #tpu.memory_space<vmem>>, vector<1x64x128xf32>
    %1 = vector.shape_cast %0 : vector<1x64x128xf32> to vector<64x128xf32>
    %2 = arith.truncf %1 : vector<64x128xf32> to vector<64x128xbf16>
    %c0_2 = arith.constant 0 : index
    %c0_3 = arith.constant 0 : index
    %3 = vector.load %arg2[%c0_2, %c0_3] : memref<128x384xbf16, #tpu.memory_space<vmem>>, vector<128x384xbf16>
    %cst = arith.constant dense<0.000000e+00> : vector<64x384xf32>
    %4 = tpu.matmul %2, %3, %cst {dimension_numbers = #tpu.dot_dimension_numbers<[1], [0], [0], [1], [0, 0, 1, 1], [], []>} : vector<64x128xbf16>, vector<128x384xbf16>, vector<64x384xf32> -> vector<64x384xf32>
    %c0_4 = arith.constant 0 : index
    %c0_5 = arith.constant 0 : index
    %5 = vector.load %arg3[%c0_4, %c0_5] : memref<1x384xf32, #tpu.memory_space<vmem>>, vector<1x384xf32>
    %6 = vector.broadcast %5 : vector<1x384xf32> to vector<64x384xf32>
    %7 = arith.addf %4, %6 : vector<64x384xf32>
    %8 = vector.extract_strided_slice %7 {offsets = [0, 0], sizes = [64, 128], strides = [1, 1]} : vector<64x384xf32> to vector<64x128xf32>
    %9 = vector.shape_cast %8 : vector<64x128xf32> to vector<1x64x128xf32>
    %10 = vector.extract_strided_slice %7 {offsets = [0, 128], sizes = [64, 128], strides = [1, 1]} : vector<64x384xf32> to vector<64x128xf32>
    %11 = vector.shape_cast %10 : vector<64x128xf32> to vector<1x64x128xf32>
    %12 = arith.truncf %11 : vector<1x64x128xf32> to vector<1x64x128xbf16>
    %13 = vector.extract_strided_slice %7 {offsets = [0, 256], sizes = [64, 128], strides = [1, 1]} : vector<64x384xf32> to vector<64x128xf32>
    %14 = vector.shape_cast %13 : vector<64x128xf32> to vector<1x64x128xf32>
    %15 = arith.truncf %14 : vector<1x64x128xf32> to vector<1x64x128xbf16>
    %16 = tpu.iota {dimensions = array<i32: 2>} : vector<1x1x128xi32>
    %cst_6 = arith.constant 0.000000e+00 : f32
    %17 = vector.broadcast %cst_6 : f32 to vector<1x64x128xf32>
    %c0_i32 = arith.constant 0 : i32
    %18 = vector.broadcast %c0_i32 : i32 to vector<1x1x128xi32>
    %19 = arith.cmpi sge, %16, %18 : vector<1x1x128xi32>
    %c8_i32 = arith.constant 8 : i32
    %20 = vector.broadcast %c8_i32 : i32 to vector<1x1x128xi32>
    %21 = arith.cmpi slt, %16, %20 : vector<1x1x128xi32>
    %22 = arith.andi %19, %21 : vector<1x1x128xi1>
    %cst_7 = arith.constant 0.000000e+00 : f32
    %23 = vector.shape_cast %22 : vector<1x1x128xi1> to vector<1x1x128xi1>
    %24 = vector.broadcast %23 : vector<1x1x128xi1> to vector<1x64x128xi1>
    %25 = vector.broadcast %cst_7 : f32 to vector<1x64x128xf32>
    %26 = arith.select %24, %9, %25 : vector<1x64x128xi1>, vector<1x64x128xf32>
    %27 = arith.truncf %26 : vector<1x64x128xf32> to vector<1x64x128xbf16>
    "tpu.trace_start"() <{level = 10 : i32, message = "bqd,bkd->bqk"}> : () -> ()
    %cst_8 = arith.constant dense<0.000000e+00> : vector<1x64x64xf32>
    %28 = tpu.matmul %27, %12, %cst_8 {dimension_numbers = #tpu.dot_dimension_numbers<[2], [2], [1], [1], [0, 0, 0, 1, 1, 1], [0], [0]>} : vector<1x64x128xbf16>, vector<1x64x128xbf16>, vector<1x64x64xf32> -> vector<1x64x64xf32>
    "tpu.trace_stop"() : () -> ()
    %cst_9 = arith.constant dense<0xFF800000> : vector<1x64xf32>
    %29 = vector.multi_reduction <maximumf>, %28, %cst_9 [2] : vector<1x64x64xf32> to vector<1x64xf32>
    %30 = vector.shape_cast %29 : vector<1x64xf32> to vector<1x64x1xf32>
    %31 = vector.broadcast %30 : vector<1x64x1xf32> to vector<1x64x64xf32>
    %32 = arith.subf %28, %31 : vector<1x64x64xf32>
    %33 = math.exp %32 : vector<1x64x64xf32>
    %cst_10 = arith.constant dense<0.000000e+00> : vector<1x64xf32>
    %34 = vector.multi_reduction <add>, %33, %cst_10 [2] : vector<1x64x64xf32> to vector<1x64xf32>
    %35 = vector.shape_cast %34 : vector<1x64xf32> to vector<1x64x1xf32>
    %36 = tpu.reciprocal %35 {approx = true} : vector<1x64x1xf32> -> vector<1x64x1xf32>
    %37 = vector.broadcast %36 : vector<1x64x1xf32> to vector<1x64x64xf32>
    %38 = arith.mulf %33, %37 : vector<1x64x64xf32>
    %39 = arith.truncf %38 : vector<1x64x64xf32> to vector<1x64x64xbf16>
    "tpu.trace_start"() <{level = 10 : i32, message = "bqk,bkd->bqd"}> : () -> ()
    %cst_11 = arith.constant dense<0.000000e+00> : vector<1x64x128xf32>
    %40 = tpu.matmul %39, %15, %cst_11 {dimension_numbers = #tpu.dot_dimension_numbers<[2], [1], [1], [2], [0, 0, 0, 1, 1, 2], [0], [0]>} : vector<1x64x64xbf16>, vector<1x64x128xbf16>, vector<1x64x128xf32> -> vector<1x64x128xf32>
    "tpu.trace_stop"() : () -> ()
    %41 = vector.shape_cast %22 : vector<1x1x128xi1> to vector<1x1x128xi1>
    %42 = vector.broadcast %41 : vector<1x1x128xi1> to vector<1x64x128xi1>
    %43 = arith.select %42, %40, %17 : vector<1x64x128xi1>, vector<1x64x128xf32>
    %c8_i32_12 = arith.constant 8 : i32
    %44 = vector.broadcast %c8_i32_12 : i32 to vector<1x1x128xi32>
    %45 = arith.cmpi sge, %16, %44 : vector<1x1x128xi32>
    %c16_i32 = arith.constant 16 : i32
    %46 = vector.broadcast %c16_i32 : i32 to vector<1x1x128xi32>
    %47 = arith.cmpi slt, %16, %46 : vector<1x1x128xi32>
    %48 = arith.andi %45, %47 : vector<1x1x128xi1>
    %cst_13 = arith.constant 0.000000e+00 : f32
    %49 = vector.shape_cast %48 : vector<1x1x128xi1> to vector<1x1x128xi1>
    %50 = vector.broadcast %49 : vector<1x1x128xi1> to vector<1x64x128xi1>
    %51 = vector.broadcast %cst_13 : f32 to vector<1x64x128xf32>
    %52 = arith.select %50, %9, %51 : vector<1x64x128xi1>, vector<1x64x128xf32>
    %53 = arith.truncf %52 : vector<1x64x128xf32> to vector<1x64x128xbf16>
    "tpu.trace_start"() <{level = 10 : i32, message = "bqd,bkd->bqk"}> : () -> ()
    %cst_14 = arith.constant dense<0.000000e+00> : vector<1x64x64xf32>
    %54 = tpu.matmul %53, %12, %cst_14 {dimension_numbers = #tpu.dot_dimension_numbers<[2], [2], [1], [1], [0, 0, 0, 1, 1, 1], [0], [0]>} : vector<1x64x128xbf16>, vector<1x64x128xbf16>, vector<1x64x64xf32> -> vector<1x64x64xf32>
    "tpu.trace_stop"() : () -> ()
    %cst_15 = arith.constant dense<0xFF800000> : vector<1x64xf32>
    %55 = vector.multi_reduction <maximumf>, %54, %cst_15 [2] : vector<1x64x64xf32> to vector<1x64xf32>
    %56 = vector.shape_cast %55 : vector<1x64xf32> to vector<1x64x1xf32>
    %57 = vector.broadcast %56 : vector<1x64x1xf32> to vector<1x64x64xf32>
    %58 = arith.subf %54, %57 : vector<1x64x64xf32>
    %59 = math.exp %58 : vector<1x64x64xf32>
    %cst_16 = arith.constant dense<0.000000e+00> : vector<1x64xf32>
    %60 = vector.multi_reduction <add>, %59, %cst_16 [2] : vector<1x64x64xf32> to vector<1x64xf32>
    %61 = vector.shape_cast %60 : vector<1x64xf32> to vector<1x64x1xf32>
    %62 = tpu.reciprocal %61 {approx = true} : vector<1x64x1xf32> -> vector<1x64x1xf32>
    %63 = vector.broadcast %62 : vector<1x64x1xf32> to vector<1x64x64xf32>
    %64 = arith.mulf %59, %63 : vector<1x64x64xf32>
    %65 = arith.truncf %64 : vector<1x64x64xf32> to vector<1x64x64xbf16>
    "tpu.trace_start"() <{level = 10 : i32, message = "bqk,bkd->bqd"}> : () -> ()
    %cst_17 = arith.constant dense<0.000000e+00> : vector<1x64x128xf32>
    %66 = tpu.matmul %65, %15, %cst_17 {dimension_numbers = #tpu.dot_dimension_numbers<[2], [1], [1], [2], [0, 0, 0, 1, 1, 2], [0], [0]>} : vector<1x64x64xbf16>, vector<1x64x128xbf16>, vector<1x64x128xf32> -> vector<1x64x128xf32>
    "tpu.trace_stop"() : () -> ()
    %67 = vector.shape_cast %48 : vector<1x1x128xi1> to vector<1x1x128xi1>
    %68 = vector.broadcast %67 : vector<1x1x128xi1> to vector<1x64x128xi1>
    %69 = arith.select %68, %66, %43 : vector<1x64x128xi1>, vector<1x64x128xf32>
    %c16_i32_18 = arith.constant 16 : i32
    %70 = vector.broadcast %c16_i32_18 : i32 to vector<1x1x128xi32>
    %71 = arith.cmpi sge, %16, %70 : vector<1x1x128xi32>
    %c24_i32 = arith.constant 24 : i32
    %72 = vector.broadcast %c24_i32 : i32 to vector<1x1x128xi32>
    %73 = arith.cmpi slt, %16, %72 : vector<1x1x128xi32>
    %74 = arith.andi %71, %73 : vector<1x1x128xi1>
    %cst_19 = arith.constant 0.000000e+00 : f32
    %75 = vector.shape_cast %74 : vector<1x1x128xi1> to vector<1x1x128xi1>
    %76 = vector.broadcast %75 : vector<1x1x128xi1> to vector<1x64x128xi1>
    %77 = vector.broadcast %cst_19 : f32 to vector<1x64x128xf32>
    %78 = arith.select %76, %9, %77 : vector<1x64x128xi1>, vector<1x64x128xf32>
    %79 = arith.truncf %78 : vector<1x64x128xf32> to vector<1x64x128xbf16>
    "tpu.trace_start"() <{level = 10 : i32, message = "bqd,bkd->bqk"}> : () -> ()
    %cst_20 = arith.constant dense<0.000000e+00> : vector<1x64x64xf32>
    %80 = tpu.matmul %79, %12, %cst_20 {dimension_numbers = #tpu.dot_dimension_numbers<[2], [2], [1], [1], [0, 0, 0, 1, 1, 1], [0], [0]>} : vector<1x64x128xbf16>, vector<1x64x128xbf16>, vector<1x64x64xf32> -> vector<1x64x64xf32>
    "tpu.trace_stop"() : () -> ()
    %cst_21 = arith.constant dense<0xFF800000> : vector<1x64xf32>
    %81 = vector.multi_reduction <maximumf>, %80, %cst_21 [2] : vector<1x64x64xf32> to vector<1x64xf32>
    %82 = vector.shape_cast %81 : vector<1x64xf32> to vector<1x64x1xf32>
    %83 = vector.broadcast %82 : vector<1x64x1xf32> to vector<1x64x64xf32>
    %84 = arith.subf %80, %83 : vector<1x64x64xf32>
    %85 = math.exp %84 : vector<1x64x64xf32>
    %cst_22 = arith.constant dense<0.000000e+00> : vector<1x64xf32>
    %86 = vector.multi_reduction <add>, %85, %cst_22 [2] : vector<1x64x64xf32> to vector<1x64xf32>
    %87 = vector.shape_cast %86 : vector<1x64xf32> to vector<1x64x1xf32>
    %88 = tpu.reciprocal %87 {approx = true} : vector<1x64x1xf32> -> vector<1x64x1xf32>
    %89 = vector.broadcast %88 : vector<1x64x1xf32> to vector<1x64x64xf32>
    %90 = arith.mulf %85, %89 : vector<1x64x64xf32>
    %91 = arith.truncf %90 : vector<1x64x64xf32> to vector<1x64x64xbf16>
    "tpu.trace_start"() <{level = 10 : i32, message = "bqk,bkd->bqd"}> : () -> ()
    %cst_23 = arith.constant dense<0.000000e+00> : vector<1x64x128xf32>
    %92 = tpu.matmul %91, %15, %cst_23 {dimension_numbers = #tpu.dot_dimension_numbers<[2], [1], [1], [2], [0, 0, 0, 1, 1, 2], [0], [0]>} : vector<1x64x64xbf16>, vector<1x64x128xbf16>, vector<1x64x128xf32> -> vector<1x64x128xf32>
    "tpu.trace_stop"() : () -> ()
    %93 = vector.shape_cast %74 : vector<1x1x128xi1> to vector<1x1x128xi1>
    %94 = vector.broadcast %93 : vector<1x1x128xi1> to vector<1x64x128xi1>
    %95 = arith.select %94, %92, %69 : vector<1x64x128xi1>, vector<1x64x128xf32>
    %c24_i32_24 = arith.constant 24 : i32
    %96 = vector.broadcast %c24_i32_24 : i32 to vector<1x1x128xi32>
    %97 = arith.cmpi sge, %16, %96 : vector<1x1x128xi32>
    %c32_i32 = arith.constant 32 : i32
    %98 = vector.broadcast %c32_i32 : i32 to vector<1x1x128xi32>
    %99 = arith.cmpi slt, %16, %98 : vector<1x1x128xi32>
    %100 = arith.andi %97, %99 : vector<1x1x128xi1>
    %cst_25 = arith.constant 0.000000e+00 : f32
    %101 = vector.shape_cast %100 : vector<1x1x128xi1> to vector<1x1x128xi1>
    %102 = vector.broadcast %101 : vector<1x1x128xi1> to vector<1x64x128xi1>
    %103 = vector.broadcast %cst_25 : f32 to vector<1x64x128xf32>
    %104 = arith.select %102, %9, %103 : vector<1x64x128xi1>, vector<1x64x128xf32>
    %105 = arith.truncf %104 : vector<1x64x128xf32> to vector<1x64x128xbf16>
    "tpu.trace_start"() <{level = 10 : i32, message = "bqd,bkd->bqk"}> : () -> ()
    %cst_26 = arith.constant dense<0.000000e+00> : vector<1x64x64xf32>
    %106 = tpu.matmul %105, %12, %cst_26 {dimension_numbers = #tpu.dot_dimension_numbers<[2], [2], [1], [1], [0, 0, 0, 1, 1, 1], [0], [0]>} : vector<1x64x128xbf16>, vector<1x64x128xbf16>, vector<1x64x64xf32> -> vector<1x64x64xf32>
    "tpu.trace_stop"() : () -> ()
    %cst_27 = arith.constant dense<0xFF800000> : vector<1x64xf32>
    %107 = vector.multi_reduction <maximumf>, %106, %cst_27 [2] : vector<1x64x64xf32> to vector<1x64xf32>
    %108 = vector.shape_cast %107 : vector<1x64xf32> to vector<1x64x1xf32>
    %109 = vector.broadcast %108 : vector<1x64x1xf32> to vector<1x64x64xf32>
    %110 = arith.subf %106, %109 : vector<1x64x64xf32>
    %111 = math.exp %110 : vector<1x64x64xf32>
    %cst_28 = arith.constant dense<0.000000e+00> : vector<1x64xf32>
    %112 = vector.multi_reduction <add>, %111, %cst_28 [2] : vector<1x64x64xf32> to vector<1x64xf32>
    %113 = vector.shape_cast %112 : vector<1x64xf32> to vector<1x64x1xf32>
    %114 = tpu.reciprocal %113 {approx = true} : vector<1x64x1xf32> -> vector<1x64x1xf32>
    %115 = vector.broadcast %114 : vector<1x64x1xf32> to vector<1x64x64xf32>
    %116 = arith.mulf %111, %115 : vector<1x64x64xf32>
    %117 = arith.truncf %116 : vector<1x64x64xf32> to vector<1x64x64xbf16>
    "tpu.trace_start"() <{level = 10 : i32, message = "bqk,bkd->bqd"}> : () -> ()
    %cst_29 = arith.constant dense<0.000000e+00> : vector<1x64x128xf32>
    %118 = tpu.matmul %117, %15, %cst_29 {dimension_numbers = #tpu.dot_dimension_numbers<[2], [1], [1], [2], [0, 0, 0, 1, 1, 2], [0], [0]>} : vector<1x64x64xbf16>, vector<1x64x128xbf16>, vector<1x64x128xf32> -> vector<1x64x128xf32>
    "tpu.trace_stop"() : () -> ()
    %119 = vector.shape_cast %100 : vector<1x1x128xi1> to vector<1x1x128xi1>
    %120 = vector.broadcast %119 : vector<1x1x128xi1> to vector<1x64x128xi1>
    %121 = arith.select %120, %118, %95 : vector<1x64x128xi1>, vector<1x64x128xf32>
    %122 = vector.shape_cast %121 : vector<1x64x128xf32> to vector<64x128xf32>
    %123 = arith.truncf %122 : vector<64x128xf32> to vector<64x128xbf16>
    %c0_30 = arith.constant 0 : index
    %c0_31 = arith.constant 0 : index
    %124 = vector.load %arg4[%c0_30, %c0_31] : memref<128x128xbf16, #tpu.memory_space<vmem>>, vector<128x128xbf16>
    %cst_32 = arith.constant dense<0.000000e+00> : vector<64x128xf32>
    %125 = tpu.matmul %123, %124, %cst_32 {dimension_numbers = #tpu.dot_dimension_numbers<[1], [0], [0], [1], [0, 0, 1, 1], [], []>} : vector<64x128xbf16>, vector<128x128xbf16>, vector<64x128xf32> -> vector<64x128xf32>
    %c0_33 = arith.constant 0 : index
    %c0_34 = arith.constant 0 : index
    %126 = vector.load %arg5[%c0_33, %c0_34] : memref<1x128xf32, #tpu.memory_space<vmem>>, vector<1x128xf32>
    %127 = vector.broadcast %126 : vector<1x128xf32> to vector<64x128xf32>
    %128 = arith.addf %125, %127 : vector<64x128xf32>
    %129 = arith.addf %1, %128 : vector<64x128xf32>
    %cst_35 = arith.constant dense<0.000000e+00> : vector<64xf32>
    %130 = vector.multi_reduction <add>, %129, %cst_35 [1] : vector<64x128xf32> to vector<64xf32>
    %131 = vector.shape_cast %130 : vector<64xf32> to vector<64x1xf32>
    %cst_36 = arith.constant 3.125000e-02 : f32
    %132 = vector.broadcast %cst_36 : f32 to vector<64x1xf32>
    %133 = arith.mulf %131, %132 : vector<64x1xf32>
    %134 = arith.mulf %129, %129 : vector<64x128xf32>
    %cst_37 = arith.constant dense<0.000000e+00> : vector<64xf32>
    %135 = vector.multi_reduction <add>, %134, %cst_37 [1] : vector<64x128xf32> to vector<64xf32>
    %136 = vector.shape_cast %135 : vector<64xf32> to vector<64x1xf32>
    %cst_38 = arith.constant 3.125000e-02 : f32
    %137 = vector.broadcast %cst_38 : f32 to vector<64x1xf32>
    %138 = arith.mulf %136, %137 : vector<64x1xf32>
    %139 = arith.mulf %133, %133 : vector<64x1xf32>
    %140 = arith.subf %138, %139 : vector<64x1xf32>
    %141 = vector.broadcast %133 : vector<64x1xf32> to vector<64x128xf32>
    %142 = arith.subf %129, %141 : vector<64x128xf32>
    %cst_39 = arith.constant 9.99999974E-6 : f32
    %143 = vector.broadcast %cst_39 : f32 to vector<64x1xf32>
    %144 = arith.addf %140, %143 : vector<64x1xf32>
    %145 = math.rsqrt %144 : vector<64x1xf32>
    %146 = vector.broadcast %145 : vector<64x1xf32> to vector<64x128xf32>
    %147 = arith.mulf %142, %146 : vector<64x128xf32>
    %c0_40 = arith.constant 0 : index
    %c0_41 = arith.constant 0 : index
    %148 = vector.load %arg6[%c0_40, %c0_41] : memref<1x128xf32, #tpu.memory_space<vmem>>, vector<1x128xf32>
    %149 = vector.broadcast %148 : vector<1x128xf32> to vector<64x128xf32>
    %150 = arith.mulf %147, %149 : vector<64x128xf32>
    %c0_42 = arith.constant 0 : index
    %c0_43 = arith.constant 0 : index
    %151 = vector.load %arg7[%c0_42, %c0_43] : memref<1x128xf32, #tpu.memory_space<vmem>>, vector<1x128xf32>
    %152 = vector.broadcast %151 : vector<1x128xf32> to vector<64x128xf32>
    %153 = arith.addf %150, %152 : vector<64x128xf32>
    %154 = arith.truncf %153 : vector<64x128xf32> to vector<64x128xbf16>
    %c0_44 = arith.constant 0 : index
    %c0_45 = arith.constant 0 : index
    %155 = vector.load %arg8[%c0_44, %c0_45] : memref<128x128xbf16, #tpu.memory_space<vmem>>, vector<128x128xbf16>
    %cst_46 = arith.constant dense<0.000000e+00> : vector<64x128xf32>
    %156 = tpu.matmul %154, %155, %cst_46 {dimension_numbers = #tpu.dot_dimension_numbers<[1], [0], [0], [1], [0, 0, 1, 1], [], []>} : vector<64x128xbf16>, vector<128x128xbf16>, vector<64x128xf32> -> vector<64x128xf32>
    %c0_47 = arith.constant 0 : index
    %c0_48 = arith.constant 0 : index
    %157 = vector.load %arg9[%c0_47, %c0_48] : memref<1x128xf32, #tpu.memory_space<vmem>>, vector<1x128xf32>
    %158 = vector.broadcast %157 : vector<1x128xf32> to vector<64x128xf32>
    %159 = arith.addf %156, %158 : vector<64x128xf32>
    %cst_49 = arith.constant 0.000000e+00 : f32
    %160 = vector.broadcast %cst_49 : f32 to vector<64x128xf32>
    %161 = arith.maximumf %159, %160 : vector<64x128xf32>
    %162 = arith.truncf %161 : vector<64x128xf32> to vector<64x128xbf16>
    %c0_50 = arith.constant 0 : index
    %c0_51 = arith.constant 0 : index
    %163 = vector.load %arg10[%c0_50, %c0_51] : memref<128x128xbf16, #tpu.memory_space<vmem>>, vector<128x128xbf16>
    %cst_52 = arith.constant dense<0.000000e+00> : vector<64x128xf32>
    %164 = tpu.matmul %162, %163, %cst_52 {dimension_numbers = #tpu.dot_dimension_numbers<[1], [0], [0], [1], [0, 0, 1, 1], [], []>} : vector<64x128xbf16>, vector<128x128xbf16>, vector<64x128xf32> -> vector<64x128xf32>
    %c0_53 = arith.constant 0 : index
    %c0_54 = arith.constant 0 : index
    %165 = vector.load %arg11[%c0_53, %c0_54] : memref<1x128xf32, #tpu.memory_space<vmem>>, vector<1x128xf32>
    %166 = vector.broadcast %165 : vector<1x128xf32> to vector<64x128xf32>
    %167 = arith.addf %164, %166 : vector<64x128xf32>
    %168 = arith.addf %153, %167 : vector<64x128xf32>
    %cst_55 = arith.constant dense<0.000000e+00> : vector<64xf32>
    %169 = vector.multi_reduction <add>, %168, %cst_55 [1] : vector<64x128xf32> to vector<64xf32>
    %170 = vector.shape_cast %169 : vector<64xf32> to vector<64x1xf32>
    %cst_56 = arith.constant 3.125000e-02 : f32
    %171 = vector.broadcast %cst_56 : f32 to vector<64x1xf32>
    %172 = arith.mulf %170, %171 : vector<64x1xf32>
    %173 = arith.mulf %168, %168 : vector<64x128xf32>
    %cst_57 = arith.constant dense<0.000000e+00> : vector<64xf32>
    %174 = vector.multi_reduction <add>, %173, %cst_57 [1] : vector<64x128xf32> to vector<64xf32>
    %175 = vector.shape_cast %174 : vector<64xf32> to vector<64x1xf32>
    %cst_58 = arith.constant 3.125000e-02 : f32
    %176 = vector.broadcast %cst_58 : f32 to vector<64x1xf32>
    %177 = arith.mulf %175, %176 : vector<64x1xf32>
    %178 = arith.mulf %172, %172 : vector<64x1xf32>
    %179 = arith.subf %177, %178 : vector<64x1xf32>
    %180 = vector.broadcast %172 : vector<64x1xf32> to vector<64x128xf32>
    %181 = arith.subf %168, %180 : vector<64x128xf32>
    %cst_59 = arith.constant 9.99999974E-6 : f32
    %182 = vector.broadcast %cst_59 : f32 to vector<64x1xf32>
    %183 = arith.addf %179, %182 : vector<64x1xf32>
    %184 = math.rsqrt %183 : vector<64x1xf32>
    %185 = vector.broadcast %184 : vector<64x1xf32> to vector<64x128xf32>
    %186 = arith.mulf %181, %185 : vector<64x128xf32>
    %c0_60 = arith.constant 0 : index
    %c0_61 = arith.constant 0 : index
    %187 = vector.load %arg12[%c0_60, %c0_61] : memref<1x128xf32, #tpu.memory_space<vmem>>, vector<1x128xf32>
    %188 = vector.broadcast %187 : vector<1x128xf32> to vector<64x128xf32>
    %189 = arith.mulf %186, %188 : vector<64x128xf32>
    %c0_62 = arith.constant 0 : index
    %c0_63 = arith.constant 0 : index
    %190 = vector.load %arg13[%c0_62, %c0_63] : memref<1x128xf32, #tpu.memory_space<vmem>>, vector<1x128xf32>
    %191 = vector.broadcast %190 : vector<1x128xf32> to vector<64x128xf32>
    %192 = arith.addf %189, %191 : vector<64x128xf32>
    %193 = vector.shape_cast %192 : vector<64x128xf32> to vector<4x2x8x128xf32>
    %194 = vector.extract_strided_slice %193 {offsets = [0, 0, 0, 0], sizes = [4, 1, 8, 128], strides = [1, 1, 1, 1]} : vector<4x2x8x128xf32> to vector<4x1x8x128xf32>
    %195 = vector.shape_cast %194 : vector<4x1x8x128xf32> to vector<4x8x128xf32>
    %196 = vector.extract_strided_slice %193 {offsets = [0, 1, 0, 0], sizes = [4, 1, 8, 128], strides = [1, 1, 1, 1]} : vector<4x2x8x128xf32> to vector<4x1x8x128xf32>
    %197 = vector.shape_cast %196 : vector<4x1x8x128xf32> to vector<4x8x128xf32>
    %198 = arith.maximumf %195, %197 : vector<4x8x128xf32>
    %199 = vector.shape_cast %198 : vector<4x8x128xf32> to vector<32x128xf32>
    %c0_64 = arith.constant 0 : index
    %c0_65 = arith.constant 0 : index
    %200 = vector.load %arg15[%c0_64, %c0_65] : memref<32x128xf32, #tpu.memory_space<vmem>>, vector<32x128xf32>
    tpu.vector_store %arg15[%c0_64, %c0_65], %199 {strides = array<i32>} : memref<32x128xf32, #tpu.memory_space<vmem>>, vector<32x128xf32>,
    %c0_66 = arith.constant 0 : index
    %c0_67 = arith.constant 0 : index
    %201 = tpu.strided_load %arg15[%c0_66, %c0_67] {strides = array<i32: 2, 1>} : memref<32x128xf32, #tpu.memory_space<vmem>>, vector<16x128xf32>
    %c1 = arith.constant 1 : index
    %c0_68 = arith.constant 0 : index
    %202 = tpu.strided_load %arg15[%c1, %c0_68] {strides = array<i32: 2, 1>} : memref<32x128xf32, #tpu.memory_space<vmem>>, vector<16x128xf32>
    %203 = arith.maximumf %201, %202 : vector<16x128xf32>
    %204 = vector.shape_cast %203 : vector<16x128xf32> to vector<1x16x128xf32>
    %c0_69 = arith.constant 0 : index
    %c0_70 = arith.constant 0 : index
    %c0_71 = arith.constant 0 : index
    %205 = vector.load %arg14[%c0_69, %c0_70, %c0_71] : memref<1x16x128xf32, #tpu.memory_space<vmem>>, vector<1x16x128xf32>
    tpu.vector_store %arg14[%c0_69, %c0_70, %c0_71], %204 {strides = array<i32>} : memref<1x16x128xf32, #tpu.memory_space<vmem>>, vector<1x16x128xf32>,
    return
  }
  func.func @transform_0(%arg0: i32) -> (i32, i32, i32) {
    %c0_i32 = arith.constant 0 : i32
    %c0_i32_0 = arith.constant 0 : i32
    %c0_i32_1 = arith.constant 0 : i32
    return %arg0, %c0_i32, %c0_i32_0 : i32, i32, i32
  }
  func.func @transform_1(%arg0: i32) -> (i32, i32) {
    %c0_i32 = arith.constant 0 : i32
    %c0_i32_0 = arith.constant 0 : i32
    %c0_i32_1 = arith.constant 0 : i32
    return %c0_i32, %c0_i32_0 : i32, i32
  }
  func.func @transform_2(%arg0: i32) -> (i32, i32) {
    %c0_i32 = arith.constant 0 : i32
    %c0_i32_0 = arith.constant 0 : i32
    %c0_i32_1 = arith.constant 0 : i32
    return %c0_i32, %c0_i32_0 : i32, i32
  }
  func.func @transform_3(%arg0: i32) -> (i32, i32) {
    %c0_i32 = arith.constant 0 : i32
    %c0_i32_0 = arith.constant 0 : i32
    %c0_i32_1 = arith.constant 0 : i32
    return %c0_i32, %c0_i32_0 : i32, i32
  }
  func.func @transform_4(%arg0: i32) -> (i32, i32) {
    %c0_i32 = arith.constant 0 : i32
    %c0_i32_0 = arith.constant 0 : i32
    %c0_i32_1 = arith.constant 0 : i32
    return %c0_i32, %c0_i32_0 : i32, i32
  }
  func.func @transform_5(%arg0: i32) -> (i32, i32) {
    %c0_i32 = arith.constant 0 : i32
    %c0_i32_0 = arith.constant 0 : i32
    %c0_i32_1 = arith.constant 0 : i32
    return %c0_i32, %c0_i32_0 : i32, i32
  }
  func.func @transform_6(%arg0: i32) -> (i32, i32) {
    %c0_i32 = arith.constant 0 : i32
    %c0_i32_0 = arith.constant 0 : i32
    %c0_i32_1 = arith.constant 0 : i32
    return %c0_i32, %c0_i32_0 : i32, i32
  }
  func.func @transform_7(%arg0: i32) -> (i32, i32) {
    %c0_i32 = arith.constant 0 : i32
    %c0_i32_0 = arith.constant 0 : i32
    %c0_i32_1 = arith.constant 0 : i32
    return %c0_i32, %c0_i32_0 : i32, i32
  }
  func.func @transform_8(%arg0: i32) -> (i32, i32) {
    %c0_i32 = arith.constant 0 : i32
    %c0_i32_0 = arith.constant 0 : i32
    %c0_i32_1 = arith.constant 0 : i32
    return %c0_i32, %c0_i32_0 : i32, i32
  }
  func.func @transform_9(%arg0: i32) -> (i32, i32) {
    %c0_i32 = arith.constant 0 : i32
    %c0_i32_0 = arith.constant 0 : i32
    %c0_i32_1 = arith.constant 0 : i32
    return %c0_i32, %c0_i32_0 : i32, i32
  }
  func.func @transform_10(%arg0: i32) -> (i32, i32) {
    %c0_i32 = arith.constant 0 : i32
    %c0_i32_0 = arith.constant 0 : i32
    %c0_i32_1 = arith.constant 0 : i32
    return %c0_i32, %c0_i32_0 : i32, i32
  }
  func.func @transform_11(%arg0: i32) -> (i32, i32) {
    %c0_i32 = arith.constant 0 : i32
    %c0_i32_0 = arith.constant 0 : i32
    %c0_i32_1 = arith.constant 0 : i32
    return %c0_i32, %c0_i32_0 : i32, i32
  }
  func.func @transform_12(%arg0: i32) -> (i32, i32) {
    %c0_i32 = arith.constant 0 : i32
    %c0_i32_0 = arith.constant 0 : i32
    %c0_i32_1 = arith.constant 0 : i32
    return %c0_i32, %c0_i32_0 : i32, i32
  }
  func.func @transform_13(%arg0: i32) -> (i32, i32, i32) {
    %c0_i32 = arith.constant 0 : i32
    %c0_i32_0 = arith.constant 0 : i32
    %c0_i32_1 = arith.constant 0 : i32
    return %arg0, %c0_i32, %c0_i32_0 : i32, i32, i32
  }
}

</mosaic_0001>

<bundles_post_ra>
// kernel: tpu_custom_call.1
= control target key start
LH: loop header
LB: loop body
LE: loop exit
PB: predicated region body
PF: predicated region fallthrough
CT: control target
= control target key end

     0   :  { %s4785_s0 = inlined_call_operand.hbm [shape: f32[2,64,128], index: 0, kind: input, shape index: {}]   ;;  %s4786_s1 = inlined_call_operand.hbm [shape: bf16[128,384], index: 1, kind: input, shape index: {}]   ;;  %s4787_s2 = inlined_call_operand.hbm [shape: f32[1,384], index: 2, kind: input, shape index: {}]   ;;  %s4788_s3 = inlined_call_operand.hbm [shape: bf16[128,128], index: 3, kind: input, shape index: {}]   ;;  %s4789_s4 = inlined_call_operand.vmem [shape: f32[1,128], index: 4, kind: input, shape index: {}]   ;;  %s4790_s5 = inlined_call_operand.vmem [shape: f32[1,128], index: 5, kind: input, shape index: {}]   ;;  %s4791_s6 = inlined_call_operand.vmem [shape: f32[1,128], index: 6, kind: input, shape index: {}]   ;;  %s4792_s7 = inlined_call_operand.hbm [shape: bf16[128,128], index: 7, kind: input, shape index: {}]   ;;  %s4793_s8 = inlined_call_operand.vmem [shape: f32[1,128], index: 8, kind: input, shape index: {}]   ;;  %s4794_s9 = inlined_call_operand.hbm [shape: bf16[128,128], index: 9, kind: input, shape index: {}]   ;;  %s4795_s10 = inlined_call_operand.vmem [shape: f32[1,128], index: 10, kind: input, shape index: {}]   ;;  %s4796_s11 = inlined_call_operand.vmem [shape: f32[1,128], index: 11, kind: input, shape index: {}]   ;;  %s4797_s12 = inlined_call_operand.vmem [shape: f32[1,128], index: 12, kind: input, shape index: {}]   ;;  %s4798_s13 = inlined_call_operand.hbm [shape: f32[2,16,128], index: 13, kind: output, shape index: {}]  }
   0x1   :  { %4800 = sst [smem:[#allocation20_spill]] %s4786_s1 }
   0x2   :  { %4801 = sst [smem:[#allocation21_spill]] %s4787_s2 }
   0x3   :  { %4802 = sst [smem:[#allocation22_spill]] %s4788_s3 }
   0x4   :  { %4803 = sst [smem:[#allocation23_spill]] %s4792_s7 }
   0x5   :  { %4804 = sst [smem:[#allocation24_spill]] %s4794_s9 }
   0x6   :  { %4805 = sst [smem:[#allocation25_spill]] %s4796_s11 }
   0x7   :  { %4806 = sst [smem:[#allocation26_spill]] %s4797_s12 }
   0x8   :  { %4807 = sst [smem:[#allocation27_spill]] %s4798_s13 }
   0x9   :  { %18 = vsyncpa [#allocation4], 0 }
   0xa   :  { %20 = vsyncpa [#allocation4 + $0x1], 0 }
   0xb   :  { %21 = vsyncpa [#allocation7], 0 }
   0xc   :  { %22 = vsyncpa [#allocation10], 0 }
   0xd   :  { %23 = vsyncpa [#allocation13], 0 }
   0xe   :  { %24 = vsyncpa [#allocation5], 0 }
   0xf   :  { %26 = vsyncpa [#allocation5 + $0x1], 0  ;;  %s3637_s25 = smov 0   ;;  %s3639_s26 = smov 0  }
  0x10   :  { %s3641_s27 = smov 0   ;;  %s3643_s28 = smov 0  }
  0x11 LB: > { %s4808_s1 = sld [smem:[#allocation20_spill]]  ;;  %s3661_s15 = sadd.s32 4294967295, %s3552_s28   ;;  %s3552_s28 = sphi %s3643_s28, %s4833_s28   ;;  %s3548_s27 = sphi %s3641_s27, %s4832_s27   ;;  %s3544_s26 = sphi %s3639_s26, %s4831_s26   ;;  %s3540_s25 = sphi %s3637_s25, %s4830_s25  }
  0x12   : > { %p2717_p0 = scmp.ge.s32.totalorder %s3552_s28, 1  ;;  %p53_p1 = scmp.eq.s32.totalorder %s3661_s15, 0 }
  0x13   : > { %p341_p2 = scmp.lt.s32.totalorder %s3552_s28, 3  ;;  %s3554_s17 = smov [#allocation6]  }
  0x14   : > { %s354_s18 = sshll.u32 %s3554_s17, 4  ;;  %s4810_s3 = sld [smem:[#allocation22_spill]]  ;;  %s355_s18 = int_to_ptr.vmem [resolvable:$true] %s354_s18 }
  0x15   : > { %p3666_p3 = pnand %p2717_p0, %p341_p2  ;;  %s3555_s23 = smov [#allocation9]  }
  0x16   : > { %s380_s24 = sshll.u32 %s3555_s23, 4  ;;  %s3556_s29 = smov 192   ;;  %s381_s24 = int_to_ptr.vmem [resolvable:$true] %s380_s24 }
  0x17   : > { %s352_s14 = sshll.u32 %s4808_s1, 4  ;;  %p3038_p4 = pneg %p3666_p3  ;;  %s353_s14 = int_to_ptr.hbm [resolvable:$true] %s352_s14 }
  0x18   : > { %s3557_s30 = smov 12   ;;  %s3558_s17 = smov 64  }
  0x19   : > { %p3678_p6 = pnand %p3038_p4, %p53_p1  ;;  %s3559_s19 = smov 4  }
  0x1a   : > { %s378_s21 = sshll.u32 %s4810_s3, 4  ;;  %s4812_s2 = sld [smem:[#allocation21_spill]]  ;;  %s379_s21 = int_to_ptr.hbm [resolvable:$true] %s378_s21 }
  0x1b   : > { %3041 = dma.hbm_to_vmem [thread:$0]  (!%p3678_p6), %s353_s14, 3072, %s355_s18, [#allocation7], %s3556_s29, %s3556_s29, %s3557_s30  }
  0x1c   : > { %3047 = dma.hbm_to_vmem [thread:$0]  (!%p3678_p6), %s379_s21, 1024, %s381_s24, [#allocation10], %s3558_s17, %s3558_s17, %s3559_s19  }
  0x1d   : > { %s3560_s13 = smov [#allocation8]   ;;  %s4813_s7 = sld [smem:[#allocation23_spill]] }
  0x1e   : > { %s369_s12 = sshll.u32 %s3560_s13, 4  ;;  %s3561_s1 = smov [#allocation11]   ;;  %s370_s12 = int_to_ptr.vmem [resolvable:$true] %s369_s12 }
  0x1f   : > { %s403_s18 = sshll.u32 %s3561_s1, 4  ;;  %s4814_s9 = sld [smem:[#allocation24_spill]]  ;;  %s404_s18 = int_to_ptr.vmem [resolvable:$true] %s403_s18 }
  0x20   : > { %s367_s3 = sshll.u32 %s4812_s2, 4  ;;  %s3703_s29 = sadd.s32 1, %s3552_s28   ;;  %s368_s3 = int_to_ptr.hbm [resolvable:$true] %s367_s3 }
  0x21   : > { %3044 = dma.hbm_to_vmem [thread:$0]  (!%p3678_p6), %s368_s3, 48, %s370_s12, [#allocation7]  }
  0x22   : > { %s3562_s3 = smov [#allocation12]   ;;  %s2716_s12 = sadd.s32 4294967294, %s3552_s28  }
  0x23   : > { %s401_s14 = sshll.u32 %s4813_s7, 4  ;;  %s420_s11 = sshll.u32 %s3562_s3, 4  ;;  %s402_s14 = int_to_ptr.hbm [resolvable:$true] %s401_s14  ;;  %s421_s11 = int_to_ptr.vmem [resolvable:$true] %s420_s11 }
  0x24   : > { %3050 = dma.hbm_to_vmem [thread:$0]  (!%p3678_p6), %s402_s14, 1024, %s404_s18, [#allocation10], %s3558_s17, %s3558_s17, %s3559_s19  }
  0x25   : > { %s418_s13 = sshll.u32 %s4814_s9, 4  ;;  %s39_s30 = sadd.s32 1, %s3548_s27  ;;  %s419_s13 = int_to_ptr.hbm [resolvable:$true] %s418_s13 }
  0x26   : > { %3053 = dma.hbm_to_vmem [thread:$0]  (!%p3678_p6), %s419_s13, 1024, %s421_s11, [#allocation13], %s3558_s17, %s3558_s17, %s3559_s19  }
  0x27   : > { %s36_s20 = ssub.s32 %s3552_s28, %s3703_s29  ;;  %p46_p7 = scmp.ne.s32.totalorder %s3548_s27, %s3544_s26 }
  0x28   : > { %p37_p8 = scmp.eq.s32.totalorder %s36_s20, 0  ;;  %p47_p9 = scmp.eq.s32.totalorder %s3552_s28, 0 }
  0x29   : > { %p52_p10 = scmp.ne.s32.totalorder %s3544_s26, %s3540_s25  ;;  %p328_p11 = scmp.eq.s32.totalorder %s3661_s15, 1 }
  0x2a   : > { %s3715_s23 = scalar_select %p37_p8, %s3548_s27, %s39_s30  }
  0x2b   : > { %p3717_p12 = por %p47_p9, %p46_p7  ;;  %p3723_p13 = por %p53_p1, %p52_p10 }
  0x2c   : > { %p3727_p0 = por %p328_p11, %p46_p7  ;;  %p334_p2 = scmp.eq.s32.totalorder %s2716_s12, 1 }
  0x2d   : > { %p3067_p4 = scmp.lt.s32.totalorder %s3552_s28, 2  ;;  %s443_s19 = sand.u32 1, %s3548_s27  }
  0x2e   : > { %p3733_p6 = por %p334_p2, %p52_p10  ;;  %s2724_s18 = sshll.u32 %s443_s19, 6 }
  0x2f   : > { %s2948_s21 = sshll.u32 %s3552_s28, 6  ;;  %s447_s30 = scalar_lea.vmem [#allocation3], %s2724_s18 }
  0x30   : > { %s452_s3 = scalar_lea.hbm %s4785_s0, %s2948_s21  ;;  %s455_s20 = sshll.u32 %s447_s30, 4  ;;  %s456_s20 = int_to_ptr.vmem [resolvable:$true] %s455_s20 }
  0x31   : > { %s453_s11 = sshll.u32 %s452_s3, 4  ;;  %p3743_p7 = pnand %p3067_p4, %p3717_p12  ;;  %s454_s11 = int_to_ptr.hbm [resolvable:$true] %s453_s11 }
  0x32   : > { %s444_s2 = scalar_lea.sflag [#allocation4], %s443_s19  ;;  %s3444_s7 = sshra.s32 %s454_s11, 4  ;;  %s3445_s7 = int_to_ptr.hbm [resolvable:$true] %s3444_s7 }
  0x33   : > { %s3446_s9 = scalar_lea.hbm %s3445_s7, 64  ;;  %p3448_p9 = pneg %p3743_p7 }
  0x34   : > { %p3447_p8 = scmp.ne.s32.totalorder %s3445_s7, %s3446_s9  ;;  %s3451_s24 = scalar_lea.hbm %s4785_s0, 128 }
  0x35   : > { %p3452_p12 = scmp.lt.s32.totalorder %s3445_s7, %s4785_s0  ;;  %p3453_p2 = scmp.lt.s32.totalorder %s3451_s24, %s3446_s9 }
  0x36   : > { %p3449_p10 = pnand %p3448_p9, %p3447_p8 }
  0x37   : > { %p3454_p4 = por %p3453_p2, %p3452_p12 }
  0x38   : > { %p3450_p11 = pneg %p3449_p10 }
  0x3a   : > { %p3455_p5 = pnand %p3454_p4, %p3450_p11 }
  0x3c   : > { %3458 = shalt.err (!%p3455_p5)
}
  0x3d   : > { %s3563_s19 = smov 128   ;;  %s3564_s3 = smov 8  }
  0x3e   : > { %3057 = dma.hbm_to_vmem [thread:$0]  (!%p3743_p7), %s454_s11, 1024, %s456_s20, %s444_s2, %s3563_s19, %s3563_s19, %s3564_s3  }
  0x3f   : > { %467 = sbr.rel (%p3666_p3) target bundleno = 1784 (0x6f8), region = 72  ;;  %s3760_s30 = sand.u32 (!%p3666_p3), 1, %s3544_s26  }
  0x40   : > { %s2728_s21 = sshll.u32 (!%p3666_p3), %s3760_s30, 6  ;;  %s470_s7 = scalar_lea.sflag (!%p3666_p3), [#allocation4], %s3760_s30 }
  0x41   : > { %s3764_s9 = scalar_lea.vmem (!%p3666_p3), [#allocation3], %s2728_s21 }
  0x44   : > { %3519 = dma.done.wait (%p3723_p13), %s470_s7, 1024  }
  0x45   : > { %3521 = vsyncadd (%p3723_p13), %s470_s7, 4294966272 }
  0x46   : > { %3523 = dma.done.wait (%p53_p1), [#allocation7], 3120  }
  0x47   : > { %3525 = vsyncadd (%p53_p1), [#allocation7], 4294964176 }
  0x48   : > { %3527 = dma.done.wait (%p53_p1), [#allocation10], 2048  }
  0x49   : > { %3529 = vsyncadd (%p53_p1), [#allocation10], 4294965248 }
  0x4a   : > { %3531 = dma.done.wait (%p53_p1), [#allocation13], 1024  }
  0x4b   : > { %3533 = vsyncadd (%p53_p1), [#allocation13], 4294966272  ;;  %v2970_v0 = vld [vmem:[#allocation6 + $0xac] sm:$0xf]  ;;  %v2823_v1 = vld [vmem:[#allocation6 + $0xb4] sm:$0xf0]  ;;  %v826_v61 = vlaneseq }
  0x4c   : > { %v2967_v2 = vld [vmem:[#allocation6 + $0x94] sm:$0xf]  ;;  %v2826_v3 = vor.u32 %v2970_v0, %v2823_v1  ;;  %v2811_v4 = vld [vmem:[#allocation6 + $0x9c] sm:$0xf0]  ;;  %v2964_v6 = vld [vmem:[#allocation6 + $0x7c] sm:$0xf] }
  0x4d   : > { %v2814_v5 = vor.u32 %v2967_v2, %v2811_v4  ;;  %v2799_v7 = vld [vmem:[#allocation6 + $0x84] sm:$0xf0]  ;;  %v2971_v9 = vld [vmem:[#allocation6 + $0xb0] sm:$0xf0]  ;;  %v2961_v11 = vld [vmem:[#allocation6 + $0x64] sm:$0xf] }
  0x4e   : > { %3006 = vmatpush.bf16.msra.mxu3 %v2826_v3  ;;  %752 = vmatpush.bf16.msra.mxu1 %v2826_v3  ;;  %v2821_v8 = vld [vmem:[#allocation6 + $0xa8] sm:$0xf]  ;;  %v2802_v10 = vor.u32 %v2964_v6, %v2799_v7  ;;  %v2787_v12 = vld [vmem:[#allocation6 + $0x6c] sm:$0xf0]  ;;  %v2958_v15 = vld [vmem:[#allocation6 + $0x4c] sm:$0xf] }
  0x4f   : > { %v2822_v13 = vor.u32 %v2971_v9, %v2821_v8  ;;  %v2790_v14 = vor.u32 %v2961_v11, %v2787_v12  ;;  %v2775_v16 = vld [vmem:[#allocation6 + $0x54] sm:$0xf0]  ;;  %v2955_v18 = vld [vmem:[#allocation6 + $0x34] sm:$0xf]  ;;  %v2763_v19 = vld [vmem:[#allocation6 + $0x3c] sm:$0xf0] }
  0x50   : > { %v2778_v17 = vor.u32 %v2958_v15, %v2775_v16  ;;  %v2809_v20 = vld [vmem:[#allocation6 + $0x90] sm:$0xf]  ;;  %v2968_v21 = vld [vmem:[#allocation6 + $0x98] sm:$0xf0]  ;;  %v2797_v23 = vld [vmem:[#allocation6 + $0x78] sm:$0xf]  ;;  %v2766_v25 = vor.u32 %v2955_v18, %v2763_v19 }
  0x51   : > { %723 = vmatpush.bf16.msra.mxu0 %v2822_v13  ;;  %2998 = vmatpush.bf16.msra.mxu2 %v2822_v13  ;;  %v2810_v22 = vor.u32 %v2968_v21, %v2809_v20  ;;  %v2965_v24 = vld [vmem:[#allocation6 + $0x80] sm:$0xf0]  ;;  %v2952_v26 = vld [vmem:[#allocation6 + $0x1c] sm:$0xf]  ;;  %v2751_v27 = vld [vmem:[#allocation6 + $0x24] sm:$0xf0] }
  0x52   : > { %3007 = vmatpush.bf16.msra.mxu3 %v2814_v5  ;;  %753 = vmatpush.bf16.msra.mxu1 %v2814_v5  ;;  %v2798_v28 = vor.u32 %v2965_v24, %v2797_v23  ;;  %v2785_v29 = vld [vmem:[#allocation6 + $0x60] sm:$0xf]  ;;  %v2962_v30 = vld [vmem:[#allocation6 + $0x68] sm:$0xf0]  ;;  %v2754_v31 = vor.u32 %v2952_v26, %v2751_v27  ;;  %v2949_v32 = vld [vmem:[#allocation6 + $0x4] sm:$0xf] }
  0x53   : > { %v2739_v33 = vld [vmem:[#allocation6 + $0xc] sm:$0xf0]  ;;  %v2786_v34 = vor.u32 %v2962_v30, %v2785_v29  ;;  %v2773_v35 = vld [vmem:[#allocation6 + $0x48] sm:$0xf]  ;;  %v2959_v36 = vld [vmem:[#allocation6 + $0x50] sm:$0xf0] }
  0x54   : > { %v547_v37 = vld [vmem:[%s3764_s9 + $0x20] sm:$0xff]  ;;  %v2742_v38 = vor.u32 %v2949_v32, %v2739_v33  ;;  %v548_v39 = vld [vmem:[%s3764_s9 + $0x28] sm:$0xff]  ;;  %v2774_v42 = vor.u32 %v2959_v36, %v2773_v35  ;;  %v2761_v43 = vld [vmem:[#allocation6 + $0x30] sm:$0xf]  ;;  %v3808_v63 = vand.u32 127, %v826_v61  ;;  %vm926_vm10 = vcmask 523264  }
  0x55   : > { %724 = vmatpush.bf16.msra.mxu0 %v2810_v22  ;;  %2999 = vmatpush.bf16.msra.mxu2 %v2810_v22  ;;  %v543_v40 = vld [vmem:[%s3764_s9] sm:$0xff]  ;;  %v544_v41 = vld [vmem:[%s3764_s9 + $0x8] sm:$0xff]  ;;  %v2956_v44 = vld [vmem:[#allocation6 + $0x38] sm:$0xf0]  ;;  %v3786_v45 = vpack.c.bf16 %v548_v39, %v547_v37  ;;  %s4826_s21 = sld [smem:[#allocation25_spill]]  ;;  %s2734_s16 = sshll.u32 %s3760_s30, 4 }
  0x56   : > { %3008 = vmatpush.bf16.msra.mxu3 %v2802_v10  ;;  %754 = vmatpush.bf16.msra.mxu1 %v2802_v10  ;;  %v3788_v46 = vpack.c.bf16 %v544_v41, %v543_v40  ;;  %v2762_v47 = vor.u32 %v2956_v44, %v2761_v43  ;;  %v2749_v48 = vld [vmem:[#allocation6 + $0x18] sm:$0xf]  ;;  %v2953_v49 = vld [vmem:[#allocation6 + $0x20] sm:$0xf0]  ;;  %v2737_v51 = vld [vmem:[#allocation6] sm:$0xf] }
  0x57   : > { %v2750_v50 = vor.u32 %v2953_v49, %v2749_v48  ;;  %v2950_v52 = vld [vmem:[#allocation6 + $0x8] sm:$0xf0]  ;;  %v549_v54 = vld [vmem:[%s3764_s9 + $0x30] sm:$0xff]  ;;  %v550_v55 = vld [vmem:[%s3764_s9 + $0x38] sm:$0xff]  ;;  %vm1355_vm0 = vcmp.ge.s32.totalorder %v3808_v63, 16  ;;  %vm1356_vm1 = vcmp.lt.s32.totalorder %v3808_v63, 24 }
  0x58   : > { %v2738_v53 = vor.u32 %v2950_v52, %v2737_v51  ;;  %v545_v56 = vld [vmem:[%s3764_s9 + $0x10] sm:$0xff]  ;;  %v546_v57 = vld [vmem:[%s3764_s9 + $0x18] sm:$0xff]  ;;  %v3796_v58 = vpack.c.bf16 %v550_v55, %v549_v54  ;;  %v3810_v0 = vld [vmem:[#allocation8] sm:$0x7]  ;;  %vm1594_vm2 = vcmp.ge.s32.totalorder %v3808_v63, 24  ;;  %vm1595_vm3 = vcmp.lt.s32.totalorder %v3808_v63, 32 }
  0x59   : > { %725 = vmatpush.bf16.msra.mxu0 %v2798_v28  ;;  %3000 = vmatpush.bf16.msra.mxu2 %v2798_v28  ;;  %v3798_v59 = vpack.c.bf16 %v546_v57, %v545_v56  ;;  %v3813_v1 = vperm.slane %v3810_v0, 0  ;;  %vm3822_vm4 = vmand %vm1355_vm0, %vm1356_vm1  ;;  %vm1116_vm6 = vcmp.ge.s32.totalorder %v3808_v63, 8  ;;  %vm1117_vm7 = vcmp.lt.s32.totalorder %v3808_v63, 16  ;;  %v3286_v5 = vld [vmem:[%s3764_s9] sm:$0xff]  ;;  %s4827_s2 = sld [smem:[#allocation26_spill]]  ;;  %s4729_s22 = scalar_lea.vmem [#allocation14], %s2734_s16 }
  0x5a   : > { %3009 = vmatpush.bf16.msra.mxu3 %v2790_v14  ;;  %755 = vmatpush.bf16.msra.mxu1 %v2790_v14  ;;  %vm3826_vm5 = vmand %vm1594_vm2, %vm1595_vm3  ;;  %vm829_vm8 = vcmp.lt.s32.totalorder %v3808_v63, 8  ;;  %s2997_s11 = sshll.u32 %s3661_s15, 4  ;;  %s4828_s18 = sld [smem:[#allocation27_spill]] }
  0x5b   : > { %vm3903_vm9 = vmand %vm1116_vm6, %vm1117_vm7  ;;  %s2592_s13 = sshll.u32 %s4729_s22, 4  ;;  %s2580_s19 = scalar_lea.sflag [#allocation5], %s3760_s30  ;;  %s2593_s13 = int_to_ptr.vmem [resolvable:$true] %s2592_s13 }
  0x5d   : > { %726 = vmatpush.bf16.msra.mxu0 %v2786_v34  ;;  %3001 = vmatpush.bf16.msra.mxu2 %v2786_v34 }
  0x5e   : > { %3010 = vmatpush.bf16.msra.mxu3 %v2778_v17  ;;  %756 = vmatpush.bf16.msra.mxu1 %v2778_v17  ;;  %v590_v17 = vperm.slane %v3810_v0, 1 }
  0x60   : > { %s2591_s24 = scalar_lea.hbm %s4828_s18, %s2997_s11 }
  0x61   : > { %727 = vmatpush.bf16.msra.mxu0 %v2774_v42  ;;  %3002 = vmatpush.bf16.msra.mxu2 %v2774_v42  ;;  %s2594_s14 = sshll.u32 %s2591_s24, 4  ;;  %s2595_s14 = int_to_ptr.hbm [resolvable:$true] %s2594_s14 }
  0x62   : > { %3011 = vmatpush.bf16.msra.mxu3 %v2766_v25  ;;  %757 = vmatpush.bf16.msra.mxu1 %v2766_v25  ;;  %s3488_s3 = sshra.s32 %s2595_s14, 4  ;;  %s3489_s3 = int_to_ptr.hbm [resolvable:$true] %s3488_s3 }
  0x63   : > { %p3495_p13 = scmp.lt.s32.totalorder %s3489_s3, %s4828_s18 }
  0x65   : > { %728 = vmatpush.bf16.msra.mxu0 %v2762_v47  ;;  %3003 = vmatpush.bf16.msra.mxu2 %v2762_v47 }
  0x66   : > { %3012 = vmatpush.bf16.msra.mxu3 %v2754_v31  ;;  %758 = vmatpush.bf16.msra.mxu1 %v2754_v31 }
  0x69   : > { %729 = vmatpush.bf16.msra.mxu0 %v2750_v50  ;;  %3004 = vmatpush.bf16.msra.mxu2 %v2750_v50 }
  0x6a   : > { %3013 = vmatpush.bf16.msra.mxu3 %v2742_v38  ;;  %759 = vmatpush.bf16.msra.mxu1 %v2742_v38 }
  0x6d   : > { %770 = vmatmul.bf16.vlgmr.msra.gmra.mxu3 %v3786_v45  ;;  %760 = vmatmul.bf16.vlgmr.msra.gmra.mxu1 %v3788_v46 }
  0x6e   : > { %730 = vmatpush.bf16.msra.mxu0 %v2738_v53  ;;  %3005 = vmatpush.bf16.msra.mxu2 %v2738_v53 }
  0x71   : > { %731 = vmatmul.bf16.vlgmr.msra.gmra.mxu0 %v3788_v46  ;;  %741 = vmatmul.bf16.vlgmr.msra.gmra.mxu2 %v3786_v45 }
  0x7d   : > { %775 = vmatmul.bf16.gmra.mxu3 %v3796_v58  ;;  %765 = vmatmul.bf16.gmra.mxu1 %v3798_v59 }
  0x81   : > { %736 = vmatmul.bf16.gmra.mxu0 %v3798_v59  ;;  %746 = vmatmul.bf16.gmra.mxu2 %v3796_v58 }
  0xea   : > { %v3806_v62 = vpop.f32.mrf.mxu1 }
  0xee   : > { %v732_v2 = vpop.f32.mrf.mxu0 }
  0xef   : > { %v3820_v4 = vadd.f32 %v732_v2, %v3813_v1 }
  0xf0   : > { %v771_v60 = vpop.f32.mrf.mxu3 }
  0xf1   : > { %v1360_v8 = vsel %vm3822_vm4, %v3820_v4, 0.0  ;;  %v1599_v9 = vsel %vm3826_vm5, %v3820_v4, 0.0  ;;  %v772_v34 = vadd.f32 %v771_v60, %v590_v17 }
  0xf2   : > { %v3830_v7 = vpop.f32.mrf.mxu1  ;;  %v1368_v12 = vpack.c.bf16 %v1360_v8, %v1360_v8  ;;  %v1607_v14 = vpack.c.bf16 %v1599_v9, %v1599_v9 }
  0xf3   : > { %v814_v43 = vpack.c.bf16 %v772_v34, %v772_v34  ;;  %v1121_v34 = vsel %vm3903_vm9, %v3820_v4, 0.0 }
  0xf4   : > { %v3848_v18 = vunpack.c.l.b16 %v1368_v12  ;;  %v3850_v21 = vunpack.c.l.b16 %v1607_v14  ;;  %v742_v47 = vpop.f32.mrf.mxu2  ;;  %v762_v14 = vadd.f32 %v3806_v62, %v590_v17 }
  0xf5   : > { %v885_v55 = vunpack.c.l.b16 %v814_v43  ;;  %v3908_v62 = vadd.f32 %v742_v47, %v3813_v1 }
  0xf6   : > { %v734_v10 = vpop.f32.mrf.mxu0 }
  0xf7   : > { %v3839_v13 = vadd.f32 %v734_v10, %v3813_v1 }
  0xf8   : > { %v773_v3 = vpop.f32.mrf.mxu3 }
  0xf9   : > { %v1361_v15 = vsel %vm3822_vm4, %v3839_v13, 0.0  ;;  %v1600_v16 = vsel %vm3826_vm5, %v3839_v13, 0.0  ;;  %v774_v32 = vadd.f32 %v773_v3, %v590_v17 }
  0xfa   : > { %v1369_v19 = vpack.c.bf16 %v1361_v15, %v1361_v15  ;;  %v1608_v22 = vpack.c.bf16 %v1600_v16, %v1600_v16  ;;  %v766_v23 = vpop.f32.mrf.mxu1  ;;  %v764_v15 = vadd.f32 %v3830_v7, %v590_v17 }
  0xfb   : > { %v815_v38 = vpack.c.bf16 %v774_v32, %v774_v32  ;;  %v767_v50 = vadd.f32 %v766_v23, %v590_v17  ;;  %v810_v23 = vpack.c.bf16 %v762_v14, %v762_v14 }
  0xfc   : > { %v3852_v24 = vunpack.c.l.b16 %v1369_v19  ;;  %v3854_v26 = vunpack.c.l.b16 %v1608_v22  ;;  %v744_v22 = vpop.f32.mrf.mxu2 }
  0xfd   : > { %v886_v49 = vunpack.c.l.b16 %v815_v38  ;;  %v812_v8 = vpack.c.bf16 %v767_v50, %v767_v50  ;;  %v3911_v7 = vadd.f32 %v744_v22, %v3813_v1 }
  0xfe   : > { %v737_v25 = vpop.f32.mrf.mxu0  ;;  %v1392_v28 = vpack.c.b16 %v3852_v24, %v3848_v18  ;;  %v1631_v31 = vpack.c.b16 %v3854_v26, %v3850_v21  ;;  %v2805_v18 = vld [vmem:[#allocation6 + $0x80] sm:$0xf]  ;;  %v2793_v26 = vld [vmem:[#allocation6 + $0x68] sm:$0xf] }
  0xff   : > { %v3861_v37 = vadd.f32 %v737_v25, %v3813_v1  ;;  %v3886_v3 = vpack.c.b16 %v886_v49, %v885_v55  ;;  %v883_v19 = vunpack.c.l.b16 %v812_v8  ;;  %v811_v25 = vpack.c.bf16 %v764_v15, %v764_v15 }
 0x100   : > { %v776_v11 = vpop.f32.mrf.mxu3  ;;  %v1365_v38 = vsel %vm3822_vm4, %v3911_v7, 0.0 }
 0x101   : > { %v777_v20 = vadd.f32 %v776_v11, %v590_v17  ;;  %v1362_v44 = vsel %vm3822_vm4, %v3861_v37, 0.0  ;;  %v1601_v48 = vsel %vm3826_vm5, %v3861_v37, 0.0  ;;  %v882_v32 = vunpack.c.l.b16 %v811_v25 }
 0x102   : > { %v768_v41 = vpop.f32.mrf.mxu1  ;;  %v1370_v53 = vpack.c.bf16 %v1362_v44, %v1362_v44  ;;  %v1609_v57 = vpack.c.bf16 %v1601_v48, %v1601_v48  ;;  %v1373_v44 = vpack.c.bf16 %v1365_v38, %v1365_v38  ;;  %v1129_v48 = vpack.c.bf16 %v1121_v34, %v1121_v34 }
 0x103   : > { %v816_v29 = vpack.c.bf16 %v777_v20, %v777_v20  ;;  %v769_v51 = vadd.f32 %v768_v41, %v590_v17  ;;  %v835_v22 = vsel %vm829_vm8, %v3861_v37, 0.0 }
 0x104   : > { %v3882_v60 = vunpack.c.l.b16 %v1370_v53  ;;  %v3888_v10 = vunpack.c.l.b16 %v1609_v57  ;;  %v3939_v53 = vunpack.c.l.b16 %v1373_v44  ;;  %v747_v55 = vpop.f32.mrf.mxu2 }
 0x105   : > { %v887_v35 = vunpack.c.l.b16 %v816_v29  ;;  %v813_v9 = vpack.c.bf16 %v769_v51, %v769_v51 }
 0x106   : > { %v739_v40 = vpop.f32.mrf.mxu0 }
 0x107   : > { %v3866_v42 = vadd.f32 %v739_v40, %v3813_v1  ;;  %v884_v20 = vunpack.c.l.b16 %v813_v9  ;;  %v1603_v40 = vsel %vm3826_vm5, %v3908_v62, 0.0  ;;  %v1145_v9 = vunpack.c.l.b16 %v1129_v48 }
 0x108   : > { %v778_v27 = vpop.f32.mrf.mxu3 }
 0x109   : > { %v779_v30 = vadd.f32 %v778_v27, %v590_v17  ;;  %v1363_v52 = vsel %vm3822_vm4, %v3866_v42, 0.0  ;;  %v1602_v56 = vsel %vm3826_vm5, %v3866_v42, 0.0  ;;  %v890_v27 = vpack.c.b16 %v884_v20, %v883_v19 }
 0x10a   : > { %v1371_v54 = vpack.c.bf16 %v1363_v52, %v1363_v52  ;;  %v1610_v2 = vpack.c.bf16 %v1602_v56, %v1602_v56  ;;  %v833_v17 = vsel %vm829_vm8, %v3820_v4, 0.0  ;;  %v1604_v4 = vsel %vm3826_vm5, %v3911_v7, 0.0 }
 0x10b   : > { %v817_v33 = vpack.c.bf16 %v779_v30, %v779_v30  ;;  %v881_v30 = vunpack.c.l.b16 %v810_v23  ;;  %v841_v41 = vpack.c.bf16 %v833_v17, %v833_v17  ;;  %v1612_v50 = vpack.c.bf16 %v1604_v4, %v1604_v4 }
 0x10c   : > { %v3884_v61 = vunpack.c.l.b16 %v1371_v54  ;;  %v3892_v12 = vunpack.c.l.b16 %v1610_v2  ;;  %v749_v23 = vpop.f32.mrf.mxu2  ;;  %v836_v25 = vsel %vm829_vm8, %v3866_v42, 0.0  ;;  %v1124_v17 = vsel %vm3903_vm9, %v3866_v42, 0.0 }
 0x10d   : > { %v888_v36 = vunpack.c.l.b16 %v817_v33  ;;  %v834_v33 = vsel %vm829_vm8, %v3839_v13, 0.0  ;;  %v889_v51 = vpack.c.b16 %v882_v32, %v881_v30  ;;  %v3943_v56 = vunpack.c.l.b16 %v1612_v50 }
 0x10e   : > { %v1393_v11 = vpack.c.b16 %v3884_v61, %v3882_v60  ;;  %v1632_v16 = vpack.c.b16 %v3892_v12, %v3888_v10  ;;  %v842_v47 = vpack.c.bf16 %v834_v33, %v834_v33  ;;  %v857_v57 = vunpack.c.l.b16 %v841_v41  ;;  %v2769_v61 = vld [vmem:[#allocation6 + $0x38] sm:$0xf]  ;;  %v2957_v10 = vld [vmem:[#allocation6 + $0x40] sm:$0xf0]  ;;  %v2757_v12 = vld [vmem:[#allocation6 + $0x20] sm:$0xf] }
 0x10f   : > { %v3863_v39 = vpack.c.b16 %v888_v36, %v887_v35  ;;  %v1122_v35 = vsel %vm3903_vm9, %v3839_v13, 0.0  ;;  %v1364_v36 = vsel %vm3822_vm4, %v3908_v62, 0.0  ;;  %v1611_v13 = vpack.c.bf16 %v1603_v40, %v1603_v40 }
 0x110   : > { %v1372_v43 = vpack.c.bf16 %v1364_v36, %v1364_v36  ;;  %v1130_v49 = vpack.c.bf16 %v1122_v35, %v1122_v35  ;;  %v858_v8 = vunpack.c.l.b16 %v842_v47  ;;  %v843_v30 = vpack.c.bf16 %v835_v22, %v835_v22 }
 0x111   : > { %901 = vmatpush.bf16.xpose.msrb.mxu3 %v3863_v39  ;;  %1165 = vmatpush.bf16.xpose.msrb.mxu1 %v3863_v39  ;;  %v3941_v54 = vunpack.c.l.b16 %v1611_v13  ;;  %v750_v33 = vadd.f32 %v749_v23, %v3813_v1  ;;  %v844_v34 = vpack.c.bf16 %v836_v25, %v836_v25  ;;  %v1132_v35 = vpack.c.bf16 %v1124_v17, %v1124_v17 }
 0x112   : > { %v3937_v52 = vunpack.c.l.b16 %v1372_v43  ;;  %v1146_v14 = vunpack.c.l.b16 %v1130_v49  ;;  %v865_v19 = vpack.c.b16 %v858_v8, %v857_v57  ;;  %v859_v36 = vunpack.c.l.b16 %v843_v30 }
 0x113   : > { %v1633_v15 = vpack.c.b16 %v3943_v56, %v3941_v54  ;;  %v1367_v40 = vsel %vm3822_vm4, %v750_v33, 0.0  ;;  %v860_v41 = vunpack.c.l.b16 %v844_v34  ;;  %v1148_v42 = vunpack.c.l.b16 %v1132_v35 }
 0x114   : > { %v1394_v2 = vpack.c.b16 %v3939_v53, %v3937_v52  ;;  %v1153_v20 = vpack.c.b16 %v1146_v14, %v1145_v9  ;;  %v1375_v4 = vpack.c.bf16 %v1367_v40, %v1367_v40  ;;  %v837_v14 = vsel %vm829_vm8, %v3908_v62, 0.0 }
 0x115   : > { %v1126_v22 = vsel %vm3903_vm9, %v3911_v7, 0.0 }
 0x116   : > { %v3977_v49 = vunpack.c.l.b16 %v1375_v4 }
 0x119   : > { %902 = vmatpush.bf16.xpose.msrb.mxu3 %v3886_v3  ;;  %1166 = vmatpush.bf16.xpose.msrb.mxu1 %v3886_v3 }
 0x121   : > { %903 = vmatpush.bf16.xpose.msrb.mxu3 %v890_v27  ;;  %1167 = vmatpush.bf16.xpose.msrb.mxu1 %v890_v27 }
 0x129   : > { %904 = vmatpush.bf16.xpose.msrb.mxu3 %v889_v51  ;;  %1168 = vmatpush.bf16.xpose.msrb.mxu1 %v889_v51 }
 0x130   : > { %905 = vmatmul.bf16.vlgmr.msrb.gmra.mxu3 %v865_v19  ;;  %1169 = vmatmul.bf16.vlgmr.msrb.gmra.mxu1 %v1153_v20  ;;  %v838_v19 = vsel %vm829_vm8, %v3911_v7, 0.0  ;;  %v1125_v20 = vsel %vm3903_vm9, %v3908_v62, 0.0  ;;  %v840_v62 = vsel %vm829_vm8, %v750_v33, 0.0 }
 0x131   : > { %1404 = vmatpush.bf16.xpose.msra.mxu3 %v3863_v39  ;;  %1643 = vmatpush.bf16.xpose.msra.mxu1 %v3863_v39  ;;  %v1123_v39 = vsel %vm3903_vm9, %v3861_v37, 0.0  ;;  %v846_v23 = vpack.c.bf16 %v838_v19, %v838_v19  ;;  %v1133_v25 = vpack.c.bf16 %v1125_v20, %v1125_v20  ;;  %v2969_v19 = vld [vmem:[#allocation6 + $0xa0] sm:$0xf0] }
 0x132   : > { %v1131_v32 = vpack.c.bf16 %v1123_v39, %v1123_v39  ;;  %v845_v39 = vpack.c.bf16 %v837_v14, %v837_v14  ;;  %v2817_v14 = vld [vmem:[#allocation6 + $0x98] sm:$0xf] }
 0x133   : > { %v862_v30 = vunpack.c.l.b16 %v846_v23  ;;  %v2818_v24 = vor.u32 %v2969_v19, %v2817_v14 }
 0x134   : > { %v1147_v38 = vunpack.c.l.b16 %v1131_v32  ;;  %v861_v17 = vunpack.c.l.b16 %v845_v39  ;;  %v1149_v32 = vunpack.c.l.b16 %v1133_v25  ;;  %v2960_v39 = vld [vmem:[#allocation6 + $0x58] sm:$0xf0]  ;;  %v2745_v25 = vld [vmem:[#allocation6 + $0x8] sm:$0xf] }
 0x136   : > { %v867_v35 = vpack.c.b16 %v862_v30, %v861_v17 }
 0x139   : > { %1405 = vmatpush.bf16.xpose.msra.mxu3 %v3886_v3  ;;  %1644 = vmatpush.bf16.xpose.msra.mxu1 %v3886_v3  ;;  %v748_v3 = vadd.f32 %v747_v55, %v3813_v1  ;;  %v1606_v1 = vsel %vm3826_vm5, %v750_v33, 0.0  ;;  %v866_v55 = vpack.c.b16 %v860_v41, %v859_v36  ;;  %v848_v41 = vpack.c.bf16 %v840_v62, %v840_v62 }
 0x13a   : > { %v1614_v48 = vpack.c.bf16 %v1606_v1, %v1606_v1 }
 0x13b   : > { %v1366_v37 = vsel %vm3822_vm4, %v748_v3, 0.0  ;;  %v1605_v44 = vsel %vm3826_vm5, %v748_v3, 0.0  ;;  %v1127_v7 = vsel %vm3903_vm9, %v748_v3, 0.0  ;;  %v864_v4 = vunpack.c.l.b16 %v848_v41 }
 0x13c   : > { %v1374_v43 = vpack.c.bf16 %v1366_v37, %v1366_v37  ;;  %v1613_v13 = vpack.c.bf16 %v1605_v44, %v1605_v44  ;;  %v3981_v57 = vunpack.c.l.b16 %v1614_v48  ;;  %v1128_v37 = vsel %vm3903_vm9, %v750_v33, 0.0  ;;  %v2972_v33 = vld [vmem:[#allocation6 + $0xb8] sm:$0xf0] }
 0x13e   : > { %v3975_v47 = vunpack.c.l.b16 %v1374_v43  ;;  %v3979_v50 = vunpack.c.l.b16 %v1613_v13  ;;  %v1136_v43 = vpack.c.bf16 %v1128_v37, %v1128_v37 }
 0x140   : > { %v1395_v8 = vpack.c.b16 %v3977_v49, %v3975_v47  ;;  %910 = vmatmul.bf16.gmra.mxu3 %v866_v55  ;;  %v1634_v9 = vpack.c.b16 %v3981_v57, %v3979_v50  ;;  %v1152_v13 = vunpack.c.l.b16 %v1136_v43 }
 0x141   : > { %1406 = vmatpush.bf16.xpose.msra.mxu3 %v890_v27  ;;  %1645 = vmatpush.bf16.xpose.msra.mxu1 %v890_v27  ;;  %v1154_v27 = vpack.c.b16 %v1148_v42, %v1147_v38  ;;  %v839_v38 = vsel %vm829_vm8, %v748_v3, 0.0  ;;  %v1135_v42 = vpack.c.bf16 %v1127_v7, %v1127_v7  ;;  %v2829_v3 = vld [vmem:[#allocation6 + $0xb0] sm:$0xf] }
 0x142   : > { %v847_v40 = vpack.c.bf16 %v839_v38, %v839_v38 }
 0x143   : > { %1174 = vmatmul.bf16.gmra.mxu1 %v1154_v27  ;;  %v1151_v1 = vunpack.c.l.b16 %v1135_v42  ;;  %v2830_v27 = vor.u32 %v2972_v33, %v2829_v3 }
 0x144   : > { %v863_v44 = vunpack.c.l.b16 %v847_v40 }
 0x145   : > { %v1156_v55 = vpack.c.b16 %v1152_v13, %v1151_v1  ;;  %781 = vmatpush.bf16.msrb.mxu2 %v2830_v27 }
 0x146   : > { %v868_v48 = vpack.c.b16 %v864_v4, %v863_v44 }
 0x149   : > { %1407 = vmatpush.bf16.xpose.msra.mxu3 %v889_v51  ;;  %1646 = vmatpush.bf16.xpose.msra.mxu1 %v889_v51  ;;  %v1134_v51 = vpack.c.bf16 %v1126_v22, %v1126_v22  ;;  %v2781_v22 = vld [vmem:[#allocation6 + $0x50] sm:$0xf] }
 0x14a   : > { %782 = vmatpush.bf16.msrb.mxu2 %v2818_v24  ;;  %v2782_v60 = vor.u32 %v2960_v39, %v2781_v22 }
 0x14b   : > { %v1150_v34 = vunpack.c.l.b16 %v1134_v51  ;;  %v2951_v51 = vld [vmem:[#allocation6 + $0x10] sm:$0xf0] }
 0x14c   : > { %v2746_v17 = vor.u32 %v2951_v51, %v2745_v25 }
 0x14d   : > { %v1155_v36 = vpack.c.b16 %v1150_v34, %v1149_v32 }
 0x150   : > { %915 = vmatmul.bf16.gmra.mxu3 %v867_v35 }
 0x153   : > { %1179 = vmatmul.bf16.gmra.mxu1 %v1155_v36 }
 0x160   : > { %920 = vmatmul.bf16.gmra.mxu3 %v868_v48 }
 0x163   : > { %1184 = vmatmul.bf16.gmra.mxu1 %v1156_v55 }
 0x170   : > { %1408 = vmatmul.bf16.vlgmr.msra.gmra.mxu3 %v1392_v28  ;;  %v2966_v28 = vld [vmem:[#allocation6 + $0x88] sm:$0xf0] }
 0x171   : > { %v2806_v21 = vor.u32 %v2966_v28, %v2805_v18 }
 0x173   : > { %1647 = vmatmul.bf16.vlgmr.msra.gmra.mxu1 %v1631_v31  ;;  %v2963_v31 = vld [vmem:[#allocation6 + $0x70] sm:$0xf0]  ;;  %783 = vmatpush.bf16.msrb.mxu2 %v2806_v21 }
 0x174   : > { %v2794_v20 = vor.u32 %v2963_v31, %v2793_v26 }
 0x177   : > { %784 = vmatpush.bf16.msrb.mxu2 %v2794_v20 }
 0x17b   : > { %785 = vmatpush.bf16.msrb.mxu2 %v2782_v60 }
 0x180   : > { %1413 = vmatmul.bf16.gmra.mxu3 %v1393_v11  ;;  %v2770_v11 = vor.u32 %v2957_v10, %v2769_v61 }
 0x182   : > { %786 = vmatpush.bf16.msrb.mxu2 %v2770_v11 }
 0x183   : > { %1652 = vmatmul.bf16.gmra.mxu1 %v1632_v16  ;;  %v2954_v16 = vld [vmem:[#allocation6 + $0x28] sm:$0xf0] }
 0x184   : > { %v2758_v23 = vor.u32 %v2954_v16, %v2757_v12 }
 0x186   : > { %787 = vmatpush.bf16.msrb.mxu2 %v2758_v23 }
 0x18a   : > { %788 = vmatpush.bf16.msrb.mxu2 %v2746_v17 }
 0x18d   : > { %789 = vmatmul.bf16.vlgmr.msrb.gmra.mxu2 %v3788_v46 }
 0x190   : > { %1418 = vmatmul.bf16.gmra.mxu3 %v1394_v2 }
 0x193   : > { %1657 = vmatmul.bf16.gmra.mxu1 %v1633_v15 }
 0x19d   : > { %794 = vmatmul.bf16.gmra.mxu2 %v3798_v59 }
 0x1a0   : > { %1423 = vmatmul.bf16.gmra.mxu3 %v1395_v8 }
 0x1a3   : > { %1662 = vmatmul.bf16.gmra.mxu1 %v1634_v9 }
 0x1ad   : > { %v4032_v52 = vpop.f32.mrf.mxu1  ;;  %799 = vmatmul.bf16.gmra.mxu2 %v3786_v45 }
 0x1ae   : > { %v1190_v53 = vsel %vm926_vm10, %v4032_v52, -inf }
 0x1af   : > { %1191 = vmax.xlane.f32.xlu0 %v1190_v53 }
 0x1b3   : > { %v4037_v54 = vpop.f32.mrf.mxu3 }
 0x1b4   : > { %v927_v56 = vsel %vm926_vm10, %v4037_v54, -inf }
 0x1b5   : > { %v4041_v2 = vpop.f32.mrf.mxu1  ;;  %928 = vmax.xlane.f32.xlu1 %v927_v56 }
 0x1b6   : > { %v1193_v46 = vsel %vm926_vm10, %v4041_v2, -inf }
 0x1b7   : > { %1194 = vmax.xlane.f32.xlu0 %v1193_v46 }
 0x1bb   : > { %v4045_v15 = vpop.f32.mrf.mxu3 }
 0x1bc   : > { %v930_v47 = vsel %vm926_vm10, %v4045_v15, -inf }
 0x1bd   : > { %931 = vmax.xlane.f32.xlu1 %v930_v47  ;;  %804 = vmatmul.bf16.gmra.mxu2 %v3796_v58 }
 0x1c0   : > { %v4049_v49 = vpop.f32.mrf.mxu1 }
 0x1c1   : > { %v1196_v59 = vsel %vm926_vm10, %v4049_v49, -inf }
 0x1c2   : > { %1197 = vmax.xlane.f32.xlu2 %v1196_v59 }
 0x1c3   : > { %v4054_v50 = vpop.f32.mrf.mxu3 }
 0x1c4   : > { %v933_v57 = vsel %vm926_vm10, %v4054_v50, -inf }
 0x1c5   : > { %934 = vmax.xlane.f32.xlu0 %v933_v57 }
 0x1c8   : > { %v4058_v8 = vpop.f32.mrf.mxu1 }
 0x1c9   : > { %v1199_v9 = vsel %vm926_vm10, %v4058_v8, -inf }
 0x1ca   : > { %1200 = vmax.xlane.f32.xlu2 %v1199_v9 }
 0x1cb   : > { %v4062_v30 = vpop.f32.mrf.mxu3 }
 0x1cc   : > { %v936_v32 = vsel %vm926_vm10, %v4062_v30, -inf }
 0x1cd   : > { %937 = vmax.xlane.f32.xlu1 %v936_v32 }
 0x1d0   : > { %v4066_v34 = vpop.f32.mrf.mxu1 }
 0x1d1   : > { %v1202_v45 = vsel %vm926_vm10, %v4066_v34, -inf }
 0x1d2   : > { %1203 = vmax.xlane.f32.xlu2 %v1202_v45 }
 0x1d3   : > { %v4071_v35 = vpop.f32.mrf.mxu3 }
 0x1d4   : > { %v939_v36 = vsel %vm926_vm10, %v4071_v35, -inf }
 0x1d5   : > { %940 = vmax.xlane.f32.xlu1 %v939_v36 }
 0x1d8   : > { %v4075_v38 = vpop.f32.mrf.mxu1 }
 0x1d9   : > { %v1205_v62 = vsel %vm926_vm10, %v4075_v38, -inf }
 0x1da   : > { %1206 = vmax.xlane.f32.xlu0 %v1205_v62 }
 0x1db   : > { %v4079_v7 = vpop.f32.mrf.mxu3 }
 0x1dc   : > { %v942_v37 = vsel %vm926_vm10, %v4079_v7, -inf }
 0x1dd   : > { %943 = vmax.xlane.f32.xlu2 %v942_v37 }
 0x1e0   : > { %v4083_v40 = vpop.f32.mrf.mxu1 }
 0x1e1   : > { %v1208_v58 = vsel %vm926_vm10, %v4083_v40, -inf }
 0x1e2   : > { %1209 = vmax.xlane.f32.xlu0 %v1208_v58 }
 0x1e3   : > { %v4087_v41 = vpop.f32.mrf.mxu3 }
 0x1e4   : > { %v945_v42 = vsel %vm926_vm10, %v4087_v41, -inf }
 0x1e5   : > { %946 = vmax.xlane.f32.xlu1 %v945_v42 }
 0x1e8   : > { %v4091_v43 = vpop.f32.mrf.mxu1 }
 0x1e9   : > { %v1211_v4 = vsel %vm926_vm10, %v4091_v43, -inf }
 0x1eb   : > { %v4093_v44 = vpop.f32.mrf.mxu3 }
 0x1ec   : > { %v948_v1 = vsel %vm926_vm10, %v4093_v44, -inf }
 0x1ed   : > { %1212 = vmax.xlane.f32.xlu1 %v1211_v4  ;;  %949 = vmax.xlane.f32.xlu2 %v948_v1 }
 0x1f0   : > { %v4099_v13 = vpop.f32.mrf.mxu1 }
 0x1f1   : > { %v1668_v3 = vsel %vm926_vm10, %v4099_v13, -inf }
 0x1f3   : > { %v4101_v48 = vpop.f32.mrf.mxu3 }
 0x1f4   : > { %v1429_v55 = vsel %vm926_vm10, %v4101_v48, -inf }
 0x1f5   : > { %1430 = vmax.xlane.f32.xlu0 %v1429_v55  ;;  %1669 = vmax.xlane.f32.xlu2 %v1668_v3 }
 0x1f8   : > { %v4107_v33 = vpop.f32.mrf.mxu1 }
 0x1f9   : > { %v1671_v14 = vsel %vm926_vm10, %v4107_v33, -inf }
 0x1fb   : > { %v4109_v27 = vpop.f32.mrf.mxu3 }
 0x1fc   : > { %v1432_v19 = vsel %vm926_vm10, %v4109_v27, -inf }
 0x1fd   : > { %1672 = vmax.xlane.f32.xlu0 %v1671_v14  ;;  %1433 = vmax.xlane.f32.xlu1 %v1432_v19 }
 0x200   : > { %v4115_v18 = vpop.f32.mrf.mxu1 }
 0x201   : > { %v1674_v24 = vsel %vm926_vm10, %v4115_v18, -inf }
 0x203   : > { %v4142_v47 = vpop.f32.mrf.mxu3 }
 0x205   : > { %1675 = vmax.xlane.f32.xlu1 %v1674_v24 }
 0x208   : > { %v4119_v28 = vpop.f32.mrf.mxu1 }
 0x209   : > { %v1677_v21 = vsel %vm926_vm10, %v4119_v28, -inf }
 0x20a   : > { %1678 = vmax.xlane.f32.xlu2 %v1677_v21 }
 0x20b   : > { %v4158_v1 = vpop.f32.mrf.mxu3 }
 0x20c   : > { %v1438_v14 = vsel %vm926_vm10, %v4158_v1, -inf }
 0x210   : > { %v4124_v22 = vpop.f32.mrf.mxu2 }
 0x218   : > { %v4130_v16 = vpop.f32.mrf.mxu2 }
 0x220   : > { %v4140_v46 = vpop.f32.mrf.mxu2 }
 0x222   : > { %v1192_v26 = vpop.xlane.xlu0 %1191 }
 0x223   : > { %v1214_v31 = vsub.f32 %v4032_v52, %v1192_v26 }
 0x225   : > { %v1222_v20 = vmul.f32 1.442695, %v1214_v31 }
 0x227   : > { %3126 = vpow2.f32 %v1222_v20  ;;  %v4169_v20 = vpop.f32.mrf.mxu1 }
 0x228   : > { %v929_v39 = vpop.xlane.xlu1 %928  ;;  %v4154_v58 = vpop.f32.mrf.mxu2 }
 0x229   : > { %v951_v60 = vsub.f32 %v4037_v54, %v929_v39 }
 0x22a   : > { %v1195_v61 = vpop.xlane.xlu0 %1194 }
 0x22b   : > { %v959_v10 = vmul.f32 1.442695, %v951_v60  ;;  %v1215_v11 = vsub.f32 %v4041_v2, %v1195_v61 }
 0x22d   : > { %v4128_v12 = vpop.eup %3126  ;;  %3128 = vpow2.f32 %v959_v10  ;;  %v1224_v25 = vmul.f32 1.442695, %v1215_v11 }
 0x22e   : > { %v1238_v23 = vsel %vm926_vm10, %v4128_v12, 0.0 }
 0x22f   : > { %1239 = vadd.xlane.f32.xlu2 %v1238_v23  ;;  %3130 = vpow2.f32 %v1224_v25  ;;  %v1680_v23 = vsel %vm926_vm10, %v4169_v20, -inf }
 0x230   : > { %v932_v51 = vpop.xlane.xlu1 %931  ;;  %v800_v24 = vpop.f32.mrf.mxu2 }
 0x231   : > { %v952_v17 = vsub.f32 %v4045_v15, %v932_v51 }
 0x233   : > { %v4135_v53 = vpop.eup %3128  ;;  %v961_v54 = vmul.f32 1.442695, %v952_v17 }
 0x234   : > { %v975_v2 = vsel %vm926_vm10, %v4135_v53, 0.0 }
 0x235   : > { %v1198_v52 = vpop.xlane.xlu2 %1197  ;;  %3132 = vpow2.f32 %v961_v54  ;;  %976 = vadd.xlane.f32.xlu0 %v975_v2  ;;  %v4144_v9 = vpop.eup %3130 }
 0x236   : > { %v1216_v56 = vsub.f32 %v4049_v49, %v1198_v52  ;;  %v1241_v62 = vsel %vm926_vm10, %v4144_v9, 0.0  ;;  %v4180_v52 = vpop.f32.mrf.mxu3 }
 0x238   : > { %v1226_v59 = vmul.f32 1.442695, %v1216_v56  ;;  %v935_v57 = vpop.xlane.xlu0 %934 }
 0x239   : > { %v953_v15 = vsub.f32 %v4054_v50, %v935_v57  ;;  %v591_v57 = vperm.slane %v3810_v0, 2 }
 0x23a   : > { %3134 = vpow2.f32 %v1226_v59 }
 0x23b   : > { %v4147_v45 = vpop.eup %3132  ;;  %v963_v49 = vmul.f32 1.442695, %v953_v15  ;;  %v1435_v15 = vsel %vm926_vm10, %v4142_v47, -inf  ;;  %v801_v0 = vadd.f32 %v800_v24, %v591_v57 }
 0x23c   : > { %v978_v37 = vsel %vm926_vm10, %v4147_v45, 0.0 }
 0x23d   : > { %v1201_v32 = vpop.xlane.xlu2 %1200  ;;  %3136 = vpow2.f32 %v963_v49  ;;  %1242 = vadd.xlane.f32.xlu0 %v1241_v62  ;;  %979 = vadd.xlane.f32.xlu1 %v978_v37 }
 0x23e   : > { %v1217_v36 = vsub.f32 %v4058_v8, %v1201_v32 }
 0x240   : > { %v1228_v42 = vmul.f32 1.442695, %v1217_v36  ;;  %v938_v50 = vpop.xlane.xlu1 %937  ;;  %v4156_v4 = vpop.eup %3134 }
 0x241   : > { %v954_v8 = vsub.f32 %v4062_v30, %v938_v50  ;;  %v1244_v3 = vsel %vm926_vm10, %v4156_v4, 0.0 }
 0x242   : > { %3138 = vpow2.f32 %v1228_v42 }
 0x243   : > { %v4160_v55 = vpop.eup %3136  ;;  %v965_v21 = vmul.f32 1.442695, %v954_v8  ;;  %v4199_v8 = vpop.f32.mrf.mxu3 }
 0x244   : > { %v981_v19 = vsel %vm926_vm10, %v4160_v55, 0.0 }
 0x245   : > { %1245 = vadd.xlane.f32.xlu1 %v1244_v3  ;;  %1439 = vmax.xlane.f32.xlu0 %v1438_v14  ;;  %v1204_v26 = vpop.xlane.xlu2 %1203  ;;  %3140 = vpow2.f32 %v965_v21 }
 0x246   : > { %982 = vadd.xlane.f32.xlu2 %v981_v19  ;;  %v1218_v60 = vsub.f32 %v4066_v34, %v1204_v26 }
 0x248   : > { %v941_v31 = vpop.xlane.xlu1 %940  ;;  %v4172_v39 = vpop.eup %3138  ;;  %v1230_v51 = vmul.f32 1.442695, %v1218_v60  ;;  %v798_v60 = vadd.f32 %v4154_v58, %v591_v57 }
 0x249   : > { %v955_v30 = vsub.f32 %v4071_v35, %v941_v31  ;;  %v1247_v25 = vsel %vm926_vm10, %v4172_v39, 0.0  ;;  %v802_v35 = vpop.f32.mrf.mxu2  ;;  %v4206_v31 = vpop.f32.mrf.mxu1 }
 0x24a   : > { %v803_v14 = vadd.f32 %v802_v35, %v591_v57  ;;  %v791_v35 = vadd.f32 %v4124_v22, %v591_v57  ;;  %v821_v58 = vpack.c.bf16 %v798_v60, %v798_v60 }
 0x24b   : > { %v967_v10 = vmul.f32 1.442695, %v955_v30  ;;  %v4182_v34 = vpop.eup %3140  ;;  %v796_v30 = vadd.f32 %v4140_v46, %v591_v57  ;;  %v793_v46 = vadd.f32 %v4130_v16, %v591_v57 }
 0x24c   : > { %v984_v59 = vsel %vm926_vm10, %v4182_v34, 0.0 }
 0x24d   : > { %v1207_v61 = vpop.xlane.xlu0 %1206  ;;  %3142 = vpow2.f32 %v967_v10  ;;  %1681 = vmax.xlane.f32.xlu0 %v1680_v23  ;;  %v823_v10 = vpack.c.bf16 %v803_v14, %v803_v14  ;;  %v1054_v14 = vunpack.c.l.b16 %v821_v58 }
 0x24e   : > { %v1219_v11 = vsub.f32 %v4075_v38, %v1207_v61  ;;  %1248 = vadd.xlane.f32.xlu2 %v1247_v25  ;;  %3144 = vpow2.f32 %v1230_v51 }
 0x250   : > { %v1232_v17 = vmul.f32 1.442695, %v1219_v11  ;;  %v944_v54 = vpop.xlane.xlu2 %943 }
 0x251   : > { %v956_v38 = vsub.f32 %v4079_v7, %v944_v54  ;;  %v805_v32 = vpop.f32.mrf.mxu2 }
 0x252   : > { %3146 = vpow2.f32 %v1232_v17  ;;  %v806_v50 = vadd.f32 %v805_v32, %v591_v57 }
 0x253   : > { %v4184_v56 = vpop.eup %3142  ;;  %v969_v36 = vmul.f32 1.442695, %v956_v38 }
 0x254   : > { %v987_v2 = vsel %vm926_vm10, %v4184_v56, 0.0  ;;  %v4194_v49 = vpop.eup %3144  ;;  %v824_v24 = vpack.c.bf16 %v806_v50, %v806_v50  ;;  %v818_v50 = vpack.c.bf16 %v791_v35, %v791_v35 }
 0x255   : > { %988 = vadd.xlane.f32.xlu1 %v987_v2  ;;  %985 = vadd.xlane.f32.xlu0 %v984_v59  ;;  %v1210_v37 = vpop.xlane.xlu0 %1209  ;;  %3148 = vpow2.f32 %v969_v36  ;;  %v1250_v26 = vsel %vm926_vm10, %v4194_v49, 0.0  ;;  %v820_v59 = vpack.c.bf16 %v796_v30, %v796_v30 }
 0x256   : > { %1436 = vmax.xlane.f32.xlu2 %v1435_v15  ;;  %v1220_v19 = vsub.f32 %v4083_v40, %v1210_v37  ;;  %v822_v40 = vpack.c.bf16 %v801_v0, %v801_v0  ;;  %v1057_v54 = vunpack.c.l.b16 %v824_v24  ;;  %v1056_v37 = vunpack.c.l.b16 %v823_v10 }
 0x257   : > { %v819_v0 = vpack.c.bf16 %v793_v46, %v793_v46  ;;  %v1051_v30 = vunpack.c.l.b16 %v818_v50 }
 0x258   : > { %v947_v62 = vpop.xlane.xlu1 %946  ;;  %v4196_v7 = vpop.eup %3146  ;;  %v1234_v23 = vmul.f32 1.442695, %v1220_v19  ;;  %v1055_v15 = vunpack.c.l.b16 %v822_v40 }
 0x259   : > { %v957_v42 = vsub.f32 %v4087_v41, %v947_v62  ;;  %v1253_v21 = vsel %vm926_vm10, %v4196_v7, 0.0  ;;  %v1444_v41 = vsel %vm926_vm10, %v4199_v8, -inf  ;;  %v807_v61 = vpop.f32.mrf.mxu2  ;;  %v1052_v40 = vunpack.c.l.b16 %v819_v0 }
 0x25a   : > { %v808_v11 = vadd.f32 %v807_v61, %v591_v57 }
 0x25b   : > { %v971_v3 = vmul.f32 1.442695, %v957_v42  ;;  %v4214_v2 = vpop.eup %3148 }
 0x25c   : > { %v825_v38 = vpack.c.bf16 %v808_v11, %v808_v11  ;;  %v990_v16 = vsel %vm926_vm10, %v4214_v2, 0.0 }
 0x25d   : > { %3150 = vpow2.f32 %v971_v3  ;;  %1254 = vadd.xlane.f32.xlu1 %v1253_v21  ;;  %1251 = vadd.xlane.f32.xlu0 %v1250_v26  ;;  %v1053_v3 = vunpack.c.l.b16 %v820_v59  ;;  %v1061_v21 = vpack.c.b16 %v1056_v37, %v1055_v15 }
 0x25e   : > { %1445 = vmax.xlane.f32.xlu2 %v1444_v41  ;;  %v1058_v42 = vunpack.c.l.b16 %v825_v38  ;;  %3152 = vpow2.f32 %v1234_v23  ;;  %v1441_v23 = vsel %vm926_vm10, %v4180_v52, -inf }
 0x25f   : > { %v1060_v61 = vpack.c.b16 %v1054_v14, %v1053_v3 }
 0x260   : > { %v1213_v25 = vpop.xlane.xlu1 %1212  ;;  %v950_v51 = vpop.xlane.xlu2 %949  ;;  %v1062_v57 = vpack.c.b16 %v1058_v42, %v1057_v54 }
 0x261   : > { %v1221_v17 = vsub.f32 %v4091_v43, %v1213_v25  ;;  %v958_v62 = vsub.f32 %v4093_v44, %v950_v51  ;;  %v1683_v43 = vsel %vm926_vm10, %v4206_v31, -inf  ;;  %v4226_v44 = vpop.f32.mrf.mxu1  ;;  %v1059_v51 = vpack.c.b16 %v1052_v40, %v1051_v30 }
 0x262   : > { %1083 = vmatpush.bf16.msrb.mxu0 %v1062_v57  ;;  %1322 = vmatpush.bf16.msra.mxu2 %v1062_v57 }
 0x263   : > { %v4217_v32 = vpop.eup %3150  ;;  %v1236_v36 = vmul.f32 1.442695, %v1221_v17  ;;  %v973_v19 = vmul.f32 1.442695, %v958_v62 }
 0x264   : > { %v993_v22 = vsel %vm926_vm10, %v4217_v32, 0.0  ;;  %v4228_v24 = vpop.eup %3152 }
 0x265   : > { %3154 = vpow2.f32 %v1236_v36  ;;  %1684 = vmax.xlane.f32.xlu1 %v1683_v43  ;;  %994 = vadd.xlane.f32.xlu0 %v993_v22  ;;  %v1256_v25 = vsel %vm926_vm10, %v4228_v24, 0.0 }
 0x266   : > { %991 = vadd.xlane.f32.xlu2 %v990_v16  ;;  %3156 = vpow2.f32 %v973_v19  ;;  %1084 = vmatpush.bf16.msrb.mxu0 %v1061_v21 }
 0x267   : > { %1323 = vmatpush.bf16.msra.mxu2 %v1061_v21 }
 0x268   : > { %v1431_v26 = vpop.xlane.xlu0 %1430  ;;  %v1670_v41 = vpop.xlane.xlu2 %1669 }
 0x269   : > { %v1692_v10 = vsub.f32 %v4099_v13, %v1670_v41  ;;  %v4241_v38 = vpop.f32.mrf.mxu1  ;;  %v1453_v15 = vsub.f32 %v4101_v48, %v1431_v26 }
 0x26a   : > { %1085 = vmatpush.bf16.msrb.mxu0 %v1060_v61  ;;  %v1689_v36 = vsel %vm926_vm10, %v4241_v38, -inf }
 0x26b   : > { %v4230_v60 = vpop.eup %3154  ;;  %v1700_v35 = vmul.f32 1.442695, %v1692_v10  ;;  %1324 = vmatpush.bf16.msra.mxu2 %v1060_v61  ;;  %v1461_v42 = vmul.f32 1.442695, %v1453_v15 }
 0x26c   : > { %v1259_v11 = vsel %vm926_vm10, %v4230_v60, 0.0  ;;  %v4239_v54 = vpop.eup %3156 }
 0x26d   : > { %1260 = vadd.xlane.f32.xlu0 %v1259_v11  ;;  %1442 = vmax.xlane.f32.xlu1 %v1441_v23  ;;  %3158 = vpow2.f32 %v1700_v35  ;;  %v996_v62 = vsel %vm926_vm10, %v4239_v54, 0.0 }
 0x26e   : > { %1257 = vadd.xlane.f32.xlu2 %v1256_v25  ;;  %1086 = vmatpush.bf16.msrb.mxu0 %v1059_v51 }
 0x26f   : > { %1325 = vmatpush.bf16.msra.mxu2 %v1059_v51 }
 0x270   : > { %v1673_v17 = vpop.xlane.xlu0 %1672  ;;  %v1434_v13 = vpop.xlane.xlu1 %1433 }
 0x271   : > { %v1693_v46 = vsub.f32 %v4107_v33, %v1673_v17  ;;  %v1454_v58 = vsub.f32 %v4109_v27, %v1434_v13  ;;  %v1686_v33 = vsel %vm926_vm10, %v4226_v44, -inf  ;;  %v4252_v27 = vpop.f32.mrf.mxu3 }
 0x272   : > { %1561 = vmatpush.bf16.msra.mxu0 %v1062_v57  ;;  %v1447_v50 = vsel %vm926_vm10, %v4252_v27, -inf }
 0x273   : > { %v1702_v59 = vmul.f32 1.442695, %v1693_v46  ;;  %1800 = vmatpush.bf16.msrb.mxu2 %v1062_v57  ;;  %v1463_v37 = vmul.f32 1.442695, %v1454_v58  ;;  %v4254_v43 = vpop.eup %3158 }
 0x274   : > { %v1716_v14 = vsel %vm926_vm10, %v4254_v43, 0.0 }
 0x275   : > { %3160 = vpow2.f32 %v1702_v59  ;;  %1690 = vmax.xlane.f32.xlu0 %v1689_v36  ;;  %997 = vadd.xlane.f32.xlu1 %v996_v62 }
 0x276   : > { %1687 = vmax.xlane.f32.xlu2 %v1686_v33  ;;  %1562 = vmatpush.bf16.msra.mxu0 %v1061_v21  ;;  %3162 = vpow2.f32 %v1463_v37 }
 0x277   : > { %1801 = vmatpush.bf16.msrb.mxu2 %v1061_v21  ;;  %3164 = vpow2.f32 %v1461_v42 }
 0x278   : > { %v1676_v48 = vpop.xlane.xlu1 %1675 }
 0x279   : > { %v1694_v57 = vsub.f32 %v4115_v18, %v1676_v48  ;;  %v4268_v26 = vpop.f32.mrf.mxu3 }
 0x27a   : > { %1563 = vmatpush.bf16.msra.mxu0 %v1060_v61  ;;  %v1450_v30 = vsel %vm926_vm10, %v4268_v26, -inf }
 0x27b   : > { %v4256_v16 = vpop.eup %3160  ;;  %1802 = vmatpush.bf16.msrb.mxu2 %v1060_v61  ;;  %v1704_v19 = vmul.f32 1.442695, %v1694_v57 }
 0x27c   : > { %v1719_v3 = vsel %vm926_vm10, %v4256_v16, 0.0  ;;  %v4266_v18 = vpop.eup %3162 }
 0x27d   : > { %v1679_v22 = vpop.xlane.xlu2 %1678  ;;  %1448 = vmax.xlane.f32.xlu0 %v1447_v50  ;;  %1717 = vadd.xlane.f32.xlu1 %v1716_v14  ;;  %3166 = vpow2.f32 %v1704_v19  ;;  %v1480_v41 = vsel %vm926_vm10, %v4266_v18, 0.0 }
 0x27e   : > { %v1695_v0 = vsub.f32 %v4119_v28, %v1679_v22  ;;  %1720 = vadd.xlane.f32.xlu2 %v1719_v3  ;;  %1564 = vmatpush.bf16.msra.mxu0 %v1059_v51  ;;  %v4270_v28 = vpop.eup %3164 }
 0x27f   : > { %1803 = vmatpush.bf16.msrb.mxu2 %v1059_v51  ;;  %v1477_v40 = vsel %vm926_vm10, %v4270_v28, 0.0 }
 0x280   : > { %v1706_v21 = vmul.f32 1.442695, %v1695_v0 }
 0x282   : > { %3168 = vpow2.f32 %v1706_v21 }
 0x283   : > { %v4278_v61 = vpop.eup %3166 }
 0x284   : > { %v1722_v11 = vsel %vm926_vm10, %v4278_v61, 0.0 }
 0x285   : > { %1481 = vadd.xlane.f32.xlu0 %v1480_v41  ;;  %1451 = vmax.xlane.f32.xlu1 %v1450_v30 }
 0x286   : > { %1478 = vadd.xlane.f32.xlu2 %v1477_v40 }
 0x288   : > { %v4280_v10 = vpop.eup %3168 }
 0x289   : > { %v1725_v23 = vsel %vm926_vm10, %v4280_v10, 0.0 }
 0x28d   : > { %1723 = vadd.xlane.f32.xlu1 %v1722_v11 }
 0x28e   : > { %1726 = vadd.xlane.f32.xlu2 %v1725_v23 }
 0x2a2   : > { %v1240_v25 = vpop.xlane.xlu2 %1239 }
 0x2a3   : > { %3170 = vrcp.f32 %v1240_v25 }
 0x2a8   : > { %v977_v51 = vpop.xlane.xlu0 %976 }
 0x2a9   : > { %3172 = vrcp.f32 %v977_v51  ;;  %v3171_v13 = vpop.eup %3170 }
 0x2aa   : > { %v1270_v59 = vmul.f32 %v3171_v13, %v4128_v12 }
 0x2ac   : > { %v1278_v62 = vpack.c.bf16 %v1270_v59, %v1270_v59 }
 0x2ae   : > { %v1294_v19 = vunpack.c.l.b16 %v1278_v62 }
 0x2af   : > { %v3173_v46 = vpop.eup %3172 }
 0x2b0   : > { %v1243_v35 = vpop.xlane.xlu0 %1242  ;;  %v980_v17 = vpop.xlane.xlu1 %979  ;;  %v1007_v58 = vmul.f32 %v3173_v46, %v4135_v53 }
 0x2b1   : > { %3174 = vrcp.f32 %v1243_v35 }
 0x2b2   : > { %3176 = vrcp.f32 %v980_v17  ;;  %v1015_v42 = vpack.c.bf16 %v1007_v58, %v1007_v58 }
 0x2b4   : > { %v1031_v53 = vunpack.c.l.b16 %v1015_v42 }
 0x2b7   : > { %v3175_v15 = vpop.eup %3174 }
 0x2b8   : > { %v3177_v36 = vpop.eup %3176  ;;  %v1271_v33 = vmul.f32 %v3175_v15, %v4144_v9  ;;  %v1440_v37 = vpop.xlane.xlu0 %1439 }
 0x2b9   : > { %v1008_v48 = vmul.f32 %v3177_v36, %v4147_v45  ;;  %v1246_v22 = vpop.xlane.xlu1 %1245  ;;  %v1456_v57 = vsub.f32 %v4158_v1, %v1440_v37  ;;  %v983_v50 = vpop.xlane.xlu2 %982 }
 0x2ba   : > { %v1279_v0 = vpack.c.bf16 %v1271_v33, %v1271_v33  ;;  %3178 = vrcp.f32 %v1246_v22 }
 0x2bb   : > { %v1016_v3 = vpack.c.bf16 %v1008_v48, %v1008_v48  ;;  %v1467_v14 = vmul.f32 1.442695, %v1456_v57 }
 0x2bc   : > { %v1295_v12 = vunpack.c.l.b16 %v1279_v0 }
 0x2bd   : > { %v1032_v21 = vunpack.c.l.b16 %v1016_v3  ;;  %3180 = vpow2.f32 %v1467_v14 }
 0x2be   : > { %v1302_v41 = vpack.c.b16 %v1295_v12, %v1294_v19 }
 0x2bf   : > { %v1039_v30 = vpack.c.b16 %v1032_v21, %v1031_v53 }
 0x2c0   : > { %v1682_v9 = vpop.xlane.xlu0 %1681  ;;  %2835 = vmatmul.msk.bf16.vlgmr.msra.gmra.mxu2 %vm926_vm10, %v1302_v41  ;;  %v3179_v40 = vpop.eup %3178 }
 0x2c1   : > { %2831 = vmatmul.msk.bf16.vlgmr.msrb.gmra.mxu0 %vm926_vm10, %v1039_v30  ;;  %v1696_v45 = vsub.f32 %v4169_v20, %v1682_v9  ;;  %v1249_v1 = vpop.xlane.xlu2 %1248  ;;  %v1272_v51 = vmul.f32 %v3179_v40, %v4156_v4 }
 0x2c2   : > { %3182 = vrcp.f32 %v1249_v1 }
 0x2c3   : > { %v4294_v11 = vpop.eup %3180  ;;  %v1708_v23 = vmul.f32 1.442695, %v1696_v45  ;;  %3184 = vrcp.f32 %v983_v50  ;;  %v1280_v59 = vpack.c.bf16 %v1272_v51, %v1272_v51 }
 0x2c4   : > { %v1486_v25 = vsel %vm926_vm10, %v4294_v11, 0.0 }
 0x2c5   : > { %3186 = vpow2.f32 %v1708_v23  ;;  %1487 = vadd.xlane.f32.xlu1 %v1486_v25  ;;  %v1296_v4 = vunpack.c.l.b16 %v1280_v59 }
 0x2c8   : > { %v3183_v35 = vpop.eup %3182  ;;  %v989_v17 = vpop.xlane.xlu1 %988 }
 0x2c9   : > { %v986_v13 = vpop.xlane.xlu0 %985  ;;  %v1437_v46 = vpop.xlane.xlu2 %1436  ;;  %v1273_v20 = vmul.f32 %v3183_v35, %v4172_v39 }
 0x2ca   : > { %v3185_v58 = vpop.eup %3184  ;;  %3188 = vrcp.f32 %v986_v13  ;;  %v1455_v15 = vsub.f32 %v4142_v47, %v1437_v46 }
 0x2cb   : > { %v4301_v36 = vpop.eup %3186  ;;  %v1281_v62 = vpack.c.bf16 %v1273_v20, %v1273_v20  ;;  %v1009_v48 = vmul.f32 %v3185_v58, %v4160_v55 }
 0x2cc   : > { %v1465_v33 = vmul.f32 1.442695, %v1455_v15  ;;  %v1728_v37 = vsel %vm926_vm10, %v4301_v36, 0.0 }
 0x2cd   : > { %1729 = vadd.xlane.f32.xlu2 %v1728_v37  ;;  %v1297_v42 = vunpack.c.l.b16 %v1281_v62  ;;  %v1017_v3 = vpack.c.bf16 %v1009_v48, %v1009_v48 }
 0x2ce   : > { %3190 = vpow2.f32 %v1465_v33 }
 0x2cf   : > { %v1303_v22 = vpack.c.b16 %v1297_v42, %v1296_v4  ;;  %v1033_v21 = vunpack.c.l.b16 %v1017_v3 }
 0x2d0   : > { %v3189_v39 = vpop.eup %3188  ;;  %v1255_v57 = vpop.xlane.xlu1 %1254 }
 0x2d1   : > { %v1252_v50 = vpop.xlane.xlu0 %1251  ;;  %3192 = vrcp.f32 %v1255_v57  ;;  %2836 = vmatmul.msk.bf16.gmra.mxu2 %vm926_vm10, %v1303_v22  ;;  %v1446_v47 = vpop.xlane.xlu2 %1445  ;;  %v1010_v0 = vmul.f32 %v3189_v39, %v4182_v34 }
 0x2d2   : > { %3194 = vrcp.f32 %v1252_v50  ;;  %v1458_v14 = vsub.f32 %v4199_v8, %v1446_v47 }
 0x2d3   : > { %v1018_v19 = vpack.c.bf16 %v1010_v0, %v1010_v0  ;;  %3196 = vrcp.f32 %v989_v17 }
 0x2d4   : > { %v4309_v12 = vpop.eup %3190  ;;  %v1471_v55 = vmul.f32 1.442695, %v1458_v14 }
 0x2d5   : > { %v1483_v53 = vsel %vm926_vm10, %v4309_v12, 0.0  ;;  %v1034_v41 = vunpack.c.l.b16 %v1018_v19 }
 0x2d6   : > { %3198 = vpow2.f32 %v1471_v55  ;;  %1484 = vadd.xlane.f32.xlu0 %v1483_v53 }
 0x2d7   : > { %v3193_v30 = vpop.eup %3192  ;;  %v1040_v9 = vpack.c.b16 %v1034_v41, %v1033_v21 }
 0x2d8   : > { %v3195_v45 = vpop.eup %3194  ;;  %v1685_v34 = vpop.xlane.xlu1 %1684  ;;  %v1275_v40 = vmul.f32 %v3193_v30, %v4196_v7 }
 0x2d9   : > { %v995_v1 = vpop.xlane.xlu0 %994  ;;  %v1697_v8 = vsub.f32 %v4206_v31, %v1685_v34  ;;  %2832 = vmatmul.msk.bf16.gmra.mxu0 %vm926_vm10, %v1040_v9  ;;  %v992_v23 = vpop.xlane.xlu2 %991  ;;  %v1274_v25 = vmul.f32 %v3195_v45, %v4194_v49 }
 0x2da   : > { %v3197_v51 = vpop.eup %3196  ;;  %3200 = vrcp.f32 %v992_v23  ;;  %v1283_v35 = vpack.c.bf16 %v1275_v40, %v1275_v40 }
 0x2db   : > { %v1710_v17 = vmul.f32 1.442695, %v1697_v8  ;;  %v1282_v13 = vpack.c.bf16 %v1274_v25, %v1274_v25  ;;  %v1011_v31 = vmul.f32 %v3197_v51, %v4184_v56 }
 0x2dc   : > { %v4317_v46 = vpop.eup %3198  ;;  %v1299_v20 = vunpack.c.l.b16 %v1283_v35 }
 0x2dd   : > { %3202 = vpow2.f32 %v1710_v17  ;;  %v1492_v59 = vsel %vm926_vm10, %v4317_v46, 0.0  ;;  %v1298_v7 = vunpack.c.l.b16 %v1282_v13  ;;  %v1019_v42 = vpack.c.bf16 %v1011_v31, %v1011_v31 }
 0x2de   : > { %1493 = vadd.xlane.f32.xlu2 %v1492_v59 }
 0x2df   : > { %v1304_v58 = vpack.c.b16 %v1299_v20, %v1298_v7  ;;  %v1035_v57 = vunpack.c.l.b16 %v1019_v42 }
 0x2e0   : > { %v3201_v15 = vpop.eup %3200  ;;  %v1443_v49 = vpop.xlane.xlu1 %1442 }
 0x2e1   : > { %v1261_v62 = vpop.xlane.xlu0 %1260  ;;  %v1457_v33 = vsub.f32 %v4180_v52, %v1443_v49  ;;  %2837 = vmatmul.msk.bf16.gmra.mxu2 %vm926_vm10, %v1304_v58  ;;  %v1258_v37 = vpop.xlane.xlu2 %1257  ;;  %v1012_v4 = vmul.f32 %v3201_v15, %v4214_v2 }
 0x2e2   : > { %3204 = vrcp.f32 %v1261_v62 }
 0x2e3   : > { %3206 = vrcp.f32 %v1258_v37  ;;  %v4325_v48 = vpop.eup %3202  ;;  %v1469_v22 = vmul.f32 1.442695, %v1457_v33  ;;  %v1020_v56 = vpack.c.bf16 %v1012_v4, %v1012_v4 }
 0x2e4   : > { %3208 = vrcp.f32 %v995_v1  ;;  %v1731_v39 = vsel %vm926_vm10, %v4325_v48, 0.0 }
 0x2e5   : > { %3210 = vpow2.f32 %v1469_v22  ;;  %1732 = vadd.xlane.f32.xlu0 %v1731_v39  ;;  %v1036_v50 = vunpack.c.l.b16 %v1020_v56 }
 0x2e7   : > { %v1041_v47 = vpack.c.b16 %v1036_v50, %v1035_v57 }
 0x2e8   : > { %v3205_v52 = vpop.eup %3204  ;;  %v998_v14 = vpop.xlane.xlu1 %997 }
 0x2e9   : > { %v3207_v0 = vpop.eup %3206  ;;  %v1691_v3 = vpop.xlane.xlu0 %1690  ;;  %v1277_v2 = vmul.f32 %v3205_v52, %v4230_v60  ;;  %3212 = vrcp.f32 %v998_v14  ;;  %2833 = vmatmul.msk.bf16.gmra.mxu0 %vm926_vm10, %v1041_v47 }
 0x2ea   : > { %v3209_v19 = vpop.eup %3208  ;;  %v1699_v55 = vsub.f32 %v4241_v38, %v1691_v3  ;;  %v1688_v53 = vpop.xlane.xlu2 %1687  ;;  %v1276_v21 = vmul.f32 %v3207_v0, %v4228_v24 }
 0x2eb   : > { %v1698_v41 = vsub.f32 %v4226_v44, %v1688_v53  ;;  %v1285_v30 = vpack.c.bf16 %v1277_v2, %v1277_v2  ;;  %v4334_v9 = vpop.eup %3210  ;;  %v1013_v38 = vmul.f32 %v3209_v19, %v4217_v32 }
 0x2ec   : > { %v1714_v45 = vmul.f32 1.442695, %v1699_v55  ;;  %v1284_v34 = vpack.c.bf16 %v1276_v21, %v1276_v21  ;;  %v1489_v60 = vsel %vm926_vm10, %v4334_v9, 0.0 }
 0x2ed   : > { %v1712_v1 = vmul.f32 1.442695, %v1698_v41  ;;  %v1301_v40 = vunpack.c.l.b16 %v1285_v30  ;;  %1490 = vadd.xlane.f32.xlu1 %v1489_v60  ;;  %v1021_v35 = vpack.c.bf16 %v1013_v38, %v1013_v38 }
 0x2ee   : > { %3214 = vpow2.f32 %v1714_v45  ;;  %v1300_v8 = vunpack.c.l.b16 %v1284_v34 }
 0x2ef   : > { %3216 = vpow2.f32 %v1712_v1  ;;  %v3213_v23 = vpop.eup %3212  ;;  %v1037_v58 = vunpack.c.l.b16 %v1021_v35 }
 0x2f0   : > { %v1305_v24 = vpack.c.b16 %v1301_v40, %v1300_v8  ;;  %v1718_v44 = vpop.xlane.xlu1 %1717  ;;  %v1014_v51 = vmul.f32 %v3213_v23, %v4239_v54 }
 0x2f1   : > { %v1449_v25 = vpop.xlane.xlu0 %1448  ;;  %3218 = vrcp.f32 %v1718_v44 }
 0x2f2   : > { %v1459_v17 = vsub.f32 %v4252_v27, %v1449_v25  ;;  %2838 = vmatmul.msk.bf16.gmra.mxu2 %vm926_vm10, %v1305_v24  ;;  %v1721_v13 = vpop.xlane.xlu2 %1720  ;;  %v1022_v20 = vpack.c.bf16 %v1014_v51, %v1014_v51 }
 0x2f3   : > { %3220 = vrcp.f32 %v1721_v13 }
 0x2f4   : > { %v4342_v32 = vpop.eup %3214  ;;  %v1473_v59 = vmul.f32 1.442695, %v1459_v17  ;;  %v1038_v15 = vunpack.c.l.b16 %v1022_v20 }
 0x2f5   : > { %v4344_v7 = vpop.eup %3216  ;;  %v1737_v31 = vsel %vm926_vm10, %v4342_v32, 0.0 }
 0x2f6   : > { %3222 = vpow2.f32 %v1473_v59  ;;  %1738 = vadd.xlane.f32.xlu1 %v1737_v31  ;;  %v1734_v54 = vsel %vm926_vm10, %v4344_v7, 0.0  ;;  %v1042_v27 = vpack.c.b16 %v1038_v15, %v1037_v58 }
 0x2f7   : > { %1735 = vadd.xlane.f32.xlu0 %v1734_v54  ;;  %v3219_v62 = vpop.eup %3218 }
 0x2f8   : > { %v1748_v33 = vmul.f32 %v3219_v62, %v4254_v43  ;;  %v1452_v4 = vpop.xlane.xlu1 %1451  ;;  %v2980_v62 = vld [vmem:[#allocation9 + $0x38] sm:$0xff] }
 0x2f9   : > { %v3221_v49 = vpop.eup %3220  ;;  %v1482_v37 = vpop.xlane.xlu0 %1481  ;;  %v1460_v22 = vsub.f32 %v4268_v26, %v1452_v4  ;;  %2834 = vmatmul.msk.bf16.gmra.mxu0 %vm926_vm10, %v1042_v27  ;;  %1905 = vmatpush.bf16.msrb.mxu3 %v2980_v62 }
 0x2fa   : > { %v1749_v42 = vmul.f32 %v3221_v49, %v4256_v16  ;;  %3224 = vrcp.f32 %v1482_v37  ;;  %v1479_v56 = vpop.xlane.xlu2 %1478  ;;  %v1756_v39 = vpack.c.bf16 %v1748_v33, %v1748_v33 }
 0x2fb   : > { %3226 = vrcp.f32 %v1479_v56  ;;  %v1475_v52 = vmul.f32 1.442695, %v1460_v22  ;;  %v2979_v22 = vld [vmem:[#allocation9 + $0x30] sm:$0xff] }
 0x2fc   : > { %v4354_v57 = vpop.eup %3222  ;;  %v1757_v50 = vpack.c.bf16 %v1749_v42, %v1749_v42  ;;  %v1772_v47 = vunpack.c.l.b16 %v1756_v39 }
 0x2fd   : > { %v1495_v43 = vsel %vm926_vm10, %v4354_v57, 0.0  ;;  %3228 = vpow2.f32 %v1475_v52  ;;  %1906 = vmatpush.bf16.msrb.mxu3 %v2979_v22 }
 0x2fe   : > { %v1773_v0 = vunpack.c.l.b16 %v1757_v50  ;;  %1496 = vadd.xlane.f32.xlu2 %v1495_v43 }
 0x300   : > { %v3225_v16 = vpop.eup %3224  ;;  %v1780_v3 = vpack.c.b16 %v1773_v0, %v1772_v47  ;;  %v1724_v2 = vpop.xlane.xlu1 %1723  ;;  %v2978_v47 = vld [vmem:[#allocation9 + $0x28] sm:$0xff] }
 0x301   : > { %v3227_v14 = vpop.eup %3226  ;;  %v1510_v26 = vmul.f32 %v3225_v16, %v4266_v18  ;;  %3230 = vrcp.f32 %v1724_v2  ;;  %1907 = vmatpush.bf16.msrb.mxu3 %v2978_v47 }
 0x302   : > { %v1509_v19 = vmul.f32 %v3227_v14, %v4270_v28  ;;  %2843 = vmatmul.msk.bf16.vlgmr.msrb.gmra.mxu2 %vm926_vm10, %v1780_v3  ;;  %v1727_v55 = vpop.xlane.xlu2 %1726  ;;  %v2977_v3 = vld [vmem:[#allocation9 + $0x20] sm:$0xff] }
 0x303   : > { %v1518_v53 = vpack.c.bf16 %v1510_v26, %v1510_v26  ;;  %3232 = vrcp.f32 %v1727_v55  ;;  %v4361_v21 = vpop.eup %3228 }
 0x304   : > { %v1517_v41 = vpack.c.bf16 %v1509_v19, %v1509_v19  ;;  %v1498_v45 = vsel %vm926_vm10, %v4361_v21, 0.0 }
 0x305   : > { %v1534_v30 = vunpack.c.l.b16 %v1518_v53  ;;  %1499 = vadd.xlane.f32.xlu0 %v1498_v45  ;;  %1908 = vmatpush.bf16.msrb.mxu3 %v2977_v3 }
 0x306   : > { %v1533_v34 = vunpack.c.l.b16 %v1517_v41 }
 0x307   : > { %v3231_v1 = vpop.eup %3230 }
 0x308   : > { %v1541_v18 = vpack.c.b16 %v1534_v30, %v1533_v34  ;;  %v1750_v28 = vmul.f32 %v3231_v1, %v4278_v61  ;;  %v2976_v30 = vld [vmem:[#allocation9 + $0x18] sm:$0xff] }
 0x309   : > { %v3233_v60 = vpop.eup %3232  ;;  %1909 = vmatpush.bf16.msrb.mxu3 %v2976_v30 }
 0x30a   : > { %2839 = vmatmul.msk.bf16.vlgmr.msra.gmra.mxu0 %vm926_vm10, %v1541_v18  ;;  %v1751_v40 = vmul.f32 %v3233_v60, %v4280_v10  ;;  %v1758_v38 = vpack.c.bf16 %v1750_v28, %v1750_v28  ;;  %v2975_v28 = vld [vmem:[#allocation9 + $0x10] sm:$0xff] }
 0x30c   : > { %v1759_v8 = vpack.c.bf16 %v1751_v40, %v1751_v40  ;;  %v1774_v23 = vunpack.c.l.b16 %v1758_v38 }
 0x30d   : > { %1910 = vmatpush.bf16.msrb.mxu3 %v2975_v28 }
 0x30e   : > { %v1775_v24 = vunpack.c.l.b16 %v1759_v8 }
 0x310   : > { %v1781_v25 = vpack.c.b16 %v1775_v24, %v1774_v23 }
 0x312   : > { %2844 = vmatmul.msk.bf16.gmra.mxu2 %vm926_vm10, %v1781_v25 }
 0x338   : > { %v1488_v51 = vpop.xlane.xlu1 %1487 }
 0x339   : > { %3234 = vrcp.f32 %v1488_v51  ;;  %v2974_v51 = vld [vmem:[#allocation9 + $0x8] sm:$0xff] }
 0x33a   : > { %1911 = vmatpush.bf16.msrb.mxu3 %v2974_v51 }
 0x33e   : > { %v1088_v44 = vpop.f32.mrf.mxu0 }
 0x33f   : > { %v4371_v35 = vsel %vm829_vm8, %v1088_v44, 0.0  ;;  %v3235_v13 = vpop.eup %3234 }
 0x340   : > { %v1512_v59 = vmul.f32 %v3235_v13, %v4294_v11  ;;  %v1730_v15 = vpop.xlane.xlu2 %1729 }
 0x342   : > { %v1520_v27 = vpack.c.bf16 %v1512_v59, %v1512_v59 }
 0x343   : > { %v4373_v17 = vpop.f32.mrf.mxu2 }
 0x344   : > { %v1347_v61 = vsel %vm3903_vm9, %v4373_v17, %v4371_v35  ;;  %v1536_v4 = vunpack.c.l.b16 %v1520_v27 }
 0x346   : > { %v4382_v31 = vpop.f32.mrf.mxu0 }
 0x349   : > { %v1485_v10 = vpop.xlane.xlu0 %1484 }
 0x34a   : > { %3236 = vrcp.f32 %v1485_v10 }
 0x34b   : > { %v4379_v20 = vpop.f32.mrf.mxu2  ;;  %3238 = vrcp.f32 %v1730_v15 }
 0x350   : > { %v3237_v58 = vpop.eup %3236 }
 0x351   : > { %v1511_v54 = vmul.f32 %v3237_v58, %v4309_v12  ;;  %v1494_v39 = vpop.xlane.xlu2 %1493  ;;  %v3239_v52 = vpop.eup %3238 }
 0x352   : > { %v1752_v43 = vmul.f32 %v3239_v52, %v4301_v36 }
 0x353   : > { %v1519_v49 = vpack.c.bf16 %v1511_v54, %v1511_v54  ;;  %v2973_v54 = vld [vmem:[#allocation9] sm:$0xff] }
 0x354   : > { %v4385_v33 = vpop.f32.mrf.mxu2  ;;  %v1760_v2 = vpack.c.bf16 %v1752_v43, %v1752_v43  ;;  %1912 = vmatpush.bf16.msrb.mxu3 %v2973_v54 }
 0x355   : > { %v1535_v37 = vunpack.c.l.b16 %v1519_v49 }
 0x356   : > { %v1093_v42 = vpop.f32.mrf.mxu0  ;;  %v1776_v45 = vunpack.c.l.b16 %v1760_v2 }
 0x357   : > { %v4389_v11 = vsel %vm829_vm8, %v1093_v42, 0.0  ;;  %v1542_v56 = vpack.c.b16 %v1536_v4, %v1535_v37 }
 0x358   : > { %v1349_v12 = vsel %vm3903_vm9, %v4385_v33, %v4389_v11  ;;  %v1733_v50 = vpop.xlane.xlu0 %1732 }
 0x359   : > { %3240 = vrcp.f32 %v1733_v50  ;;  %2840 = vmatmul.msk.bf16.gmra.mxu0 %vm926_vm10, %v1542_v56 }
 0x35a   : > { %3242 = vrcp.f32 %v1494_v39 }
 0x35c   : > { %v4397_v0 = vpop.f32.mrf.mxu2 }
 0x35e   : > { %v1095_v16 = vpop.f32.mrf.mxu0 }
 0x35f   : > { %v3241_v14 = vpop.eup %3240  ;;  %v4401_v26 = vsel %vm829_vm8, %v1095_v16, 0.0 }
 0x360   : > { %v1753_v19 = vmul.f32 %v3241_v14, %v4325_v48  ;;  %v1350_v55 = vsel %vm3903_vm9, %v4397_v0, %v4401_v26  ;;  %v1491_v53 = vpop.xlane.xlu1 %1490  ;;  %v3243_v36 = vpop.eup %3242 }
 0x361   : > { %3244 = vrcp.f32 %v1491_v53  ;;  %v1514_v18 = vmul.f32 %v3243_v36, %v4317_v46 }
 0x362   : > { %v1761_v41 = vpack.c.bf16 %v1753_v19, %v1753_v19 }
 0x363   : > { %v1522_v46 = vpack.c.bf16 %v1514_v18, %v1514_v18 }
 0x364   : > { %v1777_v34 = vunpack.c.l.b16 %v1761_v41  ;;  %v4408_v1 = vpop.f32.mrf.mxu2 }
 0x365   : > { %v1538_v59 = vunpack.c.l.b16 %v1522_v46 }
 0x366   : > { %v1098_v60 = vpop.f32.mrf.mxu0  ;;  %v1782_v48 = vpack.c.b16 %v1777_v34, %v1776_v45 }
 0x367   : > { %v3245_v40 = vpop.eup %3244  ;;  %v4413_v38 = vsel %vm829_vm8, %v1098_v60, 0.0 }
 0x368   : > { %v1351_v8 = vsel %vm3903_vm9, %v4408_v1, %v4413_v38  ;;  %2845 = vmatmul.msk.bf16.gmra.mxu2 %vm926_vm10, %v1782_v48  ;;  %v1513_v24 = vmul.f32 %v3245_v40, %v4334_v9 }
 0x369   : > { %v1739_v23 = vpop.xlane.xlu1 %1738 }
 0x36a   : > { %3246 = vrcp.f32 %v1739_v23  ;;  %v1736_v25 = vpop.xlane.xlu0 %1735  ;;  %v1521_v44 = vpack.c.bf16 %v1513_v24, %v1513_v24 }
 0x36b   : > { %3248 = vrcp.f32 %v1736_v25 }
 0x36c   : > { %v4421_v10 = vpop.f32.mrf.mxu2  ;;  %v1537_v13 = vunpack.c.l.b16 %v1521_v44 }
 0x36e   : > { %v1100_v58 = vpop.f32.mrf.mxu0  ;;  %v1543_v15 = vpack.c.b16 %v1538_v59, %v1537_v13 }
 0x36f   : > { %v4425_v62 = vsel %vm829_vm8, %v1100_v58, 0.0 }
 0x370   : > { %v3247_v27 = vpop.eup %3246  ;;  %v1352_v37 = vsel %vm3903_vm9, %v4421_v10, %v4425_v62  ;;  %2841 = vmatmul.msk.bf16.gmra.mxu0 %vm926_vm10, %v1543_v15 }
 0x371   : > { %v3249_v9 = vpop.eup %3248  ;;  %v1755_v49 = vmul.f32 %v3247_v27, %v4342_v32  ;;  %v1497_v4 = vpop.xlane.xlu2 %1496 }
 0x372   : > { %v1754_v42 = vmul.f32 %v3249_v9, %v4344_v7  ;;  %3250 = vrcp.f32 %v1497_v4 }
 0x373   : > { %v1763_v22 = vpack.c.bf16 %v1755_v49, %v1755_v49 }
 0x374   : > { %v1762_v56 = vpack.c.bf16 %v1754_v42, %v1754_v42  ;;  %v4507_v42 = vld [vmem:[%s4789_s4] ss:$0 sm:$0xff] }
 0x375   : > { %v1779_v39 = vunpack.c.l.b16 %v1763_v22  ;;  %v1342_v50 = vpop.f32.mrf.mxu2 }
 0x376   : > { %v1778_v52 = vunpack.c.l.b16 %v1762_v56  ;;  %v1103_v47 = vpop.f32.mrf.mxu0 }
 0x377   : > { %v1114_v32 = vsel %vm829_vm8, %v1103_v47, 0.0  ;;  %v3287_v47 = vld [vmem:[%s3764_s9 + $0x8] sm:$0xff] }
 0x378   : > { %v1783_v43 = vpack.c.b16 %v1779_v39, %v1778_v52  ;;  %v1353_v16 = vsel %vm3903_vm9, %v1342_v50, %v1114_v32  ;;  %v1500_v3 = vpop.xlane.xlu0 %1499  ;;  %v3251_v14 = vpop.eup %3250 }
 0x379   : > { %3252 = vrcp.f32 %v1500_v3  ;;  %v1515_v2 = vmul.f32 %v3251_v14, %v4354_v57  ;;  %v1109_v57 = vsel %vm829_vm8, %v4382_v31, 0.0  ;;  %v3288_v14 = vld [vmem:[%s3764_s9 + $0x10] sm:$0xff] }
 0x37a   : > { %2846 = vmatmul.msk.bf16.gmra.mxu2 %vm926_vm10, %v1783_v43  ;;  %v1348_v23 = vsel %vm3903_vm9, %v4379_v20, %v1109_v57 }
 0x37b   : > { %v1523_v45 = vpack.c.bf16 %v1515_v2, %v1515_v2 }
 0x37d   : > { %v1344_v7 = vpop.f32.mrf.mxu2  ;;  %v1539_v18 = vunpack.c.l.b16 %v1523_v45  ;;  %v2988_v45 = vld [vmem:[#allocation11 + $0x38] sm:$0xff] }
 0x37e   : > { %v1105_v19 = vpop.f32.mrf.mxu0  ;;  %2214 = vmatpush.bf16.msrb.mxu0 %v2988_v45 }
 0x37f   : > { %v3253_v53 = vpop.eup %3252  ;;  %v1115_v36 = vsel %vm829_vm8, %v1105_v19, 0.0 }
 0x380   : > { %v1354_v41 = vsel %vm3903_vm9, %v1344_v7, %v1115_v36  ;;  %v1516_v30 = vmul.f32 %v3253_v53, %v4361_v21  ;;  %v3289_v36 = vld [vmem:[%s3764_s9 + $0x18] sm:$0xff] }
 0x382   : > { %v1524_v34 = vpack.c.bf16 %v1516_v30, %v1516_v30 }
 0x384   : > { %v1540_v60 = vunpack.c.l.b16 %v1524_v34  ;;  %v2987_v34 = vld [vmem:[#allocation11 + $0x30] sm:$0xff] }
 0x385   : > { %v1805_v48 = vpop.f32.mrf.mxu2  ;;  %2215 = vmatpush.bf16.msrb.mxu0 %v2987_v34 }
 0x386   : > { %v1544_v40 = vpack.c.b16 %v1540_v60, %v1539_v18 }
 0x387   : > { %v1566_v28 = vpop.f32.mrf.mxu0 }
 0x388   : > { %2842 = vmatmul.msk.bf16.gmra.mxu0 %vm926_vm10, %v1544_v40  ;;  %v1586_v21 = vsel %vm3822_vm4, %v1566_v28, %v1347_v61  ;;  %v2986_v40 = vld [vmem:[#allocation11 + $0x28] sm:$0xff] }
 0x389   : > { %v1825_v63 = vsel %vm3826_vm5, %v1805_v48, %v1586_v21  ;;  %v3290_v48 = vld [vmem:[%s3764_s9 + $0x20] sm:$0xff]  ;;  %2216 = vmatpush.bf16.msrb.mxu0 %v2986_v40 }
 0x38a   : > { %v2985_v21 = vld [vmem:[#allocation11 + $0x20] sm:$0xff] }
 0x38d   : > { %v1807_v46 = vpop.f32.mrf.mxu2  ;;  %2217 = vmatpush.bf16.msrb.mxu0 %v2985_v21 }
 0x38f   : > { %v1568_v24 = vpop.f32.mrf.mxu0 }
 0x390   : > { %v1587_v25 = vsel %vm3822_vm4, %v1568_v24, %v1348_v23 }
 0x391   : > { %v1826_v31 = vsel %vm3826_vm5, %v1807_v46, %v1587_v25  ;;  %v3291_v46 = vld [vmem:[%s3764_s9 + $0x28] sm:$0xff] }
 0x392   : > { %v1833_v44 = vpack.c.bf16 %v1826_v31, %v1825_v63  ;;  %v2984_v63 = vld [vmem:[#allocation11 + $0x18] sm:$0xff] }
 0x393   : > { %2218 = vmatpush.bf16.msrb.mxu0 %v2984_v63 }
 0x394   : > { %1913 = vmatmul.bf16.vlgmr.msrb.gmra.mxu3 %v1833_v44  ;;  %v2983_v44 = vld [vmem:[#allocation11 + $0x10] sm:$0xff] }
 0x395   : > { %v1810_v35 = vpop.f32.mrf.mxu2 }
 0x397   : > { %2219 = vmatpush.bf16.msrb.mxu0 %v2983_v44 }
 0x39d   : > { %v1812_v51 = vpop.f32.mrf.mxu2 }
 0x3d6   : > { %v1571_v17 = vpop.f32.mrf.mxu0 }
 0x3d7   : > { %v1588_v61 = vsel %vm3822_vm4, %v1571_v17, %v1349_v12 }
 0x3d8   : > { %v1827_v13 = vsel %vm3826_vm5, %v1810_v35, %v1588_v61 }
 0x3de   : > { %v1573_v20 = vpop.f32.mrf.mxu0 }
 0x3df   : > { %v1589_v10 = vsel %vm3822_vm4, %v1573_v20, %v1350_v55  ;;  %v2982_v20 = vld [vmem:[#allocation11 + $0x8] sm:$0xff] }
 0x3e0   : > { %v1828_v59 = vsel %vm3826_vm5, %v1812_v51, %v1589_v10  ;;  %2220 = vmatpush.bf16.msrb.mxu0 %v2982_v20 }
 0x3e1   : > { %v1834_v33 = vpack.c.bf16 %v1828_v59, %v1827_v13  ;;  %v2981_v13 = vld [vmem:[#allocation11] sm:$0xff] }
 0x3e3   : > { %1918 = vmatmul.bf16.gmra.mxu3 %v1834_v33 }
 0x3e4   : > { %2221 = vmatpush.bf16.msrb.mxu0 %v2981_v13 }
 0x3eb   : > { %v1815_v11 = vpop.f32.mrf.mxu2 }
 0x3ed   : > { %v1576_v12 = vpop.f32.mrf.mxu0 }
 0x3ee   : > { %v1590_v0 = vsel %vm3822_vm4, %v1576_v12, %v1351_v8 }
 0x3ef   : > { %v1829_v15 = vsel %vm3826_vm5, %v1815_v11, %v1590_v0 }
 0x3f3   : > { %v1817_v55 = vpop.f32.mrf.mxu2 }
 0x3f5   : > { %v1578_v26 = vpop.f32.mrf.mxu0 }
 0x3f6   : > { %v1591_v58 = vsel %vm3822_vm4, %v1578_v26, %v1352_v37 }
 0x3f7   : > { %v1830_v54 = vsel %vm3826_vm5, %v1817_v55, %v1591_v58  ;;  %v3292_v55 = vld [vmem:[%s3764_s9 + $0x30] sm:$0xff] }
 0x3f8   : > { %v1835_v27 = vpack.c.bf16 %v1830_v54, %v1829_v15 }
 0x3fa   : > { %1923 = vmatmul.bf16.gmra.mxu3 %v1835_v27 }
 0x3fd   : > { %v1820_v29 = vpop.f32.mrf.mxu2 }
 0x405   : > { %v1581_v62 = vpop.f32.mrf.mxu0  ;;  %v1822_v8 = vpop.f32.mrf.mxu2 }
 0x406   : > { %v1592_v1 = vsel %vm3822_vm4, %v1581_v62, %v1353_v16 }
 0x407   : > { %v1831_v49 = vsel %vm3826_vm5, %v1820_v29, %v1592_v1 }
 0x40d   : > { %v1583_v38 = vpop.f32.mrf.mxu0 }
 0x40e   : > { %v1593_v9 = vsel %vm3822_vm4, %v1583_v38, %v1354_v41 }
 0x40f   : > { %v1832_v37 = vsel %vm3826_vm5, %v1822_v8, %v1593_v9 }
 0x410   : > { %v1836_v4 = vpack.c.bf16 %v1832_v37, %v1831_v49 }
 0x412   : > { %1928 = vmatmul.bf16.gmra.mxu3 %v1836_v4  ;;  %v3293_v4 = vld [vmem:[%s3764_s9 + $0x38] sm:$0xff]  ;;  %s3494_s9 = scalar_lea.hbm %s4828_s18, 32 }
 0x417   : > { %v1914_v22 = vpop.f32.mrf.mxu3 }
 0x418   : > { %v1915_v56 = vadd.f32 %v4507_v42, %v1914_v22 }
 0x41a   : > { %v4511_v39 = vadd.f32 %v3286_v5, %v1915_v56 }
 0x41c   : > { %1942 = vadd.xlane.f32.xlu1 %v4511_v39  ;;  %v1966_v6 = vmul.f32 %v4511_v39, %v4511_v39 }
 0x41e   : > { %1974 = vadd.xlane.f32.xlu0 %v1966_v6 }
 0x41f   : > { %v1916_v50 = vpop.f32.mrf.mxu3 }
 0x420   : > { %v1917_v52 = vadd.f32 %v4507_v42, %v1916_v50 }
 0x422   : > { %v4518_v32 = vadd.f32 %v3287_v47, %v1917_v52 }
 0x424   : > { %1944 = vadd.xlane.f32.xlu2 %v4518_v32  ;;  %v1967_v43 = vmul.f32 %v4518_v32, %v4518_v32 }
 0x426   : > { %1976 = vadd.xlane.f32.xlu1 %v1967_v43 }
 0x466   : > { %v1919_v16 = vpop.f32.mrf.mxu3 }
 0x467   : > { %v1920_v3 = vadd.f32 %v4507_v42, %v1919_v16 }
 0x469   : > { %v4525_v7 = vadd.f32 %v3288_v14, %v1920_v3 }
 0x46b   : > { %1946 = vadd.xlane.f32.xlu2 %v4525_v7  ;;  %v1968_v2 = vmul.f32 %v4525_v7, %v4525_v7 }
 0x46d   : > { %1978 = vadd.xlane.f32.xlu1 %v1968_v2 }
 0x46e   : > { %v1921_v19 = vpop.f32.mrf.mxu3 }
 0x46f   : > { %v1922_v53 = vadd.f32 %v4507_v42, %v1921_v19  ;;  %v4569_v19 = vld [vmem:[%s4790_s5] ss:$0 sm:$0xff] }
 0x471   : > { %v4532_v41 = vadd.f32 %v3289_v36, %v1922_v53 }
 0x473   : > { %1948 = vadd.xlane.f32.xlu0 %v4532_v41  ;;  %v1969_v30 = vmul.f32 %v4532_v41, %v4532_v41 }
 0x475   : > { %1980 = vadd.xlane.f32.xlu2 %v1969_v30 }
 0x47d   : > { %v1924_v18 = vpop.f32.mrf.mxu3 }
 0x47e   : > { %v1925_v60 = vadd.f32 %v4507_v42, %v1924_v18 }
 0x480   : > { %v4539_v28 = vadd.f32 %v3290_v48, %v1925_v60 }
 0x482   : > { %1950 = vadd.xlane.f32.xlu0 %v4539_v28  ;;  %v1970_v57 = vmul.f32 %v4539_v28, %v4539_v28 }
 0x484   : > { %1982 = vadd.xlane.f32.xlu2 %v1970_v57 }
 0x485   : > { %v1926_v23 = vpop.f32.mrf.mxu3 }
 0x486   : > { %v1927_v24 = vadd.f32 %v4507_v42, %v1926_v23 }
 0x488   : > { %v4546_v25 = vadd.f32 %v3291_v46, %v1927_v24 }
 0x48a   : > { %1952 = vadd.xlane.f32.xlu1 %v4546_v25  ;;  %v1971_v31 = vmul.f32 %v4546_v25, %v4546_v25 }
 0x48c   : > { %1984 = vadd.xlane.f32.xlu0 %v1971_v31 }
 0x48f   : > { %v1943_v35 = vpop.xlane.xlu1 %1942 }
 0x490   : > { %v1958_v17 = vmul.f32 0.03125, %v1943_v35 }
 0x491   : > { %v1975_v61 = vpop.xlane.xlu0 %1974 }
 0x492   : > { %v1998_v51 = vmul.f32 %v1958_v17, %v1958_v17  ;;  %v1990_v10 = vmul.f32 0.03125, %v1975_v61  ;;  %v2014_v3 = vsub.f32 %v4511_v39, %v1958_v17  ;;  %v4576_v39 = vld [vmem:[%s4791_s6] ss:$0 sm:$0xff] }
 0x494   : > { %v2006_v59 = vsub.f32 %v1990_v10, %v1998_v51 }
 0x495   : > { %v1929_v11 = vpop.f32.mrf.mxu3 }
 0x496   : > { %v2022_v33 = vadd.f32 1e-05, %v2006_v59  ;;  %v1930_v12 = vadd.f32 %v4507_v42, %v1929_v11 }
 0x497   : > { %v1945_v0 = vpop.xlane.xlu2 %1944 }
 0x498   : > { %3254 = vrsqrt.f32 %v2022_v33  ;;  %v1959_v26 = vmul.f32 0.03125, %v1945_v0  ;;  %v4553_v58 = vadd.f32 %v3292_v55, %v1930_v12  ;;  %vm2036_vm12 = vweird.f32 %v2022_v33 }
 0x499   : > { %v1977_v15 = vpop.xlane.xlu1 %1976 }
 0x49a   : > { %v1999_v54 = vmul.f32 %v1959_v26, %v1959_v26  ;;  %v1991_v27 = vmul.f32 0.03125, %v1977_v15  ;;  %1954 = vadd.xlane.f32.xlu1 %v4553_v58  ;;  %v1972_v29 = vmul.f32 %v4553_v58, %v4553_v58  ;;  %v2015_v36 = vsub.f32 %v4518_v32, %v1959_v26 }
 0x49c   : > { %v2007_v62 = vsub.f32 %v1991_v27, %v1999_v54  ;;  %1986 = vadd.xlane.f32.xlu0 %v1972_v29 }
 0x49d   : > { %v1931_v8 = vpop.f32.mrf.mxu3 }
 0x49e   : > { %v3255_v1 = vpop.eup %3254  ;;  %v2023_v38 = vadd.f32 1e-05, %v2007_v62  ;;  %v1932_v49 = vadd.f32 %v4507_v42, %v1931_v8 }
 0x49f   : > { %v2031_v9 = vmul.f32 %v3255_v1, %v2022_v33  ;;  %vm2037_vm11 = vweird.f32 %v3255_v1 }
 0x4a0   : > { %3256 = vrsqrt.f32 %v2023_v38  ;;  %v4560_v22 = vadd.f32 %v3293_v4, %v1932_v49  ;;  %vm2038_vm13 = vmor %vm2036_vm12, %vm2037_vm11  ;;  %vm2046_vm15 = vweird.f32 %v2023_v38 }
 0x4a1   : > { %v2032_v37 = vmul.f32 %v3255_v1, %v2031_v9 }
 0x4a2   : > { %1956 = vadd.xlane.f32.xlu2 %v4560_v22  ;;  %v1973_v5 = vmul.f32 %v4560_v22, %v4560_v22 }
 0x4a3   : > { %v2033_v56 = vmul.f32 0.5, %v2032_v37 }
 0x4a4   : > { %1988 = vadd.xlane.f32.xlu1 %v1973_v5 }
 0x4a5   : > { %v2034_v6 = vsub.f32 1.5, %v2033_v56 }
 0x4a6   : > { %v3257_v50 = vpop.eup %3256 }
 0x4a7   : > { %v2035_v52 = vmul.f32 %v3255_v1, %v2034_v6  ;;  %v2041_v47 = vmul.f32 %v3257_v50, %v2023_v38  ;;  %vm2047_vm14 = vweird.f32 %v3257_v50 }
 0x4a8   : > { %vm2048_vm0 = vmor %vm2046_vm15, %vm2047_vm14 }
 0x4a9   : > { %v2042_v43 = vmul.f32 %v3257_v50, %v2041_v47  ;;  %v2039_v42 = vsel %vm2038_vm13, %v3255_v1, %v2035_v52 }
 0x4aa   : > { %v2110_v2 = vmul.f32 %v2039_v42, %v2014_v3 }
 0x4ab   : > { %v2043_v16 = vmul.f32 0.5, %v2042_v43 }
 0x4ac   : > { %v2122_v34 = vmul.f32 %v4569_v19, %v2110_v2 }
 0x4ad   : > { %v2044_v14 = vsub.f32 1.5, %v2043_v16 }
 0x4ae   : > { %v4580_v60 = vadd.f32 %v4576_v39, %v2122_v34 }
 0x4af   : > { %v2045_v53 = vmul.f32 %v3257_v50, %v2044_v14 }
 0x4b1   : > { %v2049_v30 = vsel %vm2048_vm0, %v3257_v50, %v2045_v53 }
 0x4b2   : > { %v2111_v45 = vmul.f32 %v2049_v30, %v2015_v36 }
 0x4b4   : > { %v2123_v18 = vmul.f32 %v4569_v19, %v2111_v45  ;;  %v2996_v45 = vld [vmem:[#allocation12 + $0x38] sm:$0xff] }
 0x4b5   : > { %2323 = vmatpush.bf16.msrb.mxu1 %v2996_v45 }
 0x4b6   : > { %v4583_v48 = vadd.f32 %v4576_v39, %v2123_v18 }
 0x4b8   : > { %v2142_v32 = vpack.c.bf16 %v4583_v48, %v4580_v60 }
 0x4ba   : > { %2222 = vmatmul.bf16.vlgmr.msrb.gmra.mxu0 %v2142_v32 }
 0x4de   : > { %v1947_v40 = vpop.xlane.xlu2 %1946 }
 0x4df   : > { %v1960_v57 = vmul.f32 0.03125, %v1947_v40  ;;  %v2995_v40 = vld [vmem:[#allocation12 + $0x30] sm:$0xff] }
 0x4e0   : > { %v1979_v21 = vpop.xlane.xlu1 %1978  ;;  %2324 = vmatpush.bf16.msrb.mxu1 %v2995_v40 }
 0x4e1   : > { %v2000_v23 = vmul.f32 %v1960_v57, %v1960_v57  ;;  %v1992_v24 = vmul.f32 0.03125, %v1979_v21  ;;  %v2016_v9 = vsub.f32 %v4525_v7, %v1960_v57 }
 0x4e3   : > { %v2008_v46 = vsub.f32 %v1992_v24, %v2000_v23 }
 0x4e5   : > { %v2024_v63 = vadd.f32 1e-05, %v2008_v46 }
 0x4e6   : > { %v1949_v31 = vpop.xlane.xlu0 %1948 }
 0x4e7   : > { %3258 = vrsqrt.f32 %v2024_v63  ;;  %v1961_v44 = vmul.f32 0.03125, %v1949_v31  ;;  %vm2056_vm2 = vweird.f32 %v2024_v63  ;;  %v2994_v31 = vld [vmem:[#allocation12 + $0x28] sm:$0xff] }
 0x4e8   : > { %v1981_v35 = vpop.xlane.xlu2 %1980  ;;  %2325 = vmatpush.bf16.msrb.mxu1 %v2994_v31 }
 0x4e9   : > { %v2001_v17 = vmul.f32 %v1961_v44, %v1961_v44  ;;  %v1993_v61 = vmul.f32 0.03125, %v1981_v35  ;;  %v2017_v50 = vsub.f32 %v4532_v41, %v1961_v44 }
 0x4eb   : > { %v2009_v20 = vsub.f32 %v1993_v61, %v2001_v17 }
 0x4ed   : > { %v3259_v51 = vpop.eup %3258  ;;  %v2025_v10 = vadd.f32 1e-05, %v2009_v20  ;;  %v2993_v20 = vld [vmem:[#allocation12 + $0x20] sm:$0xff] }
 0x4ee   : > { %v2051_v13 = vmul.f32 %v3259_v51, %v2024_v63  ;;  %vm2057_vm1 = vweird.f32 %v3259_v51  ;;  %2326 = vmatpush.bf16.msrb.mxu1 %v2993_v20 }
 0x4ef   : > { %3260 = vrsqrt.f32 %v2025_v10  ;;  %vm2058_vm3 = vmor %vm2056_vm2, %vm2057_vm1  ;;  %vm2066_vm5 = vweird.f32 %v2025_v10 }
 0x4f0   : > { %v2052_v59 = vmul.f32 %v3259_v51, %v2051_v13 }
 0x4f2   : > { %v2053_v33 = vmul.f32 0.5, %v2052_v59 }
 0x4f4   : > { %v2054_v11 = vsub.f32 1.5, %v2053_v33 }
 0x4f5   : > { %v3261_v12 = vpop.eup %3260  ;;  %v1951_v0 = vpop.xlane.xlu0 %1950 }
 0x4f6   : > { %v2055_v26 = vmul.f32 %v3259_v51, %v2054_v11  ;;  %v2061_v55 = vmul.f32 %v3261_v12, %v2025_v10  ;;  %v4587_v15 = vmul.f32 0.03125, %v1951_v0  ;;  %vm2067_vm4 = vweird.f32 %v3261_v12 }
 0x4f7   : > { %v1983_v54 = vpop.xlane.xlu2 %1982  ;;  %vm2068_vm6 = vmor %vm2066_vm5, %vm2067_vm4 }
 0x4f8   : > { %v2062_v27 = vmul.f32 %v3261_v12, %v2061_v55  ;;  %v2002_v29 = vmul.f32 %v4587_v15, %v4587_v15  ;;  %v1994_v62 = vmul.f32 0.03125, %v1983_v54  ;;  %v2059_v8 = vsel %vm2058_vm3, %v3259_v51, %v2055_v26 }
 0x4f9   : > { %v2112_v56 = vmul.f32 %v2059_v8, %v2016_v9  ;;  %v2018_v13 = vsub.f32 %v4539_v28, %v4587_v15  ;;  %v2991_v8 = vld [vmem:[#allocation12 + $0x10] sm:$0xff] }
 0x4fa   : > { %v2063_v1 = vmul.f32 0.5, %v2062_v27  ;;  %v2010_v38 = vsub.f32 %v1994_v62, %v2002_v29  ;;  %v2992_v27 = vld [vmem:[#allocation12 + $0x18] sm:$0xff] }
 0x4fb   : > { %v2124_v16 = vmul.f32 %v4569_v19, %v2112_v56  ;;  %2327 = vmatpush.bf16.msrb.mxu1 %v2992_v27 }
 0x4fc   : > { %v2064_v49 = vsub.f32 1.5, %v2063_v1  ;;  %v2026_v37 = vadd.f32 1e-05, %v2010_v38 }
 0x4fd   : > { %v1953_v4 = vpop.xlane.xlu1 %1952  ;;  %v4600_v30 = vadd.f32 %v4576_v39, %v2124_v16 }
 0x4fe   : > { %v2065_v5 = vmul.f32 %v3261_v12, %v2064_v49  ;;  %3262 = vrsqrt.f32 %v2026_v37  ;;  %v4592_v6 = vmul.f32 0.03125, %v1953_v4  ;;  %vm2076_vm8 = vweird.f32 %v2026_v37 }
 0x4ff   : > { %v1985_v52 = vpop.xlane.xlu0 %1984  ;;  %2328 = vmatpush.bf16.msrb.mxu1 %v2991_v8 }
 0x500   : > { %v2003_v47 = vmul.f32 %v4592_v6, %v4592_v6  ;;  %v1995_v43 = vmul.f32 0.03125, %v1985_v52  ;;  %v2069_v42 = vsel %vm2068_vm6, %v3261_v12, %v2065_v5  ;;  %v2019_v55 = vsub.f32 %v4546_v25, %v4592_v6 }
 0x501   : > { %v2113_v7 = vmul.f32 %v2069_v42, %v2017_v50  ;;  %v2990_v50 = vld [vmem:[#allocation12 + $0x8] sm:$0xff] }
 0x502   : > { %v2011_v3 = vsub.f32 %v1995_v43, %v2003_v47  ;;  %v2989_v43 = vld [vmem:[#allocation12] sm:$0xff] }
 0x503   : > { %v2125_v14 = vmul.f32 %v4569_v19, %v2113_v7  ;;  %2329 = vmatpush.bf16.msrb.mxu1 %v2990_v50 }
 0x504   : > { %v3263_v2 = vpop.eup %3262  ;;  %v2027_v53 = vadd.f32 1e-05, %v2011_v3 }
 0x505   : > { %v2071_v36 = vmul.f32 %v3263_v2, %v2026_v37  ;;  %v4603_v41 = vadd.f32 %v4576_v39, %v2125_v14  ;;  %vm2077_vm7 = vweird.f32 %v3263_v2 }
 0x506   : > { %3264 = vrsqrt.f32 %v2027_v53  ;;  %vm2078_vm9 = vmor %vm2076_vm8, %vm2077_vm7  ;;  %vm2086_vm11 = vweird.f32 %v2027_v53 }
 0x507   : > { %v2072_v34 = vmul.f32 %v3263_v2, %v2071_v36  ;;  %v2143_v18 = vpack.c.bf16 %v4603_v41, %v4600_v30  ;;  %2330 = vmatpush.bf16.msrb.mxu1 %v2989_v43 }
 0x509   : > { %v2073_v32 = vmul.f32 0.5, %v2072_v34  ;;  %2227 = vmatmul.bf16.gmra.mxu0 %v2143_v18 }
 0x50b   : > { %v2074_v57 = vsub.f32 1.5, %v2073_v32 }
 0x50c   : > { %v3265_v21 = vpop.eup %3264 }
 0x50d   : > { %v2075_v23 = vmul.f32 %v3263_v2, %v2074_v57  ;;  %v2081_v24 = vmul.f32 %v3265_v21, %v2027_v53  ;;  %v1955_v46 = vpop.xlane.xlu1 %1954  ;;  %vm2087_vm10 = vweird.f32 %v3265_v21 }
 0x50e   : > { %v4607_v63 = vmul.f32 0.03125, %v1955_v46  ;;  %vm2088_vm12 = vmor %vm2086_vm11, %vm2087_vm10 }
 0x50f   : > { %v2082_v44 = vmul.f32 %v3265_v21, %v2081_v24  ;;  %v1987_v35 = vpop.xlane.xlu0 %1986  ;;  %v2079_v51 = vsel %vm2078_vm9, %v3263_v2, %v2075_v23 }
 0x510   : > { %v2004_v17 = vmul.f32 %v4607_v63, %v4607_v63  ;;  %v1996_v61 = vmul.f32 0.03125, %v1987_v35  ;;  %v2114_v12 = vmul.f32 %v2079_v51, %v2018_v13  ;;  %v2020_v36 = vsub.f32 %v4553_v58, %v4607_v63 }
 0x511   : > { %v2083_v10 = vmul.f32 0.5, %v2082_v44 }
 0x512   : > { %v2012_v59 = vsub.f32 %v1996_v61, %v2004_v17  ;;  %v2126_v38 = vmul.f32 %v4569_v19, %v2114_v12 }
 0x513   : > { %v2084_v33 = vsub.f32 1.5, %v2083_v10 }
 0x514   : > { %v2028_v11 = vadd.f32 1e-05, %v2012_v59  ;;  %v4618_v25 = vadd.f32 %v4576_v39, %v2126_v38 }
 0x515   : > { %v2085_v0 = vmul.f32 %v3265_v21, %v2084_v33  ;;  %v1957_v26 = vpop.xlane.xlu2 %1956 }
 0x516   : > { %3266 = vrsqrt.f32 %v2028_v11  ;;  %v1965_v54 = vmul.f32 0.03125, %v1957_v26  ;;  %vm2096_vm14 = vweird.f32 %v2028_v11 }
 0x517   : > { %v2089_v29 = vsel %vm2088_vm12, %v3265_v21, %v2085_v0  ;;  %v1989_v62 = vpop.xlane.xlu1 %1988 }
 0x518   : > { %v2005_v1 = vmul.f32 %v1965_v54, %v1965_v54  ;;  %v1997_v28 = vmul.f32 0.03125, %v1989_v62  ;;  %v2115_v15 = vmul.f32 %v2089_v29, %v2019_v55  ;;  %v2021_v32 = vsub.f32 %v4560_v22, %v1965_v54  ;;  %v3122_v22 = vld [vmem:[%s4793_s8] ss:$0 sm:$0xff] }
 0x51a   : > { %v2013_v9 = vsub.f32 %v1997_v28, %v2005_v1  ;;  %v2127_v49 = vmul.f32 %v4569_v19, %v2115_v15  ;;  %v4644_v15 = vld [vmem:[%s4795_s10] ss:$0 sm:$0xff] }
 0x51c   : > { %v3267_v37 = vpop.eup %3266  ;;  %v2029_v4 = vadd.f32 1e-05, %v2013_v9  ;;  %v4621_v56 = vadd.f32 %v4576_v39, %v2127_v49 }
 0x51d   : > { %v2091_v5 = vmul.f32 %v3267_v37, %v2028_v11  ;;  %vm2097_vm13 = vweird.f32 %v3267_v37 }
 0x51e   : > { %3268 = vrsqrt.f32 %v2029_v4  ;;  %v2144_v6 = vpack.c.bf16 %v4621_v56, %v4618_v25  ;;  %vm2098_vm15 = vmor %vm2096_vm14, %vm2097_vm13  ;;  %vm2106_vm1 = vweird.f32 %v2029_v4 }
 0x51f   : > { %v2092_v52 = vmul.f32 %v3267_v37, %v2091_v5 }
 0x520   : > { %2232 = vmatmul.bf16.gmra.mxu0 %v2144_v6 }
 0x521   : > { %v2093_v47 = vmul.f32 0.5, %v2092_v52 }
 0x523   : > { %v2094_v42 = vsub.f32 1.5, %v2093_v47 }
 0x524   : > { %v3269_v7 = vpop.eup %3268 }
 0x525   : > { %v2095_v16 = vmul.f32 %v3267_v37, %v2094_v42  ;;  %v2101_v3 = vmul.f32 %v3269_v7, %v2029_v4  ;;  %vm2107_vm0 = vweird.f32 %v3269_v7 }
 0x526   : > { %vm2108_vm2 = vmor %vm2106_vm1, %vm2107_vm0 }
 0x527   : > { %v2102_v14 = vmul.f32 %v3269_v7, %v2101_v3  ;;  %v2099_v2 = vsel %vm2098_vm15, %v3267_v37, %v2095_v16 }
 0x528   : > { %v2116_v34 = vmul.f32 %v2099_v2, %v2020_v36 }
 0x529   : > { %v2103_v53 = vmul.f32 0.5, %v2102_v14 }
 0x52a   : > { %v2128_v21 = vmul.f32 %v4569_v19, %v2116_v34 }
 0x52b   : > { %v2104_v45 = vsub.f32 1.5, %v2103_v53 }
 0x52c   : > { %v4631_v24 = vadd.f32 %v4576_v39, %v2128_v21 }
 0x52d   : > { %v2105_v18 = vmul.f32 %v3269_v7, %v2104_v45 }
 0x52f   : > { %v2109_v40 = vsel %vm2108_vm2, %v3269_v7, %v2105_v18 }
 0x530   : > { %v2117_v57 = vmul.f32 %v2109_v40, %v2021_v32 }
 0x532   : > { %v2129_v23 = vmul.f32 %v4569_v19, %v2117_v57 }
 0x534   : > { %v4634_v46 = vadd.f32 %v4576_v39, %v2129_v23 }
 0x536   : > { %v2145_v63 = vpack.c.bf16 %v4634_v46, %v4631_v24 }
 0x537   : > { %v2223_v58 = vpop.f32.mrf.mxu0 }
 0x538   : > { %2237 = vmatmul.bf16.gmra.mxu0 %v2145_v63  ;;  %v2224_v31 = vadd.f32 %v3122_v22, %v2223_v58 }
 0x53a   : > { %v2243_v17 = vmax.f32 %v2224_v31, 0.0 }
 0x53f   : > { %v2225_v44 = vpop.f32.mrf.mxu0 }
 0x540   : > { %v2226_v35 = vadd.f32 %v3122_v22, %v2225_v44 }
 0x542   : > { %v2244_v19 = vmax.f32 %v2226_v35, 0.0 }
 0x544   : > { %v2251_v61 = vpack.c.bf16 %v2244_v19, %v2243_v17 }
 0x546   : > { %2331 = vmatmul.bf16.vlgmr.msrb.gmra.mxu1 %v2251_v61 }
 0x586   : > { %v2228_v20 = vpop.f32.mrf.mxu0 }
 0x587   : > { %v2229_v51 = vadd.f32 %v3122_v22, %v2228_v20 }
 0x589   : > { %v2245_v13 = vmax.f32 %v2229_v51, 0.0 }
 0x58e   : > { %v2230_v39 = vpop.f32.mrf.mxu0 }
 0x58f   : > { %v2231_v10 = vadd.f32 %v3122_v22, %v2230_v39 }
 0x591   : > { %v2246_v59 = vmax.f32 %v2231_v10, 0.0 }
 0x593   : > { %v2252_v33 = vpack.c.bf16 %v2246_v59, %v2245_v13 }
 0x595   : > { %2336 = vmatmul.bf16.gmra.mxu1 %v2252_v33 }
 0x59d   : > { %v2233_v11 = vpop.f32.mrf.mxu0 }
 0x59e   : > { %v2234_v12 = vadd.f32 %v3122_v22, %v2233_v11 }
 0x5a0   : > { %v2247_v55 = vmax.f32 %v2234_v12, 0.0 }
 0x5a5   : > { %v2235_v0 = vpop.f32.mrf.mxu0 }
 0x5a6   : > { %v2236_v26 = vadd.f32 %v3122_v22, %v2235_v0 }
 0x5a8   : > { %v2248_v54 = vmax.f32 %v2236_v26, 0.0 }
 0x5aa   : > { %v2253_v27 = vpack.c.bf16 %v2248_v54, %v2247_v55 }
 0x5ac   : > { %2341 = vmatmul.bf16.gmra.mxu1 %v2253_v27 }
 0x5b5   : > { %v2238_v29 = vpop.f32.mrf.mxu0 }
 0x5b6   : > { %v2239_v62 = vadd.f32 %v3122_v22, %v2238_v29 }
 0x5b8   : > { %v2249_v38 = vmax.f32 %v2239_v62, 0.0 }
 0x5bd   : > { %v2240_v1 = vpop.f32.mrf.mxu0 }
 0x5be   : > { %v2241_v28 = vadd.f32 %v3122_v22, %v2240_v1 }
 0x5c0   : > { %v2250_v8 = vmax.f32 %v2241_v28, 0.0  ;;  %v4706_v28 = vld [vmem:[%s4826_s21] ss:$0 sm:$0xff]  ;;  %s3490_s21 = scalar_lea.hbm %s3489_s3, 16 }
 0x5c1   : > { %p3491_p1 = scmp.ne.s32.totalorder %s3489_s3, %s3490_s21  ;;  %p3496_p7 = scmp.lt.s32.totalorder %s3494_s9, %s3490_s21 }
 0x5c2   : > { %v2254_v9 = vpack.c.bf16 %v2250_v8, %v2249_v38 }
 0x5c3   : > { %v2332_v49 = vpop.f32.mrf.mxu1  ;;  %p3492_p3 = pnand %p3491_p1, %p3727_p0  ;;  %p3497_p8 = por %p3496_p7, %p3495_p13 }
 0x5c4   : > { %v2333_v37 = vadd.f32 %v4644_v15, %v2332_v49  ;;  %2346 = vmatmul.bf16.gmra.mxu1 %v2254_v9  ;;  %v4712_v49 = vld [vmem:[%s4827_s2] ss:$0 sm:$0xff] }
 0x5c5   : > { %p3493_p5 = pneg %p3492_p3 }
 0x5c6   : > { %v4648_v4 = vadd.f32 %v2333_v37, %v4580_v60 }
 0x5c7   : > { %p3498_p9 = pnand %p3497_p8, %p3493_p5 }
 0x5c8   : > { %2360 = vadd.xlane.f32.xlu2 %v4648_v4  ;;  %v2384_v5 = vmul.f32 %v4648_v4, %v4648_v4 }
 0x5ca   : > { %2392 = vadd.xlane.f32.xlu1 %v2384_v5 }
 0x5cb   : > { %v2334_v6 = vpop.f32.mrf.mxu1 }
 0x5cc   : > { %v2335_v50 = vadd.f32 %v4644_v15, %v2334_v6 }
 0x5ce   : > { %v4655_v52 = vadd.f32 %v2335_v50, %v4583_v48 }
 0x5d0   : > { %2362 = vadd.xlane.f32.xlu0 %v4655_v52  ;;  %v2385_v47 = vmul.f32 %v4655_v52, %v4655_v52 }
 0x5d2   : > { %2394 = vadd.xlane.f32.xlu2 %v2385_v47 }
 0x612   : > { %v2337_v60 = vpop.f32.mrf.mxu1 }
 0x613   : > { %v2338_v43 = vadd.f32 %v4644_v15, %v2337_v60 }
 0x615   : > { %v4662_v42 = vadd.f32 %v2338_v43, %v4600_v30 }
 0x617   : > { %2364 = vadd.xlane.f32.xlu1 %v4662_v42  ;;  %v2386_v7 = vmul.f32 %v4662_v42, %v4662_v42 }
 0x619   : > { %2396 = vadd.xlane.f32.xlu0 %v2386_v7 }
 0x61a   : > { %v2339_v48 = vpop.f32.mrf.mxu1 }
 0x61b   : > { %v2340_v16 = vadd.f32 %v4644_v15, %v2339_v48 }
 0x61d   : > { %v4669_v3 = vadd.f32 %v2340_v16, %v4603_v41 }
 0x61f   : > { %2366 = vadd.xlane.f32.xlu2 %v4669_v3  ;;  %v2387_v14 = vmul.f32 %v4669_v3, %v4669_v3 }
 0x621   : > { %2398 = vadd.xlane.f32.xlu1 %v2387_v14 }
 0x629   : > { %v2342_v30 = vpop.f32.mrf.mxu1 }
 0x62a   : > { %v2343_v2 = vadd.f32 %v4644_v15, %v2342_v30 }
 0x62c   : > { %v4676_v53 = vadd.f32 %v2343_v2, %v4618_v25 }
 0x62e   : > { %2368 = vadd.xlane.f32.xlu0 %v4676_v53  ;;  %v2388_v36 = vmul.f32 %v4676_v53, %v4676_v53 }
 0x630   : > { %2400 = vadd.xlane.f32.xlu2 %v2388_v36 }
 0x631   : > { %v2344_v41 = vpop.f32.mrf.mxu1 }
 0x632   : > { %v2345_v45 = vadd.f32 %v4644_v15, %v2344_v41 }
 0x634   : > { %v4683_v34 = vadd.f32 %v2345_v45, %v4621_v56 }
 0x636   : > { %2370 = vadd.xlane.f32.xlu1 %v4683_v34  ;;  %v2389_v27 = vmul.f32 %v4683_v34, %v4683_v34 }
 0x63b   : > { %v2361_v18 = vpop.xlane.xlu2 %2360 }
 0x63c   : > { %v2376_v32 = vmul.f32 0.03125, %v2361_v18 }
 0x63d   : > { %v2393_v40 = vpop.xlane.xlu1 %2392 }
 0x63e   : > { %v2416_v57 = vmul.f32 %v2376_v32, %v2376_v32  ;;  %v2408_v25 = vmul.f32 0.03125, %v2393_v40  ;;  %v2432_v62 = vsub.f32 %v4648_v4, %v2376_v32 }
 0x640   : > { %v2424_v21 = vsub.f32 %v2408_v25, %v2416_v57 }
 0x641   : > { %v2347_v58 = vpop.f32.mrf.mxu1 }
 0x642   : > { %v2440_v23 = vadd.f32 1e-05, %v2424_v21  ;;  %v2348_v22 = vadd.f32 %v4644_v15, %v2347_v58 }
 0x643   : > { %v2363_v63 = vpop.xlane.xlu0 %2362 }
 0x644   : > { %3270 = vrsqrt.f32 %v2440_v23  ;;  %v2377_v31 = vmul.f32 0.03125, %v2363_v63  ;;  %v4688_v44 = vadd.f32 %v2348_v22, %v4631_v24  ;;  %vm2454_vm4 = vweird.f32 %v2440_v23 }
 0x645   : > { %v2395_v56 = vpop.xlane.xlu2 %2394 }
 0x646   : > { %v2417_v35 = vmul.f32 %v2377_v31, %v2377_v31  ;;  %v2409_v17 = vmul.f32 0.03125, %v2395_v56  ;;  %2372 = vadd.xlane.f32.xlu2 %v4688_v44  ;;  %v2390_v19 = vmul.f32 %v4688_v44, %v4688_v44  ;;  %v2433_v8 = vsub.f32 %v4655_v52, %v2377_v31 }
 0x648   : > { %v2425_v61 = vsub.f32 %v2409_v17, %v2417_v35  ;;  %2404 = vadd.xlane.f32.xlu1 %v2390_v19 }
 0x649   : > { %v2349_v39 = vpop.f32.mrf.mxu1 }
 0x64a   : > { %v3271_v20 = vpop.eup %3270  ;;  %v2441_v51 = vadd.f32 1e-05, %v2425_v61  ;;  %v2350_v13 = vadd.f32 %v4644_v15, %v2349_v39 }
 0x64b   : > { %v2449_v10 = vmul.f32 %v3271_v20, %v2440_v23  ;;  %vm2455_vm3 = vweird.f32 %v3271_v20 }
 0x64c   : > { %3272 = vrsqrt.f32 %v2441_v51  ;;  %v4695_v24 = vadd.f32 %v2350_v13, %v4634_v46  ;;  %vm2456_vm5 = vmor %vm2454_vm4, %vm2455_vm3  ;;  %vm2464_vm7 = vweird.f32 %v2441_v51 }
 0x64d   : > { %v2450_v59 = vmul.f32 %v3271_v20, %v2449_v10 }
 0x64e   : > { %2374 = vadd.xlane.f32.xlu0 %v4695_v24  ;;  %v2391_v11 = vmul.f32 %v4695_v24, %v4695_v24 }
 0x64f   : > { %v2451_v33 = vmul.f32 0.5, %v2450_v59 }
 0x650   : > { %2406 = vadd.xlane.f32.xlu2 %v2391_v11 }
 0x651   : > { %v2452_v12 = vsub.f32 1.5, %v2451_v33 }
 0x652   : > { %v3273_v0 = vpop.eup %3272 }
 0x653   : > { %v2453_v26 = vmul.f32 %v3271_v20, %v2452_v12  ;;  %v2459_v55 = vmul.f32 %v3273_v0, %v2441_v51  ;;  %vm2465_vm6 = vweird.f32 %v3273_v0 }
 0x654   : > { %vm2466_vm8 = vmor %vm2464_vm7, %vm2465_vm6 }
 0x655   : > { %v2460_v54 = vmul.f32 %v3273_v0, %v2459_v55  ;;  %v2457_v46 = vsel %vm2456_vm5, %v3271_v20, %v2453_v26 }
 0x656   : > { %2402 = vadd.xlane.f32.xlu0 %v2389_v27  ;;  %v2528_v15 = vmul.f32 %v2457_v46, %v2432_v62 }
 0x657   : > { %v2461_v29 = vmul.f32 0.5, %v2460_v54 }
 0x658   : > { %v2540_v37 = vmul.f32 %v4706_v28, %v2528_v15 }
 0x659   : > { %v2462_v1 = vsub.f32 1.5, %v2461_v29 }
 0x65a   : > { %v2552_v6 = vadd.f32 %v4712_v49, %v2540_v37 }
 0x65b   : > { %v2463_v38 = vmul.f32 %v3273_v0, %v2462_v1 }
 0x65d   : > { %v2467_v9 = vsel %vm2466_vm8, %v3273_v0, %v2463_v38 }
 0x65e   : > { %v2529_v4 = vmul.f32 %v2467_v9, %v2433_v8 }
 0x660   : > { %v2541_v5 = vmul.f32 %v4706_v28, %v2529_v4 }
 0x662   : > { %v2553_v50 = vadd.f32 %v4712_v49, %v2541_v5 }
 0x664   : > { %v2560_v47 = vmax.f32 %v2552_v6, %v2553_v50 }
 0x666   : > { %2564 = vst [vmem:[#allocation2] sm:$0xff] %v2560_v47 }
 0x68a   : > { %v2365_v60 = vpop.xlane.xlu1 %2364 }
 0x68b   : > { %v2378_v52 = vmul.f32 0.03125, %v2365_v60 }
 0x68c   : > { %v2397_v43 = vpop.xlane.xlu0 %2396 }
 0x68d   : > { %v2418_v7 = vmul.f32 %v2378_v52, %v2378_v52  ;;  %v2410_v48 = vmul.f32 0.03125, %v2397_v43  ;;  %v2434_v17 = vsub.f32 %v4662_v42, %v2378_v52 }
 0x68f   : > { %v2426_v16 = vsub.f32 %v2410_v48, %v2418_v7 }
 0x691   : > { %v2442_v14 = vadd.f32 1e-05, %v2426_v16 }
 0x692   : > { %v2367_v30 = vpop.xlane.xlu2 %2366 }
 0x693   : > { %3274 = vrsqrt.f32 %v2442_v14  ;;  %v2379_v2 = vmul.f32 0.03125, %v2367_v30  ;;  %vm2474_vm10 = vweird.f32 %v2442_v14 }
 0x694   : > { %v2399_v36 = vpop.xlane.xlu1 %2398 }
 0x695   : > { %v2419_v41 = vmul.f32 %v2379_v2, %v2379_v2  ;;  %v2411_v45 = vmul.f32 0.03125, %v2399_v36  ;;  %v2435_v51 = vsub.f32 %v4669_v3, %v2379_v2 }
 0x697   : > { %v2427_v18 = vsub.f32 %v2411_v45, %v2419_v41 }
 0x699   : > { %v3275_v32 = vpop.eup %3274  ;;  %v2443_v40 = vadd.f32 1e-05, %v2427_v18 }
 0x69a   : > { %v2469_v57 = vmul.f32 %v3275_v32, %v2442_v14  ;;  %vm2475_vm9 = vweird.f32 %v3275_v32 }
 0x69b   : > { %3276 = vrsqrt.f32 %v2443_v40  ;;  %vm2476_vm11 = vmor %vm2474_vm10, %vm2475_vm9  ;;  %vm2484_vm13 = vweird.f32 %v2443_v40 }
 0x69c   : > { %v2470_v25 = vmul.f32 %v3275_v32, %v2469_v57 }
 0x69e   : > { %v2471_v21 = vmul.f32 0.5, %v2470_v25 }
 0x6a0   : > { %v2472_v23 = vsub.f32 1.5, %v2471_v21 }
 0x6a1   : > { %v3277_v58 = vpop.eup %3276  ;;  %v2369_v39 = vpop.xlane.xlu0 %2368 }
 0x6a2   : > { %v2473_v63 = vmul.f32 %v3275_v32, %v2472_v23  ;;  %v2479_v22 = vmul.f32 %v3277_v58, %v2443_v40  ;;  %vm2485_vm12 = vweird.f32 %v3277_v58  ;;  %v4721_v33 = vmul.f32 0.03125, %v2369_v39 }
 0x6a3   : > { %vm2486_vm14 = vmor %vm2484_vm13, %vm2485_vm12  ;;  %v2401_v12 = vpop.xlane.xlu2 %2400 }
 0x6a4   : > { %v2480_v31 = vmul.f32 %v3277_v58, %v2479_v22  ;;  %v2477_v56 = vsel %vm2476_vm11, %v3275_v32, %v2473_v63  ;;  %v2420_v26 = vmul.f32 %v4721_v33, %v4721_v33  ;;  %v2412_v3 = vmul.f32 0.03125, %v2401_v12 }
 0x6a5   : > { %v2530_v61 = vmul.f32 %v2477_v56, %v2434_v17 }
 0x6a6   : > { %v2481_v35 = vmul.f32 0.5, %v2480_v31  ;;  %v2428_v27 = vsub.f32 %v2412_v3, %v2420_v26  ;;  %v2436_v26 = vsub.f32 %v4676_v53, %v4721_v33 }
 0x6a7   : > { %v2542_v13 = vmul.f32 %v4706_v28, %v2530_v61 }
 0x6a8   : > { %v2482_v19 = vsub.f32 1.5, %v2481_v35  ;;  %v2444_v29 = vadd.f32 1e-05, %v2428_v27 }
 0x6a9   : > { %v2554_v42 = vadd.f32 %v4712_v49, %v2542_v13  ;;  %v2371_v54 = vpop.xlane.xlu1 %2370 }
 0x6aa   : > { %v2483_v20 = vmul.f32 %v3277_v58, %v2482_v19  ;;  %3278 = vrsqrt.f32 %v2444_v29  ;;  %v4732_v7 = vmul.f32 0.03125, %v2371_v54  ;;  %vm2494_vm4 = vweird.f32 %v2444_v29 }
 0x6ac   : > { %v2487_v10 = vsel %vm2486_vm14, %v3277_v58, %v2483_v20  ;;  %v2421_v41 = vmul.f32 %v4732_v7, %v4732_v7 }
 0x6ad   : > { %v2531_v59 = vmul.f32 %v2487_v10, %v2435_v51 }
 0x6af   : > { %v2543_v11 = vmul.f32 %v4706_v28, %v2531_v59 }
 0x6b0   : > { %v3279_v60 = vpop.eup %3278 }
 0x6b1   : > { %v2555_v0 = vadd.f32 %v4712_v49, %v2543_v11  ;;  %v2489_v16 = vmul.f32 %v3279_v60, %v2444_v29  ;;  %vm2495_vm2 = vweird.f32 %v3279_v60 }
 0x6b2   : > { %vm2496_vm5 = vmor %vm2494_vm4, %vm2495_vm2 }
 0x6b3   : > { %v2561_v55 = vmax.f32 %v2554_v42, %v2555_v0  ;;  %v2490_v18 = vmul.f32 %v3279_v60, %v2489_v16 }
 0x6b5   : > { %2565 = vst [vmem:[#allocation2 + $0x8] sm:$0xff] %v2561_v55  ;;  %v2491_v21 = vmul.f32 0.5, %v2490_v18 }
 0x6b7   : > { %v2492_v31 = vsub.f32 1.5, %v2491_v21 }
 0x6b9   : > { %v2373_v46 = vpop.xlane.xlu2 %2372  ;;  %v2493_v20 = vmul.f32 %v3279_v60, %v2492_v31 }
 0x6ba   : > { %v2382_v62 = vmul.f32 0.03125, %v2373_v46 }
 0x6bb   : > { %v2405_v1 = vpop.xlane.xlu1 %2404  ;;  %v2497_v12 = vsel %vm2496_vm5, %v3279_v60, %v2493_v20 }
 0x6bc   : > { %v2422_v15 = vmul.f32 %v2382_v62, %v2382_v62  ;;  %v2414_v38 = vmul.f32 0.03125, %v2405_v1  ;;  %v2568_v8 = vld [vmem:[#allocation2] ss:$2 sm:$0xff]  ;;  %v2572_v9 = vld [vmem:[#allocation2 + $0x1] ss:$2 sm:$0xff]  ;;  %v2438_v61 = vsub.f32 %v4688_v44, %v2382_v62  ;;  %v2532_v54 = vmul.f32 %v2497_v12, %v2436_v26 }
 0x6bd   : > { %v2575_v37 = vmax.f32 %v2568_v8, %v2572_v9 }
 0x6be   : > { %v2430_v4 = vsub.f32 %v2414_v38, %v2422_v15  ;;  %v2544_v33 = vmul.f32 %v4706_v28, %v2532_v54 }
 0x6bf   : > { %2577 = vst [vmem:[%s4729_s22] sm:$0xff] %v2575_v37 }
 0x6c0   : > { %v2446_v5 = vadd.f32 1e-05, %v2430_v4  ;;  %v2556_v8 = vadd.f32 %v4712_v49, %v2544_v33 }
 0x6c1   : > { %v2375_v6 = vpop.xlane.xlu0 %2374 }
 0x6c2   : > { %3280 = vrsqrt.f32 %v2446_v5  ;;  %v2383_v50 = vmul.f32 0.03125, %v2375_v6  ;;  %vm2514_vm0 = vweird.f32 %v2446_v5 }
 0x6c3   : > { %v2407_v47 = vpop.xlane.xlu2 %2406 }
 0x6c4   : > { %v2423_v52 = vmul.f32 %v2383_v50, %v2383_v50  ;;  %v2415_v43 = vmul.f32 0.03125, %v2407_v47  ;;  %v2439_v11 = vsub.f32 %v4695_v24, %v2383_v50  ;;  %v2437_v24 = vsub.f32 %v4683_v34, %v4732_v7 }
 0x6c6   : > { %v2431_v48 = vsub.f32 %v2415_v43, %v2423_v52 }
 0x6c8   : > { %v3281_v14 = vpop.eup %3280  ;;  %v2447_v30 = vadd.f32 1e-05, %v2431_v48 }
 0x6c9   : > { %v2509_v2 = vmul.f32 %v3281_v14, %v2446_v5  ;;  %v2403_v36 = vpop.xlane.xlu0 %2402  ;;  %vm2515_vm15 = vweird.f32 %v3281_v14 }
 0x6ca   : > { %3282 = vrsqrt.f32 %v2447_v30  ;;  %v2413_v45 = vmul.f32 0.03125, %v2403_v36  ;;  %vm2516_vm1 = vmor %vm2514_vm0, %vm2515_vm15  ;;  %vm2524_vm6 = vweird.f32 %v2447_v30 }
 0x6cb   : > { %v2510_v32 = vmul.f32 %v3281_v14, %v2509_v2 }
 0x6cc   : > { %v2429_v40 = vsub.f32 %v2413_v45, %v2421_v41 }
 0x6cd   : > { %v2511_v57 = vmul.f32 0.5, %v2510_v32 }
 0x6ce   : > { %v2445_v25 = vadd.f32 1e-05, %v2429_v40 }
 0x6cf   : > { %v2512_v23 = vsub.f32 1.5, %v2511_v57 }
 0x6d0   : > { %v3283_v58 = vpop.eup %3282  ;;  %3284 = vrsqrt.f32 %v2445_v25  ;;  %vm2504_vm9 = vweird.f32 %v2445_v25 }
 0x6d1   : > { %v2513_v63 = vmul.f32 %v3281_v14, %v2512_v23  ;;  %v2519_v22 = vmul.f32 %v3283_v58, %v2447_v30  ;;  %vm2525_vm3 = vweird.f32 %v3283_v58 }
 0x6d2   : > { %vm2526_vm7 = vmor %vm2524_vm6, %vm2525_vm3 }
 0x6d3   : > { %v2520_v56 = vmul.f32 %v3283_v58, %v2519_v22  ;;  %v2517_v35 = vsel %vm2516_vm1, %v3281_v14, %v2513_v63 }
 0x6d4   : > { %v2534_v10 = vmul.f32 %v2517_v35, %v2438_v61 }
 0x6d5   : > { %v2521_v17 = vmul.f32 0.5, %v2520_v56 }
 0x6d6   : > { %v3285_v19 = vpop.eup %3284  ;;  %v2546_v44 = vmul.f32 %v4706_v28, %v2534_v10 }
 0x6d7   : > { %v2522_v51 = vsub.f32 1.5, %v2521_v17  ;;  %v2499_v39 = vmul.f32 %v3285_v19, %v2445_v25  ;;  %vm2505_vm8 = vweird.f32 %v3285_v19 }
 0x6d8   : > { %v2558_v29 = vadd.f32 %v4712_v49, %v2546_v44  ;;  %vm2506_vm10 = vmor %vm2504_vm9, %vm2505_vm8 }
 0x6d9   : > { %v2523_v13 = vmul.f32 %v3283_v58, %v2522_v51  ;;  %v2500_v59 = vmul.f32 %v3285_v19, %v2499_v39 }
 0x6db   : > { %v2527_v42 = vsel %vm2526_vm7, %v3283_v58, %v2523_v13  ;;  %v2501_v0 = vmul.f32 0.5, %v2500_v59 }
 0x6dc   : > { %v2535_v3 = vmul.f32 %v2527_v42, %v2439_v11 }
 0x6dd   : > { %v2502_v55 = vsub.f32 1.5, %v2501_v0 }
 0x6de   : > { %v2547_v27 = vmul.f32 %v4706_v28, %v2535_v3 }
 0x6df   : > { %v2503_v46 = vmul.f32 %v3285_v19, %v2502_v55 }
 0x6e0   : > { %v2559_v62 = vadd.f32 %v4712_v49, %v2547_v27 }
 0x6e1   : > { %v2507_v53 = vsel %vm2506_vm10, %v3285_v19, %v2503_v46 }
 0x6e2   : > { %v2563_v1 = vmax.f32 %v2558_v29, %v2559_v62  ;;  %v2533_v15 = vmul.f32 %v2507_v53, %v2437_v24 }
 0x6e4   : > { %2567 = vst [vmem:[#allocation2 + $0x18] sm:$0xff] %v2563_v1  ;;  %v2545_v38 = vmul.f32 %v4706_v28, %v2533_v15 }
 0x6e6   : > { %v2557_v34 = vadd.f32 %v4712_v49, %v2545_v38 }
 0x6e8   : > { %v2562_v9 = vmax.f32 %v2556_v8, %v2557_v34 }
 0x6ea   : > { %2566 = vst [vmem:[#allocation2 + $0x10] sm:$0xff] %v2562_v9 }
 0x6f1   : > { %v2570_v37 = vld [vmem:[#allocation2 + $0x10] ss:$2 sm:$0xff]  ;;  %v2574_v4 = vld [vmem:[#allocation2 + $0x11] ss:$2 sm:$0xff] }
 0x6f2   : > { %v2576_v5 = vmax.f32 %v2570_v37, %v2574_v4 }
 0x6f4   : > { %2578 = vst [vmem:[%s4729_s22 + $0x8] sm:$0xff] %v2576_v5 }
 0x6f5   : > { %3501 = shalt.err (!%p3498_p9)
}
 0x6f6   : > { %s3565_s30 = smov 128   ;;  %s3566_s22 = smov 8  }
 0x6f7   : > { %3036 = dma.vmem_to_hbm [thread:$0]  (%p3727_p0), %s2593_s13, 256, %s2595_s14, %s2580_s19, %s3565_s30, %s3565_s30, %s3566_s22  }
 0x6f8 PF: > { %s2609_s11 = sand.u32 1, %s3540_s25   ;;  %p4829_p10 = scmp.ge.s32.totalorder %s3552_s28, 2 }
 0x6f9   : > { %s2610_s20 = scalar_lea.sflag [#allocation5], %s2609_s11 }
 0x6fa   : > { %p3059_p11 = pnand %p4829_p10, %p3733_p6 }
 0x6fc   : > { %p3060_p12 = pneg %p3059_p11 }
 0x6fe   : > { %3535 = dma.done.wait (%p3060_p12), %s2610_s20, 256  }
 0x6ff   : > { %3537 = vsyncadd (%p3060_p12), %s2610_s20, 4294967040  ;;  %p29_p2 = scmp.ge.s32.totalorder %s3703_s29, 4   ;;  %s4830_s25 = smov %s3544_s26 }
 0x700   : > { %s4831_s26 = smov %s3548_s27  ;;  %s4832_s27 = smov %s3715_s23 }
 0x701   : > { %s4833_s28 = smov %s3703_s29  ;;  %31 = sbr.rel (!%p29_p2) target bundleno = 17 (0x11), region = 140 }
 0x706   :  { %2616 = vsyncpa [#allocation4], 1 }
 0x707   :  { %2618 = vsyncpa [#allocation4 + $0x1], 1 }
 0x708   :  { %2619 = vsyncpa [#allocation7], 1 }
 0x709   :  { %2620 = vsyncpa [#allocation10], 1 }
 0x70a   :  { %2621 = vsyncpa [#allocation13], 1 }
 0x70b   :  { %2622 = vsyncpa [#allocation5], 1 }
 0x70c   :  { %2624 = vsyncpa [#allocation5 + $0x1], 1 }

</bundles_post_ra>
